<compile_context>
chip_gen: v5e
topology: v5e:2x2
jax: 0.10.0
libtpu: 0.0.40
codegen_flags: <defaults>
</compile_context>

<pallas_src>
import functools

import jax
import jax.numpy as jnp
from jax.experimental import pallas as pl
from jax.experimental.pallas import tpu as pltpu

EPSILON = 1e-10          # matches the PyTorch reference's safe_log (ref only)
_ISSUE_UNROLL = 8        # descriptor-issue unroll (rows is always a multiple of 8)


def _softplus(x):
    # Stable softplus: max(x, 0) + log1p(exp(-|x|)); exp/log1p land on the EUP.
    return jnp.maximum(x, 0.0) + jnp.log1p(jnp.exp(-jnp.abs(x)))


def _nce_loss_kernel(idx_ref, h_ref, c_ref, w_hbm_ref,
                     loss_ref, wbuf, dma_sem, *, tile_m, n_samples):
    """One row-tile of the NCE loss with a double-buffered in-kernel W gather.

    idx_ref  : SMEM (num_tiles * n_samples * tile_m,) int32 vocab indices,
               laid out (tile, sample, row); sample 0 is the target.
    h_ref    : VMEM (tile_m, D)              hidden vectors (pipelined).
    c_ref    : VMEM (1, n_samples, tile_m)   folded constants
               c = lnZ + log(k * P_noise(idx)) - bias(idx).
    w_hbm_ref: HBM  (V, D)                   embedding matrix (pl.ANY).
    loss_ref : VMEM (1, 1, tile_m)           per-row loss (lane dense).
    wbuf     : VMEM (2 * n_samples * tile_m, D) double-buffered gather buffer.
    dma_sem  : DMA semaphores (2,), one per slot.
    """
    i = pl.program_id(0)
    rows = tile_m * n_samples
    slot = i % 2

    def issue_gather(tile, slot_idx):
        src_base = tile * rows
        dst_base = slot_idx * rows

        @pl.loop(0, rows // _ISSUE_UNROLL)
        def _(c):
            j0 = pl.multiple_of(c * _ISSUE_UNROLL, _ISSUE_UNROLL)
            for u in range(_ISSUE_UNROLL):      # python unroll: keep misc slot fed
                j = j0 + u
                row = idx_ref[src_base + j]
                pltpu.make_async_copy(
                    w_hbm_ref.at[pl.ds(row, 1)],
                    wbuf.at[pl.ds(dst_base + j, 1)],
                    dma_sem.at[slot_idx]).start()

    # Prologue: prime slot 0 with tile 0's rows.  The grid axis runs
    # sequentially ("arbitrary"), so program 0 really is the first iteration.
    @pl.when(i == 0)
    def _():
        issue_gather(0, 0)

    # Prefetch tile i+1 into the other slot; it transfers while tile i computes.
    @pl.when(i + 1 < pl.num_programs(0))
    def _():
        issue_gather(i + 1, 1 - slot)

    # One aggregate wait: DMA semaphores count bytes, so a single wait sized to
    # the full slot (rows * D * itemsize) matches the sum of the per-row copies.
    slot_base = pl.multiple_of(slot * rows, 8)
    slot_view = wbuf.at[pl.ds(slot_base, rows)]
    pltpu.make_async_copy(slot_view, slot_view, dma_sem.at[slot]).wait()

    # ---- NCE loss over the Nr+1 sample columns (column 0 = target) ----------
    # loss = softplus(c_0 - <h, W[t]>) + sum_s softplus(<h, W[n_s]> - c_s)
    h = h_ref[...].astype(jnp.float32)                        # (tile_m, D)

    def dot_of(s):
        off = pl.multiple_of(slot_base + s * tile_m, 8)
        w_s = wbuf[pl.ds(off, tile_m), :].astype(jnp.float32)
        # TODO(synk): if the cross-lane reduce (XLU) binds once the gather is
        #             overlapped, route it through the idle MXU (ones-matmul).
        return jnp.sum(h * w_s, axis=-1)                      # (tile_m,)

    acc0 = _softplus(c_ref[0, 0] - dot_of(0))                 # target term

    def noise_step(s, acc):
        return acc + _softplus(dot_of(s) - c_ref[0, s])

    acc = jax.lax.fori_loop(1, n_samples, noise_step, acc0, unroll=True)
    loss_ref[0, 0, :] = acc


def _vmem_capacity_bytes():
    try:
        info = pltpu.get_tpu_info()
        for name in ("vmem_capacity_bytes", "vmem_bytes", "vmem_size_bytes"):
            val = getattr(info, name, None)
            if val:
                return int(val)
    except Exception:
        pass
    return 64 * 1024 * 1024          # conservative default: v7x per-TC VMEM


def _choose_tile_m(D, n_samples, w_itemsize, h_itemsize, M):
    """Largest lane-friendly row tile that fits a generation-aware VMEM budget,
    accounting for the 2-slot gather buffer and double-buffered pipeline blocks."""
    budget = int(_vmem_capacity_bytes() * 0.6)        # headroom for compiler scratch
    bytes_per_row = (2 * n_samples * D * w_itemsize   # W gather buffer (x2 slots)
                     + 2 * D * h_itemsize             # hidden block (x2 pipeline bufs)
                     + 2 * n_samples * 4              # folded-constant slab (x2)
                     + 2 * 4)                         # loss block (x2)
    fit = budget // bytes_per_row
    if fit >= 128:
        tile = min(1024, (fit // 128) * 128)          # keep stores fully lane-dense
    else:
        tile = max(8, (fit // 8) * 8)                 # extreme D: fall back to x8
    m_cap = -(-M // 8) * 8                            # never exceed the padded problem
    return int(max(8, min(tile, m_cap)))


def nce_loss_pallas(idx_k, hidden_pad, c_t, W, *, tile_m, n_samples, num_tiles):
    M_pad, D = hidden_pad.shape
    assert M_pad == num_tiles * tile_m
    rows = n_samples * tile_m

    kernel = functools.partial(_nce_loss_kernel, tile_m=tile_m, n_samples=n_samples)

    vmem_needed = (2 * rows * D * jnp.dtype(W.dtype).itemsize
                   + 2 * tile_m * D * jnp.dtype(hidden_pad.dtype).itemsize
                   + 2 * rows * 4 + 2 * tile_m * 4)
    vmem_phys = _vmem_capacity_bytes()
    vmem_limit = min(int(vmem_phys * 0.9), max(32 << 20, vmem_needed + (8 << 20)))

    return pl.pallas_call(
        kernel,
        out_shape=jax.ShapeDtypeStruct((num_tiles, 1, tile_m), jnp.float32),
        grid_spec=pltpu.PrefetchScalarGridSpec(
            num_scalar_prefetch=1,                 # flat (tile, sample, row) index table
            grid=(num_tiles,),
            in_specs=[
                pl.BlockSpec((tile_m, D), lambda i, idx: (i, 0)),                # hidden
                pl.BlockSpec((1, n_samples, tile_m), lambda i, idx: (i, 0, 0)),  # folded consts
                pl.BlockSpec(memory_space=pl.ANY),                               # W stays in HBM
            ],
            out_specs=pl.BlockSpec((1, 1, tile_m), lambda i, idx: (i, 0, 0)),
            scratch_shapes=[
                pltpu.VMEM((2 * rows, D), W.dtype),  # double-buffered gather buffer
                pltpu.SemaphoreType.DMA((2,)),       # one byte-counting sem per slot
            ],
        ),
        compiler_params=pltpu.CompilerParams(
            # The gather double-buffer carries state across grid steps, so the
            # axis must run sequentially.
            # TODO(synk): on v7x, shard tiles across the two TensorCores with an
            #             explicit leading core axis (pltpu.CORE_PARALLEL).
            dimension_semantics=("arbitrary",),
            vmem_limit_bytes=int(vmem_limit),
        ),
    )(idx_k, hidden_pad, c_t, W)


def nce_loss_forward(target, hidden, noise_samples, noise_dist, W, b,
                     *, noise_ratio=10, norm_term=9.0,
                     size_average=True, reduce=False, tile_m=None):
    """Mirror of NCELoss.forward (nce=True).

    target        : (B, N) int32 token indices
    hidden        : (B, N, D) model hidden states (extra arg to get_score)
    noise_samples : (B, N, Nr) int32 noise indices (alias-method draw, in glue)
    noise_dist    : (V,) noise distribution probabilities
    W, b          : (V, D), (V,) IndexLinear parameters
    returns loss  : (B, N) if reduce=False, scalar otherwise
    """
    B, N = target.shape
    Nr = noise_samples.shape[-1]
    D = hidden.shape[-1]
    n_samples = Nr + 1
    M = B * N

    if tile_m is None:
        tile_m = _choose_tile_m(D, n_samples,
                                jnp.dtype(W.dtype).itemsize,
                                jnp.dtype(hidden.dtype).itemsize, M)
    assert tile_m % 8 == 0 and tile_m >= 8

    num_tiles = int(pl.cdiv(M, tile_m))
    M_pad = num_tiles * tile_m
    pad = M_pad - M

    # Column 0 = target index, columns 1..Nr = noise sample indices.
    idx = jnp.concatenate(
        [target.reshape(M, 1), noise_samples.reshape(M, Nr)], axis=1
    ).astype(jnp.int32)
    h = hidden.reshape(M, D)
    if pad:
        idx = jnp.pad(idx, ((0, pad), (0, 0)))   # padded rows gather W[0]; sliced off below
        h = jnp.pad(h, ((0, pad), (0, 0)))

    # Fold every per-sample scalar into one lane-dense slab:
    #   c = lnZ + log(k * P_noise(idx)) - bias(idx)
    c_all = (jnp.float32(norm_term)
             + jnp.log(jnp.float32(noise_ratio) * noise_dist[idx].astype(jnp.float32))
             - b[idx].astype(jnp.float32))
    c_t = c_all.reshape(num_tiles, tile_m, n_samples).transpose(0, 2, 1)

    # Gather indices in (tile, sample, row) order for the in-kernel DMA gather.
    idx_k = idx.reshape(num_tiles, tile_m, n_samples).transpose(0, 2, 1).reshape(-1)

    loss_tiles = nce_loss_pallas(idx_k, h, c_t, W,
                                 tile_m=tile_m, n_samples=n_samples,
                                 num_tiles=num_tiles)

    loss = loss_tiles.reshape(M_pad)[:M].reshape(B, N)

    if reduce:
        return loss.mean() if size_average else loss.sum()
    return loss


def _reference_forward(target, hidden, noise_samples, noise_dist, W, b,
                       *, noise_ratio=10, norm_term=9.0):
    """Pure-JAX mirror of the PyTorch module (eps + division form)."""
    k = float(noise_ratio)
    Wf = W.astype(jnp.float32)
    ptn = noise_dist[target]                                     # (B, N)
    pn = noise_dist[noise_samples]                               # (B, N, Nr)
    t_score = jnp.einsum('bnd,bnd->bn', hidden, Wf[target]) + b[target]
    n_score = jnp.einsum('bnd,bnrd->bnr', hidden, Wf[noise_samples]) + b[noise_samples]
    prob_model = jnp.exp(t_score - norm_term)
    prob_noise_in_model = jnp.exp(n_score - norm_term)
    model_loss = jnp.log(EPSILON + prob_model / (prob_model + k * ptn))
    noise_loss = jnp.sum(
        jnp.log(EPSILON + k * pn / (prob_noise_in_model + k * pn)), axis=-1)
    return -(model_loss + noise_loss)


if __name__ == "__main__":
    # Small, deliberately non-tile-aligned shapes: M = 114.
    B, N, V, D, Nr = 2, 57, 50, 32, 10
    noise_ratio, norm_term = Nr, 9.0

    key = jax.random.PRNGKey(0)
    k_noise, k_tgt, k_hid, k_w, k_b, k_samp = jax.random.split(key, 6)

    # Noise distribution over vocab (normalized, positive).
    noise_dist = jax.random.uniform(k_noise, (V,), jnp.float32, 0.1, 1.0)
    noise_dist = noise_dist / noise_dist.sum()

    # Supervised targets and model hidden states.
    target = jax.random.randint(k_tgt, (B, N), 0, V, jnp.int32)
    hidden = jax.random.normal(k_hid, (B, N, D), jnp.float32) * 0.1

    # IndexLinear parameters (kernel also supports bf16 W: gathered in native
    # dtype, upcast in-kernel; f32 here so the numerical check is tight).
    W = jax.random.normal(k_w, (V, D), jnp.float32) * 0.1
    b = jax.random.normal(k_b, (V,), jnp.float32) * 0.1

    # Noise sampling (AliasMethod.draw equivalent): per-word samples (B, N, Nr).
    logits = jnp.log(noise_dist)
    noise_samples = jax.random.categorical(
        k_samp, logits, shape=(B, N, Nr)).astype(jnp.int32)

    ref = _reference_forward(target, hidden, noise_samples, noise_dist, W, b,
                             noise_ratio=noise_ratio, norm_term=norm_term)

    # Two 64-row tiles + 14 padded rows: exercises the i==0 prologue, the i+1
    # cross-tile prefetch, the aggregate wait, and the padding path.
    loss = nce_loss_forward(target, hidden, noise_samples, noise_dist, W, b,
                            noise_ratio=noise_ratio, norm_term=norm_term,
                            size_average=True, reduce=False, tile_m=64)
    loss = jax.block_until_ready(loss)
    assert loss.shape == (B, N)
    assert jnp.allclose(loss, ref, rtol=1e-4, atol=1e-4), \
        float(jnp.max(jnp.abs(loss - ref)))

    # Auto tile sizing (generation-aware VMEM budget) -> a single padded tile.
    loss_auto = nce_loss_forward(target, hidden, noise_samples, noise_dist, W, b,
                                 noise_ratio=noise_ratio, norm_term=norm_term,
                                 size_average=True, reduce=False, tile_m=None)
    loss_auto = jax.block_until_ready(loss_auto)
    assert jnp.allclose(loss_auto, ref, rtol=1e-4, atol=1e-4), \
        float(jnp.max(jnp.abs(loss_auto - ref)))

    print("KERNEL_OK")
</pallas_src>

<mosaic_0001>
module attributes {stable_mosaic.version = 11 : i64} {
  func.func @_nce_loss_kernel(%arg0: i32, %arg1: memref<1408xi32, #tpu.memory_space<smem>>, %arg2: memref<64x32xf32, #tpu.memory_space<vmem>>, %arg3: memref<1x11x64xf32, #tpu.memory_space<vmem>>, %arg4: memref<50x32xf32, #tpu.memory_space<any>>, %arg5: memref<1x1x64xf32, #tpu.memory_space<vmem>>, %arg6: memref<1408x32xf32, #tpu.memory_space<vmem>>, %arg7: memref<2x!tpu.dma_semaphore, #tpu.memory_space<semaphore_mem>>) attributes {dimension_semantics = [#tpu.dimension_semantics<arbitrary>], iteration_bounds = array<i64: 2>, scalar_prefetch = 1 : i64, scratch_operands = 2 : i64, tpu.core_type = #tpu.core_type<tc>, window_params = [{transform_indices = @transform_0, window_bounds = array<i64: 64, 32>}, {transform_indices = @transform_1, window_bounds = array<i64: 1, 11, 64>}, {}, {transform_indices = @transform_3, window_bounds = array<i64: 1, 1, 64>}]} {
    %c2_i32 = arith.constant 2 : i32
    %c0_i32 = arith.constant 0 : i32
    %0 = arith.cmpi eq, %c2_i32, %c0_i32 : i32
    %c1_i32 = arith.constant 1 : i32
    %1 = arith.select %0, %c1_i32, %c2_i32 : i32
    %2 = arith.remsi %arg0, %1 : i32
    %c0_i32_0 = arith.constant 0 : i32
    %3 = arith.cmpi ne, %2, %c0_i32_0 : i32
    %c0_i32_1 = arith.constant 0 : i32
    %4 = arith.cmpi slt, %2, %c0_i32_1 : i32
    %c0_i32_2 = arith.constant 0 : i32
    %5 = arith.cmpi slt, %1, %c0_i32_2 : i32
    %6 = arith.xori %4, %5 : i1
    %7 = arith.andi %6, %3 : i1
    %8 = arith.addi %2, %1 : i32
    %9 = arith.select %7, %8, %2 : i32
    %c0_i32_3 = arith.constant 0 : i32
    %10 = arith.cmpi eq, %arg0, %c0_i32_3 : i32
    %11 = arith.extui %10 : i1 to i32
    %c0_i32_4 = arith.constant 0 : i32
    %12 = arith.cmpi ne, %11, %c0_i32_4 : i32
    scf.if %12 {
      %c0_i32_93 = arith.constant 0 : i32
      %c88_i32 = arith.constant 88 : i32
      %244 = arith.addi %c0_i32_93, %c88_i32 : i32
      %c1_i32_94 = arith.constant 1 : i32
      scf.for %arg8 = %c0_i32_93 to %244 step %c1_i32_94  : i32 {
        %c1_i32_96 = arith.constant 1 : i32
        %245 = arith.muli %arg8, %c1_i32_96 : i32
        %c0_i32_97 = arith.constant 0 : i32
        %246 = arith.addi %c0_i32_97, %245 : i32
        %c8_i32_98 = arith.constant 8 : i32
        %247 = arith.muli %246, %c8_i32_98 : i32
        %248 = tpu.assume_multiple %247, 8 : i32
        %c0_i32_99 = arith.constant 0 : i32
        %249 = arith.addi %248, %c0_i32_99 : i32
        %c0_i32_100 = arith.constant 0 : i32
        %250 = arith.addi %c0_i32_100, %249 : i32
        %251 = arith.index_cast %250 : i32 to index
        %252 = memref.load %arg1[%251] : memref<1408xi32, #tpu.memory_space<smem>>
        %c0_i32_101 = arith.constant 0 : i32
        %253 = arith.addi %c0_i32_101, %249 : i32
        %c0_i32_102 = arith.constant 0 : i32
        %c0_i32_103 = arith.constant 0 : i32
        %254 = tpu.memref_slice %arg4[%252, %c0_i32_103] : memref<50x32xf32, #tpu.memory_space<any>> -> memref<1x32xf32, #tpu.memory_space<any>>
        %c0_i32_104 = arith.constant 0 : i32
        %255 = tpu.memref_slice %arg6[%253, %c0_i32_104] : memref<1408x32xf32, #tpu.memory_space<vmem>> -> memref<1x32xf32, #tpu.memory_space<vmem>>
        %256 = tpu.memref_slice %arg7[%c0_i32_102] : memref<2x!tpu.dma_semaphore, #tpu.memory_space<semaphore_mem>> -> memref<1x!tpu.dma_semaphore, #tpu.memory_space<semaphore_mem>>
        %257 = tpu.memref_squeeze %256 : memref<1x!tpu.dma_semaphore, #tpu.memory_space<semaphore_mem>> -> memref<!tpu.dma_semaphore, #tpu.memory_space<semaphore_mem>>
        tpu.enqueue_dma source(%254 : memref<1x32xf32, #tpu.memory_space<any>>) target(%255 : memref<1x32xf32, #tpu.memory_space<vmem>>) target_semaphore(%257 : memref<!tpu.dma_semaphore, #tpu.memory_space<semaphore_mem>>)
        %c1_i32_105 = arith.constant 1 : i32
        %258 = arith.addi %248, %c1_i32_105 : i32
        %c0_i32_106 = arith.constant 0 : i32
        %259 = arith.addi %c0_i32_106, %258 : i32
        %260 = arith.index_cast %259 : i32 to index
        %261 = memref.load %arg1[%260] : memref<1408xi32, #tpu.memory_space<smem>>
        %c0_i32_107 = arith.constant 0 : i32
        %262 = arith.addi %c0_i32_107, %258 : i32
        %c0_i32_108 = arith.constant 0 : i32
        %c0_i32_109 = arith.constant 0 : i32
        %263 = tpu.memref_slice %arg4[%261, %c0_i32_109] : memref<50x32xf32, #tpu.memory_space<any>> -> memref<1x32xf32, #tpu.memory_space<any>>
        %c0_i32_110 = arith.constant 0 : i32
        %264 = tpu.memref_slice %arg6[%262, %c0_i32_110] : memref<1408x32xf32, #tpu.memory_space<vmem>> -> memref<1x32xf32, #tpu.memory_space<vmem>>
        %265 = tpu.memref_slice %arg7[%c0_i32_108] : memref<2x!tpu.dma_semaphore, #tpu.memory_space<semaphore_mem>> -> memref<1x!tpu.dma_semaphore, #tpu.memory_space<semaphore_mem>>
        %266 = tpu.memref_squeeze %265 : memref<1x!tpu.dma_semaphore, #tpu.memory_space<semaphore_mem>> -> memref<!tpu.dma_semaphore, #tpu.memory_space<semaphore_mem>>
        tpu.enqueue_dma source(%263 : memref<1x32xf32, #tpu.memory_space<any>>) target(%264 : memref<1x32xf32, #tpu.memory_space<vmem>>) target_semaphore(%266 : memref<!tpu.dma_semaphore, #tpu.memory_space<semaphore_mem>>)
        %c2_i32_111 = arith.constant 2 : i32
        %267 = arith.addi %248, %c2_i32_111 : i32
        %c0_i32_112 = arith.constant 0 : i32
        %268 = arith.addi %c0_i32_112, %267 : i32
        %269 = arith.index_cast %268 : i32 to index
        %270 = memref.load %arg1[%269] : memref<1408xi32, #tpu.memory_space<smem>>
        %c0_i32_113 = arith.constant 0 : i32
        %271 = arith.addi %c0_i32_113, %267 : i32
        %c0_i32_114 = arith.constant 0 : i32
        %c0_i32_115 = arith.constant 0 : i32
        %272 = tpu.memref_slice %arg4[%270, %c0_i32_115] : memref<50x32xf32, #tpu.memory_space<any>> -> memref<1x32xf32, #tpu.memory_space<any>>
        %c0_i32_116 = arith.constant 0 : i32
        %273 = tpu.memref_slice %arg6[%271, %c0_i32_116] : memref<1408x32xf32, #tpu.memory_space<vmem>> -> memref<1x32xf32, #tpu.memory_space<vmem>>
        %274 = tpu.memref_slice %arg7[%c0_i32_114] : memref<2x!tpu.dma_semaphore, #tpu.memory_space<semaphore_mem>> -> memref<1x!tpu.dma_semaphore, #tpu.memory_space<semaphore_mem>>
        %275 = tpu.memref_squeeze %274 : memref<1x!tpu.dma_semaphore, #tpu.memory_space<semaphore_mem>> -> memref<!tpu.dma_semaphore, #tpu.memory_space<semaphore_mem>>
        tpu.enqueue_dma source(%272 : memref<1x32xf32, #tpu.memory_space<any>>) target(%273 : memref<1x32xf32, #tpu.memory_space<vmem>>) target_semaphore(%275 : memref<!tpu.dma_semaphore, #tpu.memory_space<semaphore_mem>>)
        %c3_i32_117 = arith.constant 3 : i32
        %276 = arith.addi %248, %c3_i32_117 : i32
        %c0_i32_118 = arith.constant 0 : i32
        %277 = arith.addi %c0_i32_118, %276 : i32
        %278 = arith.index_cast %277 : i32 to index
        %279 = memref.load %arg1[%278] : memref<1408xi32, #tpu.memory_space<smem>>
        %c0_i32_119 = arith.constant 0 : i32
        %280 = arith.addi %c0_i32_119, %276 : i32
        %c0_i32_120 = arith.constant 0 : i32
        %c0_i32_121 = arith.constant 0 : i32
        %281 = tpu.memref_slice %arg4[%279, %c0_i32_121] : memref<50x32xf32, #tpu.memory_space<any>> -> memref<1x32xf32, #tpu.memory_space<any>>
        %c0_i32_122 = arith.constant 0 : i32
        %282 = tpu.memref_slice %arg6[%280, %c0_i32_122] : memref<1408x32xf32, #tpu.memory_space<vmem>> -> memref<1x32xf32, #tpu.memory_space<vmem>>
        %283 = tpu.memref_slice %arg7[%c0_i32_120] : memref<2x!tpu.dma_semaphore, #tpu.memory_space<semaphore_mem>> -> memref<1x!tpu.dma_semaphore, #tpu.memory_space<semaphore_mem>>
        %284 = tpu.memref_squeeze %283 : memref<1x!tpu.dma_semaphore, #tpu.memory_space<semaphore_mem>> -> memref<!tpu.dma_semaphore, #tpu.memory_space<semaphore_mem>>
        tpu.enqueue_dma source(%281 : memref<1x32xf32, #tpu.memory_space<any>>) target(%282 : memref<1x32xf32, #tpu.memory_space<vmem>>) target_semaphore(%284 : memref<!tpu.dma_semaphore, #tpu.memory_space<semaphore_mem>>)
        %c4_i32_123 = arith.constant 4 : i32
        %285 = arith.addi %248, %c4_i32_123 : i32
        %c0_i32_124 = arith.constant 0 : i32
        %286 = arith.addi %c0_i32_124, %285 : i32
        %287 = arith.index_cast %286 : i32 to index
        %288 = memref.load %arg1[%287] : memref<1408xi32, #tpu.memory_space<smem>>
        %c0_i32_125 = arith.constant 0 : i32
        %289 = arith.addi %c0_i32_125, %285 : i32
        %c0_i32_126 = arith.constant 0 : i32
        %c0_i32_127 = arith.constant 0 : i32
        %290 = tpu.memref_slice %arg4[%288, %c0_i32_127] : memref<50x32xf32, #tpu.memory_space<any>> -> memref<1x32xf32, #tpu.memory_space<any>>
        %c0_i32_128 = arith.constant 0 : i32
        %291 = tpu.memref_slice %arg6[%289, %c0_i32_128] : memref<1408x32xf32, #tpu.memory_space<vmem>> -> memref<1x32xf32, #tpu.memory_space<vmem>>
        %292 = tpu.memref_slice %arg7[%c0_i32_126] : memref<2x!tpu.dma_semaphore, #tpu.memory_space<semaphore_mem>> -> memref<1x!tpu.dma_semaphore, #tpu.memory_space<semaphore_mem>>
        %293 = tpu.memref_squeeze %292 : memref<1x!tpu.dma_semaphore, #tpu.memory_space<semaphore_mem>> -> memref<!tpu.dma_semaphore, #tpu.memory_space<semaphore_mem>>
        tpu.enqueue_dma source(%290 : memref<1x32xf32, #tpu.memory_space<any>>) target(%291 : memref<1x32xf32, #tpu.memory_space<vmem>>) target_semaphore(%293 : memref<!tpu.dma_semaphore, #tpu.memory_space<semaphore_mem>>)
        %c5_i32_129 = arith.constant 5 : i32
        %294 = arith.addi %248, %c5_i32_129 : i32
        %c0_i32_130 = arith.constant 0 : i32
        %295 = arith.addi %c0_i32_130, %294 : i32
        %296 = arith.index_cast %295 : i32 to index
        %297 = memref.load %arg1[%296] : memref<1408xi32, #tpu.memory_space<smem>>
        %c0_i32_131 = arith.constant 0 : i32
        %298 = arith.addi %c0_i32_131, %294 : i32
        %c0_i32_132 = arith.constant 0 : i32
        %c0_i32_133 = arith.constant 0 : i32
        %299 = tpu.memref_slice %arg4[%297, %c0_i32_133] : memref<50x32xf32, #tpu.memory_space<any>> -> memref<1x32xf32, #tpu.memory_space<any>>
        %c0_i32_134 = arith.constant 0 : i32
        %300 = tpu.memref_slice %arg6[%298, %c0_i32_134] : memref<1408x32xf32, #tpu.memory_space<vmem>> -> memref<1x32xf32, #tpu.memory_space<vmem>>
        %301 = tpu.memref_slice %arg7[%c0_i32_132] : memref<2x!tpu.dma_semaphore, #tpu.memory_space<semaphore_mem>> -> memref<1x!tpu.dma_semaphore, #tpu.memory_space<semaphore_mem>>
        %302 = tpu.memref_squeeze %301 : memref<1x!tpu.dma_semaphore, #tpu.memory_space<semaphore_mem>> -> memref<!tpu.dma_semaphore, #tpu.memory_space<semaphore_mem>>
        tpu.enqueue_dma source(%299 : memref<1x32xf32, #tpu.memory_space<any>>) target(%300 : memref<1x32xf32, #tpu.memory_space<vmem>>) target_semaphore(%302 : memref<!tpu.dma_semaphore, #tpu.memory_space<semaphore_mem>>)
        %c6_i32_135 = arith.constant 6 : i32
        %303 = arith.addi %248, %c6_i32_135 : i32
        %c0_i32_136 = arith.constant 0 : i32
        %304 = arith.addi %c0_i32_136, %303 : i32
        %305 = arith.index_cast %304 : i32 to index
        %306 = memref.load %arg1[%305] : memref<1408xi32, #tpu.memory_space<smem>>
        %c0_i32_137 = arith.constant 0 : i32
        %307 = arith.addi %c0_i32_137, %303 : i32
        %c0_i32_138 = arith.constant 0 : i32
        %c0_i32_139 = arith.constant 0 : i32
        %308 = tpu.memref_slice %arg4[%306, %c0_i32_139] : memref<50x32xf32, #tpu.memory_space<any>> -> memref<1x32xf32, #tpu.memory_space<any>>
        %c0_i32_140 = arith.constant 0 : i32
        %309 = tpu.memref_slice %arg6[%307, %c0_i32_140] : memref<1408x32xf32, #tpu.memory_space<vmem>> -> memref<1x32xf32, #tpu.memory_space<vmem>>
        %310 = tpu.memref_slice %arg7[%c0_i32_138] : memref<2x!tpu.dma_semaphore, #tpu.memory_space<semaphore_mem>> -> memref<1x!tpu.dma_semaphore, #tpu.memory_space<semaphore_mem>>
        %311 = tpu.memref_squeeze %310 : memref<1x!tpu.dma_semaphore, #tpu.memory_space<semaphore_mem>> -> memref<!tpu.dma_semaphore, #tpu.memory_space<semaphore_mem>>
        tpu.enqueue_dma source(%308 : memref<1x32xf32, #tpu.memory_space<any>>) target(%309 : memref<1x32xf32, #tpu.memory_space<vmem>>) target_semaphore(%311 : memref<!tpu.dma_semaphore, #tpu.memory_space<semaphore_mem>>)
        %c7_i32_141 = arith.constant 7 : i32
        %312 = arith.addi %248, %c7_i32_141 : i32
        %c0_i32_142 = arith.constant 0 : i32
        %313 = arith.addi %c0_i32_142, %312 : i32
        %314 = arith.index_cast %313 : i32 to index
        %315 = memref.load %arg1[%314] : memref<1408xi32, #tpu.memory_space<smem>>
        %c0_i32_143 = arith.constant 0 : i32
        %316 = arith.addi %c0_i32_143, %312 : i32
        %c0_i32_144 = arith.constant 0 : i32
        %c0_i32_145 = arith.constant 0 : i32
        %317 = tpu.memref_slice %arg4[%315, %c0_i32_145] : memref<50x32xf32, #tpu.memory_space<any>> -> memref<1x32xf32, #tpu.memory_space<any>>
        %c0_i32_146 = arith.constant 0 : i32
        %318 = tpu.memref_slice %arg6[%316, %c0_i32_146] : memref<1408x32xf32, #tpu.memory_space<vmem>> -> memref<1x32xf32, #tpu.memory_space<vmem>>
        %319 = tpu.memref_slice %arg7[%c0_i32_144] : memref<2x!tpu.dma_semaphore, #tpu.memory_space<semaphore_mem>> -> memref<1x!tpu.dma_semaphore, #tpu.memory_space<semaphore_mem>>
        %320 = tpu.memref_squeeze %319 : memref<1x!tpu.dma_semaphore, #tpu.memory_space<semaphore_mem>> -> memref<!tpu.dma_semaphore, #tpu.memory_space<semaphore_mem>>
        tpu.enqueue_dma source(%317 : memref<1x32xf32, #tpu.memory_space<any>>) target(%318 : memref<1x32xf32, #tpu.memory_space<vmem>>) target_semaphore(%320 : memref<!tpu.dma_semaphore, #tpu.memory_space<semaphore_mem>>)
      }
      %c88_i32_95 = arith.constant 88 : i32
    } else {
    }
    %c1_i32_5 = arith.constant 1 : i32
    %13 = arith.addi %arg0, %c1_i32_5 : i32
    %c2_i32_6 = arith.constant 2 : i32
    %14 = arith.cmpi slt, %13, %c2_i32_6 : i32
    %15 = arith.extui %14 : i1 to i32
    %c0_i32_7 = arith.constant 0 : i32
    %16 = arith.cmpi ne, %15, %c0_i32_7 : i32
    scf.if %16 {
      %c1_i32_93 = arith.constant 1 : i32
      %244 = arith.addi %arg0, %c1_i32_93 : i32
      %c1_i32_94 = arith.constant 1 : i32
      %245 = arith.subi %c1_i32_94, %9 : i32
      %c704_i32_95 = arith.constant 704 : i32
      %246 = arith.muli %244, %c704_i32_95 : i32
      %c704_i32_96 = arith.constant 704 : i32
      %247 = arith.muli %245, %c704_i32_96 : i32
      %c0_i32_97 = arith.constant 0 : i32
      %c88_i32 = arith.constant 88 : i32
      %248 = arith.addi %c0_i32_97, %c88_i32 : i32
      %c1_i32_98 = arith.constant 1 : i32
      scf.for %arg8 = %c0_i32_97 to %248 step %c1_i32_98  : i32 {
        %c1_i32_100 = arith.constant 1 : i32
        %249 = arith.muli %arg8, %c1_i32_100 : i32
        %c0_i32_101 = arith.constant 0 : i32
        %250 = arith.addi %c0_i32_101, %249 : i32
        %c8_i32_102 = arith.constant 8 : i32
        %251 = arith.muli %250, %c8_i32_102 : i32
        %252 = tpu.assume_multiple %251, 8 : i32
        %c0_i32_103 = arith.constant 0 : i32
        %253 = arith.addi %252, %c0_i32_103 : i32
        %254 = arith.addi %246, %253 : i32
        %255 = arith.index_cast %254 : i32 to index
        %256 = memref.load %arg1[%255] : memref<1408xi32, #tpu.memory_space<smem>>
        %257 = arith.addi %247, %253 : i32
        %c0_i32_104 = arith.constant 0 : i32
        %258 = tpu.memref_slice %arg4[%256, %c0_i32_104] : memref<50x32xf32, #tpu.memory_space<any>> -> memref<1x32xf32, #tpu.memory_space<any>>
        %c0_i32_105 = arith.constant 0 : i32
        %259 = tpu.memref_slice %arg6[%257, %c0_i32_105] : memref<1408x32xf32, #tpu.memory_space<vmem>> -> memref<1x32xf32, #tpu.memory_space<vmem>>
        %260 = tpu.memref_slice %arg7[%245] : memref<2x!tpu.dma_semaphore, #tpu.memory_space<semaphore_mem>> -> memref<1x!tpu.dma_semaphore, #tpu.memory_space<semaphore_mem>>
        %261 = tpu.memref_squeeze %260 : memref<1x!tpu.dma_semaphore, #tpu.memory_space<semaphore_mem>> -> memref<!tpu.dma_semaphore, #tpu.memory_space<semaphore_mem>>
        tpu.enqueue_dma source(%258 : memref<1x32xf32, #tpu.memory_space<any>>) target(%259 : memref<1x32xf32, #tpu.memory_space<vmem>>) target_semaphore(%261 : memref<!tpu.dma_semaphore, #tpu.memory_space<semaphore_mem>>)
        %c1_i32_106 = arith.constant 1 : i32
        %262 = arith.addi %252, %c1_i32_106 : i32
        %263 = arith.addi %246, %262 : i32
        %264 = arith.index_cast %263 : i32 to index
        %265 = memref.load %arg1[%264] : memref<1408xi32, #tpu.memory_space<smem>>
        %266 = arith.addi %247, %262 : i32
        %c0_i32_107 = arith.constant 0 : i32
        %267 = tpu.memref_slice %arg4[%265, %c0_i32_107] : memref<50x32xf32, #tpu.memory_space<any>> -> memref<1x32xf32, #tpu.memory_space<any>>
        %c0_i32_108 = arith.constant 0 : i32
        %268 = tpu.memref_slice %arg6[%266, %c0_i32_108] : memref<1408x32xf32, #tpu.memory_space<vmem>> -> memref<1x32xf32, #tpu.memory_space<vmem>>
        %269 = tpu.memref_slice %arg7[%245] : memref<2x!tpu.dma_semaphore, #tpu.memory_space<semaphore_mem>> -> memref<1x!tpu.dma_semaphore, #tpu.memory_space<semaphore_mem>>
        %270 = tpu.memref_squeeze %269 : memref<1x!tpu.dma_semaphore, #tpu.memory_space<semaphore_mem>> -> memref<!tpu.dma_semaphore, #tpu.memory_space<semaphore_mem>>
        tpu.enqueue_dma source(%267 : memref<1x32xf32, #tpu.memory_space<any>>) target(%268 : memref<1x32xf32, #tpu.memory_space<vmem>>) target_semaphore(%270 : memref<!tpu.dma_semaphore, #tpu.memory_space<semaphore_mem>>)
        %c2_i32_109 = arith.constant 2 : i32
        %271 = arith.addi %252, %c2_i32_109 : i32
        %272 = arith.addi %246, %271 : i32
        %273 = arith.index_cast %272 : i32 to index
        %274 = memref.load %arg1[%273] : memref<1408xi32, #tpu.memory_space<smem>>
        %275 = arith.addi %247, %271 : i32
        %c0_i32_110 = arith.constant 0 : i32
        %276 = tpu.memref_slice %arg4[%274, %c0_i32_110] : memref<50x32xf32, #tpu.memory_space<any>> -> memref<1x32xf32, #tpu.memory_space<any>>
        %c0_i32_111 = arith.constant 0 : i32
        %277 = tpu.memref_slice %arg6[%275, %c0_i32_111] : memref<1408x32xf32, #tpu.memory_space<vmem>> -> memref<1x32xf32, #tpu.memory_space<vmem>>
        %278 = tpu.memref_slice %arg7[%245] : memref<2x!tpu.dma_semaphore, #tpu.memory_space<semaphore_mem>> -> memref<1x!tpu.dma_semaphore, #tpu.memory_space<semaphore_mem>>
        %279 = tpu.memref_squeeze %278 : memref<1x!tpu.dma_semaphore, #tpu.memory_space<semaphore_mem>> -> memref<!tpu.dma_semaphore, #tpu.memory_space<semaphore_mem>>
        tpu.enqueue_dma source(%276 : memref<1x32xf32, #tpu.memory_space<any>>) target(%277 : memref<1x32xf32, #tpu.memory_space<vmem>>) target_semaphore(%279 : memref<!tpu.dma_semaphore, #tpu.memory_space<semaphore_mem>>)
        %c3_i32_112 = arith.constant 3 : i32
        %280 = arith.addi %252, %c3_i32_112 : i32
        %281 = arith.addi %246, %280 : i32
        %282 = arith.index_cast %281 : i32 to index
        %283 = memref.load %arg1[%282] : memref<1408xi32, #tpu.memory_space<smem>>
        %284 = arith.addi %247, %280 : i32
        %c0_i32_113 = arith.constant 0 : i32
        %285 = tpu.memref_slice %arg4[%283, %c0_i32_113] : memref<50x32xf32, #tpu.memory_space<any>> -> memref<1x32xf32, #tpu.memory_space<any>>
        %c0_i32_114 = arith.constant 0 : i32
        %286 = tpu.memref_slice %arg6[%284, %c0_i32_114] : memref<1408x32xf32, #tpu.memory_space<vmem>> -> memref<1x32xf32, #tpu.memory_space<vmem>>
        %287 = tpu.memref_slice %arg7[%245] : memref<2x!tpu.dma_semaphore, #tpu.memory_space<semaphore_mem>> -> memref<1x!tpu.dma_semaphore, #tpu.memory_space<semaphore_mem>>
        %288 = tpu.memref_squeeze %287 : memref<1x!tpu.dma_semaphore, #tpu.memory_space<semaphore_mem>> -> memref<!tpu.dma_semaphore, #tpu.memory_space<semaphore_mem>>
        tpu.enqueue_dma source(%285 : memref<1x32xf32, #tpu.memory_space<any>>) target(%286 : memref<1x32xf32, #tpu.memory_space<vmem>>) target_semaphore(%288 : memref<!tpu.dma_semaphore, #tpu.memory_space<semaphore_mem>>)
        %c4_i32_115 = arith.constant 4 : i32
        %289 = arith.addi %252, %c4_i32_115 : i32
        %290 = arith.addi %246, %289 : i32
        %291 = arith.index_cast %290 : i32 to index
        %292 = memref.load %arg1[%291] : memref<1408xi32, #tpu.memory_space<smem>>
        %293 = arith.addi %247, %289 : i32
        %c0_i32_116 = arith.constant 0 : i32
        %294 = tpu.memref_slice %arg4[%292, %c0_i32_116] : memref<50x32xf32, #tpu.memory_space<any>> -> memref<1x32xf32, #tpu.memory_space<any>>
        %c0_i32_117 = arith.constant 0 : i32
        %295 = tpu.memref_slice %arg6[%293, %c0_i32_117] : memref<1408x32xf32, #tpu.memory_space<vmem>> -> memref<1x32xf32, #tpu.memory_space<vmem>>
        %296 = tpu.memref_slice %arg7[%245] : memref<2x!tpu.dma_semaphore, #tpu.memory_space<semaphore_mem>> -> memref<1x!tpu.dma_semaphore, #tpu.memory_space<semaphore_mem>>
        %297 = tpu.memref_squeeze %296 : memref<1x!tpu.dma_semaphore, #tpu.memory_space<semaphore_mem>> -> memref<!tpu.dma_semaphore, #tpu.memory_space<semaphore_mem>>
        tpu.enqueue_dma source(%294 : memref<1x32xf32, #tpu.memory_space<any>>) target(%295 : memref<1x32xf32, #tpu.memory_space<vmem>>) target_semaphore(%297 : memref<!tpu.dma_semaphore, #tpu.memory_space<semaphore_mem>>)
        %c5_i32_118 = arith.constant 5 : i32
        %298 = arith.addi %252, %c5_i32_118 : i32
        %299 = arith.addi %246, %298 : i32
        %300 = arith.index_cast %299 : i32 to index
        %301 = memref.load %arg1[%300] : memref<1408xi32, #tpu.memory_space<smem>>
        %302 = arith.addi %247, %298 : i32
        %c0_i32_119 = arith.constant 0 : i32
        %303 = tpu.memref_slice %arg4[%301, %c0_i32_119] : memref<50x32xf32, #tpu.memory_space<any>> -> memref<1x32xf32, #tpu.memory_space<any>>
        %c0_i32_120 = arith.constant 0 : i32
        %304 = tpu.memref_slice %arg6[%302, %c0_i32_120] : memref<1408x32xf32, #tpu.memory_space<vmem>> -> memref<1x32xf32, #tpu.memory_space<vmem>>
        %305 = tpu.memref_slice %arg7[%245] : memref<2x!tpu.dma_semaphore, #tpu.memory_space<semaphore_mem>> -> memref<1x!tpu.dma_semaphore, #tpu.memory_space<semaphore_mem>>
        %306 = tpu.memref_squeeze %305 : memref<1x!tpu.dma_semaphore, #tpu.memory_space<semaphore_mem>> -> memref<!tpu.dma_semaphore, #tpu.memory_space<semaphore_mem>>
        tpu.enqueue_dma source(%303 : memref<1x32xf32, #tpu.memory_space<any>>) target(%304 : memref<1x32xf32, #tpu.memory_space<vmem>>) target_semaphore(%306 : memref<!tpu.dma_semaphore, #tpu.memory_space<semaphore_mem>>)
        %c6_i32_121 = arith.constant 6 : i32
        %307 = arith.addi %252, %c6_i32_121 : i32
        %308 = arith.addi %246, %307 : i32
        %309 = arith.index_cast %308 : i32 to index
        %310 = memref.load %arg1[%309] : memref<1408xi32, #tpu.memory_space<smem>>
        %311 = arith.addi %247, %307 : i32
        %c0_i32_122 = arith.constant 0 : i32
        %312 = tpu.memref_slice %arg4[%310, %c0_i32_122] : memref<50x32xf32, #tpu.memory_space<any>> -> memref<1x32xf32, #tpu.memory_space<any>>
        %c0_i32_123 = arith.constant 0 : i32
        %313 = tpu.memref_slice %arg6[%311, %c0_i32_123] : memref<1408x32xf32, #tpu.memory_space<vmem>> -> memref<1x32xf32, #tpu.memory_space<vmem>>
        %314 = tpu.memref_slice %arg7[%245] : memref<2x!tpu.dma_semaphore, #tpu.memory_space<semaphore_mem>> -> memref<1x!tpu.dma_semaphore, #tpu.memory_space<semaphore_mem>>
        %315 = tpu.memref_squeeze %314 : memref<1x!tpu.dma_semaphore, #tpu.memory_space<semaphore_mem>> -> memref<!tpu.dma_semaphore, #tpu.memory_space<semaphore_mem>>
        tpu.enqueue_dma source(%312 : memref<1x32xf32, #tpu.memory_space<any>>) target(%313 : memref<1x32xf32, #tpu.memory_space<vmem>>) target_semaphore(%315 : memref<!tpu.dma_semaphore, #tpu.memory_space<semaphore_mem>>)
        %c7_i32_124 = arith.constant 7 : i32
        %316 = arith.addi %252, %c7_i32_124 : i32
        %317 = arith.addi %246, %316 : i32
        %318 = arith.index_cast %317 : i32 to index
        %319 = memref.load %arg1[%318] : memref<1408xi32, #tpu.memory_space<smem>>
        %320 = arith.addi %247, %316 : i32
        %c0_i32_125 = arith.constant 0 : i32
        %321 = tpu.memref_slice %arg4[%319, %c0_i32_125] : memref<50x32xf32, #tpu.memory_space<any>> -> memref<1x32xf32, #tpu.memory_space<any>>
        %c0_i32_126 = arith.constant 0 : i32
        %322 = tpu.memref_slice %arg6[%320, %c0_i32_126] : memref<1408x32xf32, #tpu.memory_space<vmem>> -> memref<1x32xf32, #tpu.memory_space<vmem>>
        %323 = tpu.memref_slice %arg7[%245] : memref<2x!tpu.dma_semaphore, #tpu.memory_space<semaphore_mem>> -> memref<1x!tpu.dma_semaphore, #tpu.memory_space<semaphore_mem>>
        %324 = tpu.memref_squeeze %323 : memref<1x!tpu.dma_semaphore, #tpu.memory_space<semaphore_mem>> -> memref<!tpu.dma_semaphore, #tpu.memory_space<semaphore_mem>>
        tpu.enqueue_dma source(%321 : memref<1x32xf32, #tpu.memory_space<any>>) target(%322 : memref<1x32xf32, #tpu.memory_space<vmem>>) target_semaphore(%324 : memref<!tpu.dma_semaphore, #tpu.memory_space<semaphore_mem>>)
      }
      %c88_i32_99 = arith.constant 88 : i32
    } else {
    }
    %c704_i32 = arith.constant 704 : i32
    %17 = arith.muli %9, %c704_i32 : i32
    %18 = tpu.assume_multiple %17, 8 : i32
    %c0_i32_8 = arith.constant 0 : i32
    %19 = tpu.memref_slice %arg6[%18, %c0_i32_8] : memref<1408x32xf32, #tpu.memory_space<vmem>> -> memref<704x32xf32, #tpu.memory_space<vmem>>
    %c0_i32_9 = arith.constant 0 : i32
    %20 = tpu.memref_slice %arg6[%18, %c0_i32_9] : memref<1408x32xf32, #tpu.memory_space<vmem>> -> memref<704x32xf32, #tpu.memory_space<vmem>>
    %21 = tpu.memref_slice %arg7[%9] : memref<2x!tpu.dma_semaphore, #tpu.memory_space<semaphore_mem>> -> memref<1x!tpu.dma_semaphore, #tpu.memory_space<semaphore_mem>>
    %22 = tpu.memref_squeeze %21 : memref<1x!tpu.dma_semaphore, #tpu.memory_space<semaphore_mem>> -> memref<!tpu.dma_semaphore, #tpu.memory_space<semaphore_mem>>
    tpu.wait_dma2 semaphore(%22 : memref<!tpu.dma_semaphore, #tpu.memory_space<semaphore_mem>>) src(%19 : memref<704x32xf32, #tpu.memory_space<vmem>>) dst(%20 : memref<704x32xf32, #tpu.memory_space<vmem>>)
    %c0 = arith.constant 0 : index
    %c0_10 = arith.constant 0 : index
    %23 = vector.load %arg2[%c0, %c0_10] : memref<64x32xf32, #tpu.memory_space<vmem>>, vector<64x32xf32>
    %c0_11 = arith.constant 0 : index
    %c0_12 = arith.constant 0 : index
    %c0_13 = arith.constant 0 : index
    %24 = vector.load %arg3[%c0_11, %c0_12, %c0_13] : memref<1x11x64xf32, #tpu.memory_space<vmem>>, vector<1x1x64xf32>
    %25 = vector.shape_cast %24 : vector<1x1x64xf32> to vector<64xf32>
    %c0_i32_14 = arith.constant 0 : i32
    %26 = arith.addi %18, %c0_i32_14 : i32
    %27 = tpu.assume_multiple %26, 8 : i32
    %28 = arith.index_cast %27 : i32 to index
    %c0_15 = arith.constant 0 : index
    %29 = vector.load %arg6[%28, %c0_15] : memref<1408x32xf32, #tpu.memory_space<vmem>>, vector<64x32xf32>
    %30 = arith.mulf %23, %29 : vector<64x32xf32>
    %cst = arith.constant dense<0.000000e+00> : vector<64xf32>
    %31 = vector.multi_reduction <add>, %30, %cst [1] : vector<64x32xf32> to vector<64xf32>
    %32 = arith.subf %25, %31 : vector<64xf32>
    %cst_16 = arith.constant 0.000000e+00 : f32
    %33 = vector.broadcast %cst_16 : f32 to vector<64xf32>
    %34 = arith.maximumf %32, %33 : vector<64xf32>
    %35 = math.absf %32 : vector<64xf32>
    %cst_17 = arith.constant 0.000000e+00 : f32
    %36 = vector.broadcast %cst_17 : f32 to vector<64xf32>
    %37 = arith.subf %36, %35 : vector<64xf32>
    %38 = math.exp %37 : vector<64xf32>
    %39 = math.log1p %38 : vector<64xf32>
    %40 = arith.addf %34, %39 : vector<64xf32>
    %c1_i32_18 = arith.constant 1 : i32
    %c64_i32 = arith.constant 64 : i32
    %41 = arith.muli %c1_i32_18, %c64_i32 : i32
    %42 = arith.addi %18, %41 : i32
    %43 = tpu.assume_multiple %42, 8 : i32
    %44 = arith.index_cast %43 : i32 to index
    %c0_19 = arith.constant 0 : index
    %45 = vector.load %arg6[%44, %c0_19] : memref<1408x32xf32, #tpu.memory_space<vmem>>, vector<64x32xf32>
    %46 = arith.mulf %23, %45 : vector<64x32xf32>
    %cst_20 = arith.constant dense<0.000000e+00> : vector<64xf32>
    %47 = vector.multi_reduction <add>, %46, %cst_20 [1] : vector<64x32xf32> to vector<64xf32>
    %c0_21 = arith.constant 0 : index
    %48 = arith.index_cast %c1_i32_18 : i32 to index
    %c0_22 = arith.constant 0 : index
    %49 = vector.load %arg3[%c0_21, %48, %c0_22] : memref<1x11x64xf32, #tpu.memory_space<vmem>>, vector<1x1x64xf32>
    %50 = vector.shape_cast %49 : vector<1x1x64xf32> to vector<64xf32>
    %51 = arith.subf %47, %50 : vector<64xf32>
    %cst_23 = arith.constant 0.000000e+00 : f32
    %52 = vector.broadcast %cst_23 : f32 to vector<64xf32>
    %53 = arith.maximumf %51, %52 : vector<64xf32>
    %54 = math.absf %51 : vector<64xf32>
    %cst_24 = arith.constant 0.000000e+00 : f32
    %55 = vector.broadcast %cst_24 : f32 to vector<64xf32>
    %56 = arith.subf %55, %54 : vector<64xf32>
    %57 = math.exp %56 : vector<64xf32>
    %58 = math.log1p %57 : vector<64xf32>
    %59 = arith.addf %53, %58 : vector<64xf32>
    %60 = arith.addf %40, %59 : vector<64xf32>
    %c2_i32_25 = arith.constant 2 : i32
    %c64_i32_26 = arith.constant 64 : i32
    %61 = arith.muli %c2_i32_25, %c64_i32_26 : i32
    %62 = arith.addi %18, %61 : i32
    %63 = tpu.assume_multiple %62, 8 : i32
    %64 = arith.index_cast %63 : i32 to index
    %c0_27 = arith.constant 0 : index
    %65 = vector.load %arg6[%64, %c0_27] : memref<1408x32xf32, #tpu.memory_space<vmem>>, vector<64x32xf32>
    %66 = arith.mulf %23, %65 : vector<64x32xf32>
    %cst_28 = arith.constant dense<0.000000e+00> : vector<64xf32>
    %67 = vector.multi_reduction <add>, %66, %cst_28 [1] : vector<64x32xf32> to vector<64xf32>
    %c0_29 = arith.constant 0 : index
    %68 = arith.index_cast %c2_i32_25 : i32 to index
    %c0_30 = arith.constant 0 : index
    %69 = vector.load %arg3[%c0_29, %68, %c0_30] : memref<1x11x64xf32, #tpu.memory_space<vmem>>, vector<1x1x64xf32>
    %70 = vector.shape_cast %69 : vector<1x1x64xf32> to vector<64xf32>
    %71 = arith.subf %67, %70 : vector<64xf32>
    %cst_31 = arith.constant 0.000000e+00 : f32
    %72 = vector.broadcast %cst_31 : f32 to vector<64xf32>
    %73 = arith.maximumf %71, %72 : vector<64xf32>
    %74 = math.absf %71 : vector<64xf32>
    %cst_32 = arith.constant 0.000000e+00 : f32
    %75 = vector.broadcast %cst_32 : f32 to vector<64xf32>
    %76 = arith.subf %75, %74 : vector<64xf32>
    %77 = math.exp %76 : vector<64xf32>
    %78 = math.log1p %77 : vector<64xf32>
    %79 = arith.addf %73, %78 : vector<64xf32>
    %80 = arith.addf %60, %79 : vector<64xf32>
    %c3_i32 = arith.constant 3 : i32
    %c64_i32_33 = arith.constant 64 : i32
    %81 = arith.muli %c3_i32, %c64_i32_33 : i32
    %82 = arith.addi %18, %81 : i32
    %83 = tpu.assume_multiple %82, 8 : i32
    %84 = arith.index_cast %83 : i32 to index
    %c0_34 = arith.constant 0 : index
    %85 = vector.load %arg6[%84, %c0_34] : memref<1408x32xf32, #tpu.memory_space<vmem>>, vector<64x32xf32>
    %86 = arith.mulf %23, %85 : vector<64x32xf32>
    %cst_35 = arith.constant dense<0.000000e+00> : vector<64xf32>
    %87 = vector.multi_reduction <add>, %86, %cst_35 [1] : vector<64x32xf32> to vector<64xf32>
    %c0_36 = arith.constant 0 : index
    %88 = arith.index_cast %c3_i32 : i32 to index
    %c0_37 = arith.constant 0 : index
    %89 = vector.load %arg3[%c0_36, %88, %c0_37] : memref<1x11x64xf32, #tpu.memory_space<vmem>>, vector<1x1x64xf32>
    %90 = vector.shape_cast %89 : vector<1x1x64xf32> to vector<64xf32>
    %91 = arith.subf %87, %90 : vector<64xf32>
    %cst_38 = arith.constant 0.000000e+00 : f32
    %92 = vector.broadcast %cst_38 : f32 to vector<64xf32>
    %93 = arith.maximumf %91, %92 : vector<64xf32>
    %94 = math.absf %91 : vector<64xf32>
    %cst_39 = arith.constant 0.000000e+00 : f32
    %95 = vector.broadcast %cst_39 : f32 to vector<64xf32>
    %96 = arith.subf %95, %94 : vector<64xf32>
    %97 = math.exp %96 : vector<64xf32>
    %98 = math.log1p %97 : vector<64xf32>
    %99 = arith.addf %93, %98 : vector<64xf32>
    %100 = arith.addf %80, %99 : vector<64xf32>
    %c4_i32 = arith.constant 4 : i32
    %c64_i32_40 = arith.constant 64 : i32
    %101 = arith.muli %c4_i32, %c64_i32_40 : i32
    %102 = arith.addi %18, %101 : i32
    %103 = tpu.assume_multiple %102, 8 : i32
    %104 = arith.index_cast %103 : i32 to index
    %c0_41 = arith.constant 0 : index
    %105 = vector.load %arg6[%104, %c0_41] : memref<1408x32xf32, #tpu.memory_space<vmem>>, vector<64x32xf32>
    %106 = arith.mulf %23, %105 : vector<64x32xf32>
    %cst_42 = arith.constant dense<0.000000e+00> : vector<64xf32>
    %107 = vector.multi_reduction <add>, %106, %cst_42 [1] : vector<64x32xf32> to vector<64xf32>
    %c0_43 = arith.constant 0 : index
    %108 = arith.index_cast %c4_i32 : i32 to index
    %c0_44 = arith.constant 0 : index
    %109 = vector.load %arg3[%c0_43, %108, %c0_44] : memref<1x11x64xf32, #tpu.memory_space<vmem>>, vector<1x1x64xf32>
    %110 = vector.shape_cast %109 : vector<1x1x64xf32> to vector<64xf32>
    %111 = arith.subf %107, %110 : vector<64xf32>
    %cst_45 = arith.constant 0.000000e+00 : f32
    %112 = vector.broadcast %cst_45 : f32 to vector<64xf32>
    %113 = arith.maximumf %111, %112 : vector<64xf32>
    %114 = math.absf %111 : vector<64xf32>
    %cst_46 = arith.constant 0.000000e+00 : f32
    %115 = vector.broadcast %cst_46 : f32 to vector<64xf32>
    %116 = arith.subf %115, %114 : vector<64xf32>
    %117 = math.exp %116 : vector<64xf32>
    %118 = math.log1p %117 : vector<64xf32>
    %119 = arith.addf %113, %118 : vector<64xf32>
    %120 = arith.addf %100, %119 : vector<64xf32>
    %c5_i32 = arith.constant 5 : i32
    %c64_i32_47 = arith.constant 64 : i32
    %121 = arith.muli %c5_i32, %c64_i32_47 : i32
    %122 = arith.addi %18, %121 : i32
    %123 = tpu.assume_multiple %122, 8 : i32
    %124 = arith.index_cast %123 : i32 to index
    %c0_48 = arith.constant 0 : index
    %125 = vector.load %arg6[%124, %c0_48] : memref<1408x32xf32, #tpu.memory_space<vmem>>, vector<64x32xf32>
    %126 = arith.mulf %23, %125 : vector<64x32xf32>
    %cst_49 = arith.constant dense<0.000000e+00> : vector<64xf32>
    %127 = vector.multi_reduction <add>, %126, %cst_49 [1] : vector<64x32xf32> to vector<64xf32>
    %c0_50 = arith.constant 0 : index
    %128 = arith.index_cast %c5_i32 : i32 to index
    %c0_51 = arith.constant 0 : index
    %129 = vector.load %arg3[%c0_50, %128, %c0_51] : memref<1x11x64xf32, #tpu.memory_space<vmem>>, vector<1x1x64xf32>
    %130 = vector.shape_cast %129 : vector<1x1x64xf32> to vector<64xf32>
    %131 = arith.subf %127, %130 : vector<64xf32>
    %cst_52 = arith.constant 0.000000e+00 : f32
    %132 = vector.broadcast %cst_52 : f32 to vector<64xf32>
    %133 = arith.maximumf %131, %132 : vector<64xf32>
    %134 = math.absf %131 : vector<64xf32>
    %cst_53 = arith.constant 0.000000e+00 : f32
    %135 = vector.broadcast %cst_53 : f32 to vector<64xf32>
    %136 = arith.subf %135, %134 : vector<64xf32>
    %137 = math.exp %136 : vector<64xf32>
    %138 = math.log1p %137 : vector<64xf32>
    %139 = arith.addf %133, %138 : vector<64xf32>
    %140 = arith.addf %120, %139 : vector<64xf32>
    %c6_i32 = arith.constant 6 : i32
    %c64_i32_54 = arith.constant 64 : i32
    %141 = arith.muli %c6_i32, %c64_i32_54 : i32
    %142 = arith.addi %18, %141 : i32
    %143 = tpu.assume_multiple %142, 8 : i32
    %144 = arith.index_cast %143 : i32 to index
    %c0_55 = arith.constant 0 : index
    %145 = vector.load %arg6[%144, %c0_55] : memref<1408x32xf32, #tpu.memory_space<vmem>>, vector<64x32xf32>
    %146 = arith.mulf %23, %145 : vector<64x32xf32>
    %cst_56 = arith.constant dense<0.000000e+00> : vector<64xf32>
    %147 = vector.multi_reduction <add>, %146, %cst_56 [1] : vector<64x32xf32> to vector<64xf32>
    %c0_57 = arith.constant 0 : index
    %148 = arith.index_cast %c6_i32 : i32 to index
    %c0_58 = arith.constant 0 : index
    %149 = vector.load %arg3[%c0_57, %148, %c0_58] : memref<1x11x64xf32, #tpu.memory_space<vmem>>, vector<1x1x64xf32>
    %150 = vector.shape_cast %149 : vector<1x1x64xf32> to vector<64xf32>
    %151 = arith.subf %147, %150 : vector<64xf32>
    %cst_59 = arith.constant 0.000000e+00 : f32
    %152 = vector.broadcast %cst_59 : f32 to vector<64xf32>
    %153 = arith.maximumf %151, %152 : vector<64xf32>
    %154 = math.absf %151 : vector<64xf32>
    %cst_60 = arith.constant 0.000000e+00 : f32
    %155 = vector.broadcast %cst_60 : f32 to vector<64xf32>
    %156 = arith.subf %155, %154 : vector<64xf32>
    %157 = math.exp %156 : vector<64xf32>
    %158 = math.log1p %157 : vector<64xf32>
    %159 = arith.addf %153, %158 : vector<64xf32>
    %160 = arith.addf %140, %159 : vector<64xf32>
    %c7_i32 = arith.constant 7 : i32
    %c64_i32_61 = arith.constant 64 : i32
    %161 = arith.muli %c7_i32, %c64_i32_61 : i32
    %162 = arith.addi %18, %161 : i32
    %163 = tpu.assume_multiple %162, 8 : i32
    %164 = arith.index_cast %163 : i32 to index
    %c0_62 = arith.constant 0 : index
    %165 = vector.load %arg6[%164, %c0_62] : memref<1408x32xf32, #tpu.memory_space<vmem>>, vector<64x32xf32>
    %166 = arith.mulf %23, %165 : vector<64x32xf32>
    %cst_63 = arith.constant dense<0.000000e+00> : vector<64xf32>
    %167 = vector.multi_reduction <add>, %166, %cst_63 [1] : vector<64x32xf32> to vector<64xf32>
    %c0_64 = arith.constant 0 : index
    %168 = arith.index_cast %c7_i32 : i32 to index
    %c0_65 = arith.constant 0 : index
    %169 = vector.load %arg3[%c0_64, %168, %c0_65] : memref<1x11x64xf32, #tpu.memory_space<vmem>>, vector<1x1x64xf32>
    %170 = vector.shape_cast %169 : vector<1x1x64xf32> to vector<64xf32>
    %171 = arith.subf %167, %170 : vector<64xf32>
    %cst_66 = arith.constant 0.000000e+00 : f32
    %172 = vector.broadcast %cst_66 : f32 to vector<64xf32>
    %173 = arith.maximumf %171, %172 : vector<64xf32>
    %174 = math.absf %171 : vector<64xf32>
    %cst_67 = arith.constant 0.000000e+00 : f32
    %175 = vector.broadcast %cst_67 : f32 to vector<64xf32>
    %176 = arith.subf %175, %174 : vector<64xf32>
    %177 = math.exp %176 : vector<64xf32>
    %178 = math.log1p %177 : vector<64xf32>
    %179 = arith.addf %173, %178 : vector<64xf32>
    %180 = arith.addf %160, %179 : vector<64xf32>
    %c8_i32 = arith.constant 8 : i32
    %c64_i32_68 = arith.constant 64 : i32
    %181 = arith.muli %c8_i32, %c64_i32_68 : i32
    %182 = arith.addi %18, %181 : i32
    %183 = tpu.assume_multiple %182, 8 : i32
    %184 = arith.index_cast %183 : i32 to index
    %c0_69 = arith.constant 0 : index
    %185 = vector.load %arg6[%184, %c0_69] : memref<1408x32xf32, #tpu.memory_space<vmem>>, vector<64x32xf32>
    %186 = arith.mulf %23, %185 : vector<64x32xf32>
    %cst_70 = arith.constant dense<0.000000e+00> : vector<64xf32>
    %187 = vector.multi_reduction <add>, %186, %cst_70 [1] : vector<64x32xf32> to vector<64xf32>
    %c0_71 = arith.constant 0 : index
    %188 = arith.index_cast %c8_i32 : i32 to index
    %c0_72 = arith.constant 0 : index
    %189 = vector.load %arg3[%c0_71, %188, %c0_72] : memref<1x11x64xf32, #tpu.memory_space<vmem>>, vector<1x1x64xf32>
    %190 = vector.shape_cast %189 : vector<1x1x64xf32> to vector<64xf32>
    %191 = arith.subf %187, %190 : vector<64xf32>
    %cst_73 = arith.constant 0.000000e+00 : f32
    %192 = vector.broadcast %cst_73 : f32 to vector<64xf32>
    %193 = arith.maximumf %191, %192 : vector<64xf32>
    %194 = math.absf %191 : vector<64xf32>
    %cst_74 = arith.constant 0.000000e+00 : f32
    %195 = vector.broadcast %cst_74 : f32 to vector<64xf32>
    %196 = arith.subf %195, %194 : vector<64xf32>
    %197 = math.exp %196 : vector<64xf32>
    %198 = math.log1p %197 : vector<64xf32>
    %199 = arith.addf %193, %198 : vector<64xf32>
    %200 = arith.addf %180, %199 : vector<64xf32>
    %c9_i32 = arith.constant 9 : i32
    %c64_i32_75 = arith.constant 64 : i32
    %201 = arith.muli %c9_i32, %c64_i32_75 : i32
    %202 = arith.addi %18, %201 : i32
    %203 = tpu.assume_multiple %202, 8 : i32
    %204 = arith.index_cast %203 : i32 to index
    %c0_76 = arith.constant 0 : index
    %205 = vector.load %arg6[%204, %c0_76] : memref<1408x32xf32, #tpu.memory_space<vmem>>, vector<64x32xf32>
    %206 = arith.mulf %23, %205 : vector<64x32xf32>
    %cst_77 = arith.constant dense<0.000000e+00> : vector<64xf32>
    %207 = vector.multi_reduction <add>, %206, %cst_77 [1] : vector<64x32xf32> to vector<64xf32>
    %c0_78 = arith.constant 0 : index
    %208 = arith.index_cast %c9_i32 : i32 to index
    %c0_79 = arith.constant 0 : index
    %209 = vector.load %arg3[%c0_78, %208, %c0_79] : memref<1x11x64xf32, #tpu.memory_space<vmem>>, vector<1x1x64xf32>
    %210 = vector.shape_cast %209 : vector<1x1x64xf32> to vector<64xf32>
    %211 = arith.subf %207, %210 : vector<64xf32>
    %cst_80 = arith.constant 0.000000e+00 : f32
    %212 = vector.broadcast %cst_80 : f32 to vector<64xf32>
    %213 = arith.maximumf %211, %212 : vector<64xf32>
    %214 = math.absf %211 : vector<64xf32>
    %cst_81 = arith.constant 0.000000e+00 : f32
    %215 = vector.broadcast %cst_81 : f32 to vector<64xf32>
    %216 = arith.subf %215, %214 : vector<64xf32>
    %217 = math.exp %216 : vector<64xf32>
    %218 = math.log1p %217 : vector<64xf32>
    %219 = arith.addf %213, %218 : vector<64xf32>
    %220 = arith.addf %200, %219 : vector<64xf32>
    %c10_i32 = arith.constant 10 : i32
    %c64_i32_82 = arith.constant 64 : i32
    %221 = arith.muli %c10_i32, %c64_i32_82 : i32
    %222 = arith.addi %18, %221 : i32
    %223 = tpu.assume_multiple %222, 8 : i32
    %224 = arith.index_cast %223 : i32 to index
    %c0_83 = arith.constant 0 : index
    %225 = vector.load %arg6[%224, %c0_83] : memref<1408x32xf32, #tpu.memory_space<vmem>>, vector<64x32xf32>
    %226 = arith.mulf %23, %225 : vector<64x32xf32>
    %cst_84 = arith.constant dense<0.000000e+00> : vector<64xf32>
    %227 = vector.multi_reduction <add>, %226, %cst_84 [1] : vector<64x32xf32> to vector<64xf32>
    %c0_85 = arith.constant 0 : index
    %228 = arith.index_cast %c10_i32 : i32 to index
    %c0_86 = arith.constant 0 : index
    %229 = vector.load %arg3[%c0_85, %228, %c0_86] : memref<1x11x64xf32, #tpu.memory_space<vmem>>, vector<1x1x64xf32>
    %230 = vector.shape_cast %229 : vector<1x1x64xf32> to vector<64xf32>
    %231 = arith.subf %227, %230 : vector<64xf32>
    %cst_87 = arith.constant 0.000000e+00 : f32
    %232 = vector.broadcast %cst_87 : f32 to vector<64xf32>
    %233 = arith.maximumf %231, %232 : vector<64xf32>
    %234 = math.absf %231 : vector<64xf32>
    %cst_88 = arith.constant 0.000000e+00 : f32
    %235 = vector.broadcast %cst_88 : f32 to vector<64xf32>
    %236 = arith.subf %235, %234 : vector<64xf32>
    %237 = math.exp %236 : vector<64xf32>
    %238 = math.log1p %237 : vector<64xf32>
    %239 = arith.addf %233, %238 : vector<64xf32>
    %240 = arith.addf %220, %239 : vector<64xf32>
    %c10_i32_89 = arith.constant 10 : i32
    %c0_90 = arith.constant 0 : index
    %c0_91 = arith.constant 0 : index
    %c0_92 = arith.constant 0 : index
    %241 = vector.load %arg5[%c0_90, %c0_91, %c0_92] : memref<1x1x64xf32, #tpu.memory_space<vmem>>, vector<1x1x64xf32>
    %242 = vector.shape_cast %241 : vector<1x1x64xf32> to vector<64xf32>
    %243 = vector.shape_cast %240 : vector<64xf32> to vector<1x1x64xf32>
    tpu.vector_store %arg5[%c0_90, %c0_91, %c0_92], %243 {strides = array<i32>} : memref<1x1x64xf32, #tpu.memory_space<vmem>>, vector<1x1x64xf32>,
    return
  }
  func.func @transform_0(%arg0: i32, %arg1: memref<1408xi32, #tpu.memory_space<smem>>) -> (i32, i32) {
    %c0_i32 = arith.constant 0 : i32
    %c0_i32_0 = arith.constant 0 : i32
    return %arg0, %c0_i32 : i32, i32
  }
  func.func @transform_1(%arg0: i32, %arg1: memref<1408xi32, #tpu.memory_space<smem>>) -> (i32, i32, i32) {
    %c0_i32 = arith.constant 0 : i32
    %c0_i32_0 = arith.constant 0 : i32
    %c0_i32_1 = arith.constant 0 : i32
    return %arg0, %c0_i32, %c0_i32_0 : i32, i32, i32
  }
  func.func @transform_3(%arg0: i32, %arg1: memref<1408xi32, #tpu.memory_space<smem>>) -> (i32, i32, i32) {
    %c0_i32 = arith.constant 0 : i32
    %c0_i32_0 = arith.constant 0 : i32
    %c0_i32_1 = arith.constant 0 : i32
    return %arg0, %c0_i32, %c0_i32_0 : i32, i32, i32
  }
}

</mosaic_0001>

<bundles_post_ra>
// kernel: tpu_custom_call.1
= control target key start
LH: loop header
LB: loop body
LE: loop exit
PB: predicated region body
PF: predicated region fallthrough
CT: control target
= control target key end

     0   :  { %s4713_s18 = smov [#allocation5]   ;;  %s6542_s0 = inlined_call_operand.vmem [shape: s32[1408], index: 0, kind: input, shape index: {}]   ;;  %s6543_s1 = inlined_call_operand.vmem [shape: f32[128,32], index: 1, kind: input, shape index: {}]   ;;  %s6544_s2 = inlined_call_operand.vmem [shape: f32[2,11,64], index: 2, kind: input, shape index: {}]   ;;  %s6545_s3 = inlined_call_operand.vmem [shape: f32[50,32], index: 3, kind: input, shape index: {}]   ;;  %s6546_s4 = inlined_call_operand.hbm [shape: f32[2,1,64], index: 4, kind: output, shape index: {}]  }
   0x1   :  { %6571 = sst [smem:[#allocation100_spill]] %s6543_s1  ;;  %s10_s17 = sshll.u32 %s6542_s0, 4  ;;  %s11_s17 = int_to_ptr.vmem [resolvable:$true] %s10_s17 }
   0x2   :  { %6572 = sst [smem:[#allocation101_spill]] %s6544_s2 }
   0x3   :  { %13 = dma.vmem_to_smem %s11_s17, 176, %s4713_s18, [#allocation4] }
   0x4   :  { %4681 = dma.done.wait [#allocation4], 176 }
   0x5   :  { %4682 = vsyncadd [#allocation4], 4294967120 }
   0x6   :  { %16 = sfence }
   0x7   :  { %17 = vsyncpa [#allocation7], 0 }
   0x8   :  { %19 = vsyncpa [#allocation7 + $0x1], 0  ;;  %s4743_s19 = smov 0   ;;  %s4745_s20 = smov 0  }
   0x9   :  { %s4747_s21 = smov 0   ;;  %s4749_s22 = smov 0  }
   0xa LB: > { %s4764_s0 = sadd.s32 4294967295, %s4703_s22   ;;  %s4007_s23 = sadd.s32 4294967294, %s4703_s22   ;;  %s4703_s22 = sphi %s4749_s22, %s6781_s22   ;;  %s4699_s21 = sphi %s4747_s21, %s6780_s21   ;;  %s4695_s20 = sphi %s4745_s20, %s6779_s20   ;;  %s4691_s19 = sphi %s4743_s19, %s6778_s19  }
   0xb   : > { %s4768_s24 = sadd.s32 1, %s4703_s22   ;;  %s84_s25 = sadd.s32 1, %s4699_s21 }
   0xc   : > { %s81_s26 = ssub.s32 %s4703_s22, %s4768_s24  ;;  %p94_p0 = scmp.ne.s32.totalorder %s4699_s21, %s4695_s20 }
   0xd   : > { %p82_p1 = scmp.eq.s32.totalorder %s81_s26, 0  ;;  %p95_p2 = scmp.eq.s32.totalorder %s4764_s0, 1 }
   0xe   : > { %p100_p3 = scmp.ne.s32.totalorder %s4695_s20, %s4691_s19  ;;  %p101_p4 = scmp.eq.s32.totalorder %s4007_s23, 1 }
   0xf   : > { %s4779_s27 = scalar_select %p82_p1, %s4699_s21, %s84_s25  }
  0x10   : > { %p4781_p5 = por %p95_p2, %p94_p0  ;;  %p4785_p6 = por %p101_p4, %p100_p3 }
  0x11   : > { %6573 = sst [smem:[#allocation27_spill]] %s4779_s27  ;;  %p4010_p7 = scmp.ge.s32.totalorder %s4703_s22, 1 }
  0x12   : > { %p136_p8 = scmp.lt.s32.totalorder %s4703_s22, 3 }
  0x14   : > { %p137_p9 = pnand %p4010_p7, %p136_p8 }
  0x16   : > { %140 = sbr.rel (%p137_p9) target bundleno = 2685 (0xa7d), region = 28 }
  0x1b   : > { %s6547_s30 = sand.u32 1, %s4695_s20   ;;  %s4011_s5 = sshll.u32 %s4764_s0, 3 }
  0x1c   : > { %p163_p10 = scmp.lt.s32.totalorder %s4011_s5, 15  ;;  %p168_p11 = scmp.lt.s32.totalorder %s4764_s0, 1 }
  0x1d   : > { %p173_p12 = scmp.lt.s32.totalorder %s4764_s0, 0  ;;  %s174_s8 = ssub.s32 0, %s4764_s0 }
  0x1e   : > { %s6783_s5 = smov (!%p163_p10, %s4011_s5), 15  ;;  %s6576_s1 = sld [smem:[#allocation100_spill]] }
  0x1f   : > { %s169_s6 = scalar_select %p168_p11, %s4764_s0, 1 }
  0x20   : > { %s4012_s7 = sshll.u32 %s6783_s5, 3  ;;  %s6577_s2 = sld [smem:[#allocation101_spill]] }
  0x21   : > { %s4134_s12 = sshll.u32 %s169_s6, 4  ;;  %s4015_s16 = smin.u32 %s4764_s0, %s174_s8 }
  0x22   : > { %s176_s17 = sand.u32 1, %s4015_s16   ;;  %s4812_s25 = scalar_lea.vmem [#allocation6], %s6547_s30 }
  0x23   : > { %s177_s18 = ssub.s32 0, %s176_s17  ;;  %p4018_p0 = scmp.ne.s32.totalorder %s4764_s0, 0 }
  0x24   : > { %s4800_s11 = scalar_lea.vmem %s6576_s1, %s4012_s7  ;;  %s6785_s18 = smov (!%p173_p12, %s177_s18), %s176_s17 }
  0x25   : > { %p4017_p13 = scmp.lt.s32.totalorder %s6785_s18, 0  ;;  %s183_s23 = sadd.s32 2, %s6785_s18 }
  0x26   : > { %s4805_s15 = scalar_lea.vmem %s6577_s2, %s4134_s12  ;;  %188 = sbr.rel (%p4018_p0) target bundleno = 131 (0x83), region = 32 }
  0x27   : > { %s6787_s23 = smov (!%p4017_p13, %s183_s23), %s6785_s18  ;;  %s4815_s26 = smov (!%p4018_p0), 0  }
  0x2b LB: >> { %s4821_s5 = sshll.u32 %s4707_s26, 3  ;;  %s4707_s26 = sphi %s4815_s26, %s194_s26  }
  0x2c   : >> { %s196_s6 = sld [smem:[#allocation5 + %s4821_s5]]  ;;  %s4828_s10 = scalar_lea.vmem [#allocation2], %s4821_s5 }
  0x32   : >> { %s197_s9 = scalar_lea.vmem %s6545_s3, %s196_s6 }
  0x33   : >> { %v213_v0 = vld [vmem:[%s197_s9] sm:$0x1] }
  0x34   : >> { %214 = vst [vmem:[%s4828_s10] sm:$0x1] %v213_v0 }
  0x35   : >> { %232 = vsyncadd [#allocation3], 16  ;;  %s233_s12 = sadd.s32 1, %s4821_s5 }
  0x36   : >> { %s234_s13 = sld [smem:[#allocation5 + %s233_s12]] }
  0x3c   : >> { %s235_s17 = scalar_lea.vmem %s6545_s3, %s234_s13 }
  0x3d   : >> { %v251_v1 = vld [vmem:[%s235_s17] sm:$0x1] }
  0x3e   : >> { %4021 = vst [vmem:[%s4828_s10 + $0x1] sm:$0x1] %v251_v1 }
  0x3f   : >> { %270 = vsyncadd [#allocation3], 16  ;;  %s271_s18 = sadd.s32 2, %s4821_s5 }
  0x40   : >> { %s272_s6 = sld [smem:[#allocation5 + %s271_s18]] }
  0x46   : >> { %s273_s9 = scalar_lea.vmem %s6545_s3, %s272_s6 }
  0x47   : >> { %v289_v2 = vld [vmem:[%s273_s9] sm:$0x1] }
  0x48   : >> { %4023 = vst [vmem:[%s4828_s10 + $0x2] sm:$0x1] %v289_v2 }
  0x49   : >> { %308 = vsyncadd [#allocation3], 16  ;;  %s309_s12 = sadd.s32 3, %s4821_s5 }
  0x4a   : >> { %s310_s30 = sld [smem:[#allocation5 + %s309_s12]] }
  0x50   : >> { %s311_s16 = scalar_lea.vmem %s6545_s3, %s310_s30 }
  0x51   : >> { %v327_v3 = vld [vmem:[%s311_s16] sm:$0x1] }
  0x52   : >> { %4025 = vst [vmem:[%s4828_s10 + $0x3] sm:$0x1] %v327_v3 }
  0x53   : >> { %346 = vsyncadd [#allocation3], 16  ;;  %s347_s17 = sadd.s32 4, %s4821_s5 }
  0x54   : >> { %s348_s18 = sld [smem:[#allocation5 + %s347_s17]] }
  0x5a   : >> { %s349_s8 = scalar_lea.vmem %s6545_s3, %s348_s18 }
  0x5b   : >> { %v365_v4 = vld [vmem:[%s349_s8] sm:$0x1] }
  0x5c   : >> { %4027 = vst [vmem:[%s4828_s10 + $0x4] sm:$0x1] %v365_v4 }
  0x5d   : >> { %384 = vsyncadd [#allocation3], 16  ;;  %s385_s9 = sadd.s32 5, %s4821_s5 }
  0x5e   : >> { %s386_s12 = sld [smem:[#allocation5 + %s385_s9]] }
  0x64   : >> { %s387_s13 = scalar_lea.vmem %s6545_s3, %s386_s12 }
  0x65   : >> { %v403_v5 = vld [vmem:[%s387_s13] sm:$0x1] }
  0x66   : >> { %4029 = vst [vmem:[%s4828_s10 + $0x5] sm:$0x1] %v403_v5 }
  0x67   : >> { %422 = vsyncadd [#allocation3], 16  ;;  %s423_s16 = sadd.s32 6, %s4821_s5 }
  0x68   : >> { %s424_s17 = sld [smem:[#allocation5 + %s423_s16]] }
  0x6e   : >> { %s425_s6 = scalar_lea.vmem %s6545_s3, %s424_s17 }
  0x6f   : >> { %v441_v6 = vld [vmem:[%s425_s6] sm:$0x1] }
  0x70   : >> { %4031 = vst [vmem:[%s4828_s10 + $0x6] sm:$0x1] %v441_v6 }
  0x71   : >> { %460 = vsyncadd [#allocation3], 16  ;;  %s461_s8 = sadd.s32 7, %s4821_s5 }
  0x72   : >> { %s462_s9 = sld [smem:[#allocation5 + %s461_s8]] }
  0x78   : >> { %s463_s30 = scalar_lea.vmem %s6545_s3, %s462_s9 }
  0x79   : >> { %v479_v7 = vld [vmem:[%s463_s30] sm:$0x1] }
  0x7a   : >> { %4033 = vst [vmem:[%s4828_s10 + $0x7] sm:$0x1] %v479_v7 }
  0x7b   : >> { %498 = vsyncadd [#allocation3], 16  ;;  %s194_s26 = sadd.s32 1, %s4707_s26  }
  0x7c   : >> { %p191_p1 = scmp.ge.s32.totalorder %s194_s26, 88  }
  0x7e   : > { %193 = sbr.rel (!%p191_p1) target bundleno = 43 (0x2b), region = 678 }
  0x83 PF: > { %s499_s13 = sadd.s32 1, %s4764_s0 }
  0x84   : > { %p4034_p2 = scmp.ge.s32.totalorder %s499_s13, 2 }
  0x85   : > { %s6548_s5 = ssub.s32 (!%p4034_p2), 1, %s6787_s23  ;;  %s4871_s16 = smul.u32 (!%p4034_p2), 704, %s499_s13 }
  0x86   : > { %503 = sbr.rel (%p4034_p2) target bundleno = 235 (0xeb), region = 283  ;;  %s4877_s10 = smov (!%p4034_p2), 0  }
  0x87   : > { %s4875_s17 = smul.u32 (!%p4034_p2), 704, %s6548_s5 }
  0x89   : > { %6578 = sst [smem:[#allocation28_spill]] (!%p4034_p2), %s4875_s17 }
  0x8b LB: >> { %s6579_s17 = sld [smem:[#allocation28_spill]]  ;;  %s4883_s26 = sshll.u32 %s4711_s10, 3  ;;  %s4711_s10 = sphi %s4877_s10, %s512_s10  }
  0x8c   : >> { %s514_s7 = sadd.s32 %s4883_s26, %s4871_s16  ;;  %s6580_s5 = ssub.s32 1, %s6787_s23 }
  0x8d   : >> { %s515_s18 = sld [smem:[#allocation5 + %s514_s7]]  ;;  %s4897_s30 = scalar_lea.sflag [#allocation3], %s6580_s5 }
  0x91   : >> { %s516_s6 = sadd.s32 %s4883_s26, %s6579_s17 }
  0x92   : >> { %s4892_s12 = scalar_lea.vmem [#allocation2], %s516_s6 }
  0x93   : >> { %s517_s14 = scalar_lea.vmem %s6545_s3, %s515_s18 }
  0x94   : >> { %v534_v8 = vld [vmem:[%s517_s14] sm:$0x1] }
  0x95   : >> { %535 = vst [vmem:[%s4892_s12] sm:$0x1] %v534_v8 }
  0x96   : >> { %553 = vsyncadd %s4897_s30, 16  ;;  %s554_s13 = sadd.s32 1, %s4883_s26 }
  0x97   : >> { %s555_s7 = sadd.s32 %s554_s13, %s4871_s16 }
  0x98   : >> { %s556_s1 = sld [smem:[#allocation5 + %s555_s7]] }
  0x9e   : >> { %s558_s18 = scalar_lea.vmem %s6545_s3, %s556_s1 }
  0x9f   : >> { %v574_v9 = vld [vmem:[%s558_s18] sm:$0x1] }
  0xa0   : >> { %4037 = vst [vmem:[%s4892_s12 + $0x1] sm:$0x1] %v574_v9 }
  0xa1   : >> { %593 = vsyncadd %s4897_s30, 16  ;;  %s594_s6 = sadd.s32 2, %s4883_s26 }
  0xa2   : >> { %s595_s9 = sadd.s32 %s594_s6, %s4871_s16 }
  0xa3   : >> { %s596_s14 = sld [smem:[#allocation5 + %s595_s9]] }
  0xa9   : >> { %s598_s27 = scalar_lea.vmem %s6545_s3, %s596_s14 }
  0xaa   : >> { %v614_v10 = vld [vmem:[%s598_s27] sm:$0x1] }
  0xab   : >> { %4039 = vst [vmem:[%s4892_s12 + $0x2] sm:$0x1] %v614_v10 }
  0xac   : >> { %633 = vsyncadd %s4897_s30, 16  ;;  %s634_s1 = sadd.s32 3, %s4883_s26 }
  0xad   : >> { %s635_s2 = sadd.s32 %s634_s1, %s4871_s16 }
  0xae   : >> { %s636_s13 = sld [smem:[#allocation5 + %s635_s2]] }
  0xb4   : >> { %s638_s18 = scalar_lea.vmem %s6545_s3, %s636_s13 }
  0xb5   : >> { %v654_v11 = vld [vmem:[%s638_s18] sm:$0x1] }
  0xb6   : >> { %4041 = vst [vmem:[%s4892_s12 + $0x3] sm:$0x1] %v654_v11 }
  0xb7   : >> { %673 = vsyncadd %s4897_s30, 16  ;;  %s674_s27 = sadd.s32 4, %s4883_s26 }
  0xb8   : >> { %s675_s5 = sadd.s32 %s674_s27, %s4871_s16 }
  0xb9   : >> { %s676_s17 = sld [smem:[#allocation5 + %s675_s5]] }
  0xbf   : >> { %s678_s14 = scalar_lea.vmem %s6545_s3, %s676_s17 }
  0xc0   : >> { %v694_v12 = vld [vmem:[%s678_s14] sm:$0x1] }
  0xc1   : >> { %4043 = vst [vmem:[%s4892_s12 + $0x4] sm:$0x1] %v694_v12 }
  0xc2   : >> { %713 = vsyncadd %s4897_s30, 16  ;;  %s714_s1 = sadd.s32 5, %s4883_s26 }
  0xc3   : >> { %s715_s2 = sadd.s32 %s714_s1, %s4871_s16 }
  0xc4   : >> { %s716_s13 = sld [smem:[#allocation5 + %s715_s2]] }
  0xca   : >> { %s718_s18 = scalar_lea.vmem %s6545_s3, %s716_s13 }
  0xcb   : >> { %v734_v13 = vld [vmem:[%s718_s18] sm:$0x1] }
  0xcc   : >> { %4045 = vst [vmem:[%s4892_s12 + $0x5] sm:$0x1] %v734_v13 }
  0xcd   : >> { %753 = vsyncadd %s4897_s30, 16  ;;  %s754_s27 = sadd.s32 6, %s4883_s26 }
  0xce   : >> { %s755_s5 = sadd.s32 %s754_s27, %s4871_s16 }
  0xcf   : >> { %s756_s17 = sld [smem:[#allocation5 + %s755_s5]] }
  0xd5   : >> { %s758_s14 = scalar_lea.vmem %s6545_s3, %s756_s17 }
  0xd6   : >> { %v774_v14 = vld [vmem:[%s758_s14] sm:$0x1] }
  0xd7   : >> { %4047 = vst [vmem:[%s4892_s12 + $0x6] sm:$0x1] %v774_v14 }
  0xd8   : >> { %793 = vsyncadd %s4897_s30, 16  ;;  %s794_s1 = sadd.s32 7, %s4883_s26 }
  0xd9   : >> { %s795_s2 = sadd.s32 %s794_s1, %s4871_s16 }
  0xda   : >> { %s796_s13 = sld [smem:[#allocation5 + %s795_s2]] }
  0xe0   : >> { %s798_s18 = scalar_lea.vmem %s6545_s3, %s796_s13 }
  0xe1   : >> { %v814_v15 = vld [vmem:[%s798_s18] sm:$0x1] }
  0xe2   : >> { %4049 = vst [vmem:[%s4892_s12 + $0x7] sm:$0x1] %v814_v15 }
  0xe3   : >> { %833 = vsyncadd %s4897_s30, 16  ;;  %s512_s10 = sadd.s32 1, %s4711_s10  }
  0xe4   : >> { %p509_p3 = scmp.ge.s32.totalorder %s512_s10, 88  }
  0xe6   : > { %511 = sbr.rel (!%p509_p3) target bundleno = 139 (0x8b), region = 689 }
  0xeb PF: > { %s834_s27 = smul.u32 704, %s6787_s23  ;;  %s835_s26 = scalar_lea.sflag [#allocation3], %s6787_s23 }
  0xec   : > { %4683 = dma.done.wait %s835_s26, 11264 }
  0xed   : > { %4684 = vsyncadd %s835_s26, 4294956032  ;;  %v4955_v16 = vld [vmem:[%s4800_s11 + $0x10] sm:$0xff]  ;;  %s4957_s12 = scalar_lea.vmem [#allocation2], %s834_s27  ;;  %vm865_vm0 = vcmask 261120   ;;  %v4961_v18 = vld [vmem:[%s4800_s11] sm:$0xff]  ;;  %v6549_v48 = vlaneseq  ;;  %s3737_s23 = scalar_lea.hbm %s6546_s4, %s4764_s0 }
  0xee   : > { %v851_v17 = vld [vmem:[%s4957_s12 + $0x10] sm:$0xff]  ;;  %v849_v20 = vld [vmem:[%s4957_s12] sm:$0xff]  ;;  %v4972_v25 = vld [vmem:[%s4800_s11 + $0x18] sm:$0xff]  ;;  %s3739_s16 = sshll.u32 %s4812_s25, 4  ;;  %s3741_s10 = sshll.u32 %s3737_s23, 4  ;;  %s3740_s16 = int_to_ptr.vmem [resolvable:$true] %s3739_s16  ;;  %s3742_s10 = int_to_ptr.hbm [resolvable:$true] %s3741_s10 }
  0xef   : > { %v859_v19 = vmul.f32 %v851_v17, %v4955_v16  ;;  %v4966_v21 = vld [vmem:[%s4800_s11 + $0x20] sm:$0xff]  ;;  %v857_v23 = vmul.f32 %v849_v20, %v4961_v18  ;;  %v852_v26 = vld [vmem:[%s4957_s12 + $0x18] sm:$0xff]  ;;  %v4976_v27 = vld [vmem:[%s4800_s11 + $0x8] sm:$0xff]  ;;  %v5009_v53 = vshrl.u32 %v6549_v48, 7  ;;  %s6776_s0 = sand.u32 1, %s4695_s20   ;;  %s4643_s5 = sshra.s32 %s3742_s10, 4  ;;  %s4644_s5 = int_to_ptr.hbm [resolvable:$true] %s4643_s5 }
  0xf0   : > { %v853_v22 = vld [vmem:[%s4957_s12 + $0x20] sm:$0xff]  ;;  %v850_v29 = vld [vmem:[%s4957_s12 + $0x8] sm:$0xff]  ;;  %v860_v34 = vmul.f32 %v852_v26, %v4972_v25  ;;  %v4990_v37 = vld [vmem:[%s4800_s11 + $0x38] sm:$0xff]  ;;  %s3729_s30 = scalar_lea.sflag [#allocation7], %s6776_s0  ;;  %s4645_s17 = scalar_lea.hbm %s4644_s5, 1 }
  0xf1   : > { %v861_v24 = vmul.f32 %v853_v22, %v4966_v21  ;;  %v872_v28 = vsel %vm865_vm0, %v859_v19, 0.0  ;;  %v4981_v30 = vld [vmem:[%s4800_s11 + $0x28] sm:$0xff]  ;;  %v866_v32 = vsel %vm865_vm0, %v857_v23, 0.0  ;;  %v858_v35 = vmul.f32 %v850_v29, %v4976_v27  ;;  %v856_v38 = vld [vmem:[%s4957_s12 + $0x38] sm:$0xff]  ;;  %v4995_v40 = vld [vmem:[%s4800_s11 + $0x30] sm:$0xff]  ;;  %6581 = vst [vmem:[#allocation29_spill] sm:$0xff] %v5009_v53  ;;  %4195 = vset.pattern.permute.xlu0 %v5009_v53  ;;  %p4646_p4 = scmp.ne.s32.totalorder %s4644_s5, %s4645_s17  ;;  %p4650_p9 = scmp.lt.s32.totalorder %s4644_s5, %s6546_s4 }
  0xf2   : > { %v854_v31 = vld [vmem:[%s4957_s12 + $0x28] sm:$0xff]  ;;  %873 = vadd.xlane.f32.xlu1 %v872_v28  ;;  %867 = vadd.xlane.f32.xlu0 %v866_v32  ;;  %v875_v39 = vsel %vm865_vm0, %v860_v34, 0.0  ;;  %v855_v41 = vld [vmem:[%s4957_s12 + $0x30] sm:$0xff]  ;;  %v4050_v44 = vld [vmem:[%s4957_s12 + $0x40] sm:$0xff]  ;;  %v864_v45 = vmul.f32 %v856_v38, %v4990_v37  ;;  %v5014_v56 = vadd.s32 32, %v5009_v53  ;;  %v5019_v58 = vadd.s32 56, %v5009_v53 }
  0xf3   : > { %v878_v33 = vsel %vm865_vm0, %v861_v24, 0.0  ;;  %v862_v36 = vmul.f32 %v854_v31, %v4981_v30  ;;  %v869_v42 = vsel %vm865_vm0, %v858_v35, 0.0  ;;  %v863_v46 = vmul.f32 %v855_v41, %v4995_v40  ;;  %v4052_v52 = vld [vmem:[%s4957_s12 + $0x50] sm:$0xff]  ;;  %v4051_v54 = vld [vmem:[%s4957_s12 + $0x48] sm:$0xff]  ;;  %v4053_v55 = vld [vmem:[%s4957_s12 + $0x58] sm:$0xff]  ;;  %p4647_p7 = pnand %p4646_p4, %p4781_p5  ;;  %s4649_s14 = scalar_lea.hbm %s6546_s4, 2 }
  0xf4   : > { %879 = vadd.xlane.f32.xlu2 %v878_v33  ;;  %v956_v47 = vmul.f32 %v4050_v44, %v4961_v18  ;;  %v887_v49 = vsel %vm865_vm0, %v864_v45, 0.0  ;;  %6582 = vst [vmem:[#allocation30_spill] sm:$0xff] %v5014_v56  ;;  %v958_v57 = vmul.f32 %v4052_v52, %v4955_v16  ;;  %v957_v59 = vmul.f32 %v4051_v54, %v4976_v27  ;;  %v4055_v0 = vld [vmem:[%s4957_s12 + $0x68] sm:$0xff]  ;;  %v4054_v1 = vld [vmem:[%s4957_s12 + $0x60] sm:$0xff]  ;;  %v4056_v2 = vld [vmem:[%s4957_s12 + $0x70] sm:$0xff]  ;;  %p4651_p10 = scmp.lt.s32.totalorder %s4649_s14, %s4645_s17 }
  0xf5   : > { %v881_v43 = vsel %vm865_vm0, %v862_v36, 0.0  ;;  %v884_v50 = vsel %vm865_vm0, %v863_v46, 0.0  ;;  %v959_v60 = vmul.f32 %v4053_v55, %v4972_v25  ;;  %4192 = vset.pattern.permute.xlu1 %v5014_v56  ;;  %4194 = vset.pattern.permute.xlu2 %v5019_v58  ;;  %v961_v3 = vmul.f32 %v4055_v0, %v4981_v30  ;;  %v4057_v9 = vld [vmem:[%s4957_s12 + $0x78] sm:$0xff]  ;;  %v4059_v12 = vld [vmem:[%s4957_s12 + $0x88] sm:$0xff]  ;;  %v5046_v19 = vld [vmem:[%s4805_s15 + $0x1] ss:$0 sm:$0xff]  ;;  %p4648_p8 = pneg %p4647_p7 }
  0xf6   : > { %v964_v51 = vsel %vm865_vm0, %v956_v47, 0.0  ;;  %v970_v61 = vsel %vm865_vm0, %v958_v57, 0.0  ;;  %v967_v62 = vsel %vm865_vm0, %v957_v59, 0.0  ;;  %v960_v4 = vmul.f32 %v4054_v1, %v4966_v21  ;;  %v4063_v15 = vld [vmem:[%s4957_s12 + $0xa8] sm:$0xff]  ;;  %v5061_v24 = vld [vmem:[%s4805_s15 + $0x2] ss:$0 sm:$0xff]  ;;  %p4652_p11 = por %p4651_p10, %p4650_p9 }
  0xf7   : > { %v973_v63 = vsel %vm865_vm0, %v959_v60, 0.0  ;;  %v962_v5 = vmul.f32 %v4056_v2, %v4995_v40  ;;  %v979_v6 = vsel %vm865_vm0, %v961_v3, 0.0  ;;  %v963_v10 = vmul.f32 %v4057_v9, %v4990_v37  ;;  %v4060_v26 = vld [vmem:[%s4957_s12 + $0x90] sm:$0xff]  ;;  %v4062_v31 = vld [vmem:[%s4957_s12 + $0xa0] sm:$0xff]  ;;  %v4065_v35 = vld [vmem:[%s4957_s12 + $0xb8] sm:$0xff] }
  0xf8   : > { %v976_v7 = vsel %vm865_vm0, %v960_v4, 0.0  ;;  %v1235_v13 = vmul.f32 %v4059_v12, %v4976_v27  ;;  %v1239_v17 = vmul.f32 %v4063_v15, %v4981_v30  ;;  %v5052_v22 = vadd.s32 48, %v5009_v53  ;;  %v4058_v34 = vld [vmem:[%s4957_s12 + $0x80] sm:$0xff]  ;;  %v4064_v47 = vld [vmem:[%s4957_s12 + $0xb0] sm:$0xff]  ;;  %v4075_v3 = vld [vmem:[%s4957_s12 + $0x108] sm:$0xff]  ;;  %p4653_p12 = pnand %p4652_p11, %p4648_p8 }
  0xf9   : > { %v982_v8 = vsel %vm865_vm0, %v962_v5, 0.0  ;;  %v985_v11 = vsel %vm865_vm0, %v963_v10, 0.0  ;;  %v5055_v23 = vadd.s32 16, %v5009_v53  ;;  %v1236_v28 = vmul.f32 %v4060_v26, %v4955_v16  ;;  %v4070_v57 = vld [vmem:[%s4957_s12 + $0xe0] sm:$0xff] }
  0xfa   : > { %876 = vadd.xlane.f32.xlu1 %v875_v39  ;;  %870 = vadd.xlane.f32.xlu0 %v869_v42  ;;  %v1245_v14 = vsel %vm865_vm0, %v1235_v13, 0.0  ;;  %v1257_v20 = vsel %vm865_vm0, %v1239_v17, 0.0  ;;  %6583 = vst [vmem:[#allocation31_spill] sm:$0xff] %v5052_v22  ;;  %v1238_v32 = vmul.f32 %v4062_v31, %v4966_v21  ;;  %v1234_v36 = vmul.f32 %v4058_v34, %v4961_v18  ;;  %v4061_v42 = vld [vmem:[%s4957_s12 + $0x98] sm:$0xff]  ;;  %v4078_v9 = vld [vmem:[%s4957_s12 + $0x120] sm:$0xff] }
  0xfb   : > { %v1248_v29 = vsel %vm865_vm0, %v1236_v28, 0.0  ;;  %v1241_v38 = vmul.f32 %v4065_v35, %v4990_v37  ;;  %v1237_v44 = vmul.f32 %v4061_v42, %v4972_v25  ;;  %v1516_v59 = vmul.f32 %v4070_v57, %v4966_v21 }
  0xfc   : > { %882 = vadd.xlane.f32.xlu2 %v881_v43  ;;  %v1254_v33 = vsel %vm865_vm0, %v1238_v32, 0.0  ;;  %v1242_v39 = vsel %vm865_vm0, %v1234_v36, 0.0  ;;  %v5080_v43 = vadd.s32 8, %v5009_v53  ;;  %v1791_v4 = vmul.f32 %v4075_v3, %v4976_v27  ;;  %v4086_v36 = vld [vmem:[%s4957_s12 + $0x160] sm:$0xff] }
  0xfd   : > { %v1263_v41 = vsel %vm865_vm0, %v1241_v38, 0.0  ;;  %v1251_v46 = vsel %vm865_vm0, %v1237_v44, 0.0  ;;  %v5120_v10 = vadd.s32 24, %v5009_v53  ;;  %v5137_v31 = vadd.s32 40, %v5009_v53 }
  0xfe   : > { %6584 = vst [vmem:[#allocation32_spill] sm:$0xff] %v5080_v43 }
 0x102   : > { %888 = vadd.xlane.f32.xlu1 %v887_v49  ;;  %885 = vadd.xlane.f32.xlu0 %v884_v50  ;;  %v1240_v49 = vmul.f32 %v4064_v47, %v4995_v40  ;;  %v4067_v50 = vld [vmem:[%s4957_s12 + $0xc8] sm:$0xff] }
 0x103   : > { %v1513_v52 = vmul.f32 %v4067_v50, %v4976_v27 }
 0x104   : > { %965 = vadd.xlane.f32.xlu2 %v964_v51  ;;  %v1260_v51 = vsel %vm865_vm0, %v1240_v49, 0.0 }
 0x105   : > { %v1523_v55 = vsel %vm865_vm0, %v1513_v52, 0.0 }
 0x10a   : > { %971 = vadd.xlane.f32.xlu1 %v970_v61  ;;  %968 = vadd.xlane.f32.xlu0 %v967_v62  ;;  %v1532_v61 = vsel %vm865_vm0, %v1516_v59, 0.0  ;;  %v4073_v62 = vld [vmem:[%s4957_s12 + $0xf8] sm:$0xff] }
 0x10c   : > { %974 = vadd.xlane.f32.xlu2 %v973_v63  ;;  %v1519_v63 = vmul.f32 %v4073_v62, %v4990_v37 }
 0x10e   : > { %v1541_v2 = vsel %vm865_vm0, %v1519_v63, 0.0 }
 0x112   : > { %980 = vadd.xlane.f32.xlu1 %v979_v6  ;;  %977 = vadd.xlane.f32.xlu0 %v976_v7  ;;  %v1801_v6 = vsel %vm865_vm0, %v1791_v4, 0.0 }
 0x114   : > { %983 = vadd.xlane.f32.xlu2 %v982_v8 }
 0x11a   : > { %986 = vadd.xlane.f32.xlu0 %v985_v11  ;;  %v1794_v11 = vmul.f32 %v4078_v9, %v4966_v21 }
 0x11c   : > { %v1810_v12 = vsel %vm865_vm0, %v1794_v11, 0.0 }
 0x122   : > { %1246 = vadd.xlane.f32.xlu0 %v1245_v14  ;;  %v4081_v14 = vld [vmem:[%s4957_s12 + $0x138] sm:$0xff] }
 0x12a   : > { %1258 = vadd.xlane.f32.xlu0 %v1257_v20  ;;  %v1797_v20 = vmul.f32 %v4081_v14, %v4990_v37  ;;  %v5170_v14 = vld [vmem:[%s4805_s15 + $0x3] ss:$0 sm:$0xff] }
 0x12b   : > { %1019 = vperm.xlu1 %4192, %v5046_v19  }
 0x12c   : > { %1037 = vperm.xlu2 %4194, %v5046_v19   ;;  %v1819_v26 = vsel %vm865_vm0, %v1797_v20, 0.0 }
 0x133   : > { %4193 = vset.pattern.permute.xlu1 %v5052_v22 }
 0x134   : > { %4198 = vset.pattern.permute.xlu2 %v5055_v23 }
 0x13b   : > { %1031 = vperm.xlu1 %4193, %v5046_v19  }
 0x13e   : > { %1273 = vperm.xlu0 %4195, %v5061_v24  }
 0x143   : > { %4197 = vset.pattern.permute.xlu1 %v5080_v43 }
 0x146   : > { %4196 = vset.pattern.permute.xlu0 %v5055_v23 }
 0x14e   : > { %1007 = vperm.xlu0 %4196, %v5046_v19  }
 0x155   : > { %1249 = vadd.xlane.f32.xlu2 %v1248_v29  ;;  %v4083_v29 = vld [vmem:[%s4957_s12 + $0x148] sm:$0xff] }
 0x156   : > { %v2069_v32 = vmul.f32 %v4083_v29, %v4976_v27 }
 0x158   : > { %v2079_v35 = vsel %vm865_vm0, %v2069_v32, 0.0  ;;  %v5175_v32 = vld [vmem:[%s4805_s15 + $0x4] ss:$0 sm:$0xff] }
 0x15d   : > { %1255 = vadd.xlane.f32.xlu2 %v1254_v33 }
 0x165   : > { %1243 = vadd.xlane.f32.xlu1 %v1242_v39  ;;  %1264 = vadd.xlane.f32.xlu2 %v1263_v41  ;;  %v5084_v45 = vpop.xlane.xlu0 %867  ;;  %v5103_v0 = vpop.xlane.xlu1 %873  ;;  %v2072_v39 = vmul.f32 %v4086_v36, %v4966_v21 }
 0x166   : > { %6586 = vst [vmem:[#allocation34_spill] sm:$0xff] %v5103_v0 }
 0x167   : > { %v5111_v5 = vpop.xlane.xlu2 %879  ;;  %v2088_v44 = vsel %vm865_vm0, %v2072_v39, 0.0 }
 0x168   : > { %6587 = vst [vmem:[#allocation35_spill] sm:$0xff] %v5111_v5 }
 0x16d   : > { %1252 = vadd.xlane.f32.xlu1 %v1251_v46  ;;  %v5092_v54 = vpop.xlane.xlu0 %870  ;;  %v5116_v7 = vpop.xlane.xlu1 %876  ;;  %v4089_v46 = vld [vmem:[%s4957_s12 + $0x178] sm:$0xff] }
 0x16e   : > { %6588 = vst [vmem:[#allocation36_spill] sm:$0xff] %v5116_v7  ;;  %v2075_v47 = vmul.f32 %v4089_v46, %v4990_v37 }
 0x16f   : > { %v5125_v13 = vpop.xlane.xlu2 %882 }
 0x170   : > { %6589 = vst [vmem:[#allocation37_spill] sm:$0xff] %v5125_v13 }
 0x175   : > { %1261 = vadd.xlane.f32.xlu1 %v1260_v51  ;;  %v5097_v60 = vpop.xlane.xlu0 %885  ;;  %v5128_v15 = vpop.xlane.xlu1 %888  ;;  %v2097_v51 = vsel %vm865_vm0, %v2075_v47, 0.0 }
 0x176   : > { %6585 = vst [vmem:[#allocation33_spill] sm:$0xff] %v5097_v60 }
 0x177   : > { %6590 = vst [vmem:[#allocation38_spill] sm:$0xff] %v5128_v15  ;;  %v5133_v28 = vpop.xlane.xlu2 %965 }
 0x178   : > { %1524 = vadd.xlane.f32.xlu0 %v1523_v55 }
 0x17d   : > { %1285 = vperm.xlu2 %4198, %v5061_v24   ;;  %v5106_v1 = vpop.xlane.xlu0 %968  ;;  %v972_v33 = vpop.xlane.xlu1 %971 }
 0x17f   : > { %v5145_v38 = vpop.xlane.xlu2 %974 }
 0x180   : > { %1533 = vadd.xlane.f32.xlu0 %v1532_v61  ;;  %v6550_v61 = vmov 0  }
 0x185   : > { %4201 = vset.pattern.permute.xlu2 %v5052_v22  ;;  %v978_v8 = vpop.xlane.xlu0 %977  ;;  %v5148_v41 = vpop.xlane.xlu1 %980 }
 0x187   : > { %v5156_v49 = vpop.xlane.xlu2 %983 }
 0x188   : > { %1542 = vadd.xlane.f32.xlu0 %v1541_v2 }
 0x18d   : > { %1309 = vperm.xlu2 %4201, %v5061_v24   ;;  %v987_v17 = vpop.xlane.xlu0 %986 }
 0x18e   : > { %1279 = vperm.xlu1 %4197, %v5061_v24  }
 0x18f   : > { %v1038_v59 = vpop.permute.xlu2 %1037 }
 0x190   : > { %1802 = vadd.xlane.f32.xlu0 %v1801_v6  ;;  %v5166_v63 = vsub.f32 %v987_v17, %v1038_v59 }
 0x192   : > { %v1070_v6 = vand.u32 2147483647, %v5166_v63 }
 0x194   : > { %v1078_v11 = vsub.f32 0.0, %v1070_v6 }
 0x195   : > { %v5140_v34 = vpop.xlane.xlu0 %1246  ;;  %4202 = vset.pattern.permute.xlu2 %v6550_v61 }
 0x196   : > { %4199 = vset.pattern.permute.xlu1 %v5120_v10  ;;  %v1093_v20 = vmul.f32 1.442695, %v1078_v11 }
 0x198   : > { %1811 = vadd.xlane.f32.xlu0 %v1810_v12 }
 0x19d   : > { %v5150_v42 = vpop.xlane.xlu0 %1258  ;;  %v1020_v50 = vpop.permute.xlu1 %1019 }
 0x19e   : > { %1291 = vperm.xlu1 %4199, %v5061_v24   ;;  %v5162_v55 = vsub.f32 %v978_v8, %v1020_v50  ;;  %v4071_v50 = vld [vmem:[%s4957_s12 + $0xe8] sm:$0xff] }
 0x1a0   : > { %1820 = vadd.xlane.f32.xlu0 %v1819_v26  ;;  %v1067_v57 = vand.u32 2147483647, %v5162_v55  ;;  %v4068_v26 = vld [vmem:[%s4957_s12 + $0xd0] sm:$0xff] }
 0x1a2   : > { %v1075_v62 = vsub.f32 0.0, %v1067_v57 }
 0x1a4   : > { %v1087_v4 = vmul.f32 1.442695, %v1075_v62  ;;  %v5182_v62 = vld [vmem:[%s4805_s15 + $0x5] ss:$0 sm:$0xff] }
 0x1a6   : > { %4200 = vset.pattern.permute.xlu1 %v5137_v31  ;;  %4268 = vpow2.f32 %v1087_v4 }
 0x1a8   : > { %2080 = vadd.xlane.f32.xlu0 %v2079_v35 }
 0x1ac   : > { %v4269_v17 = vpop.eup %4268 }
 0x1ad   : > { %v1131_v36 = vadd.f32 1.0, %v4269_v17  ;;  %v1134_v57 = vmul.f32 -0.5, %v4269_v17 }
 0x1ae   : > { %1303 = vperm.xlu1 %4200, %v5061_v24  }
 0x1b0   : > { %2089 = vadd.xlane.f32.xlu0 %v2088_v44  ;;  %v5160_v52 = vpop.permute.xlu0 %1273 }
 0x1b6   : > { %4203 = vset.pattern.permute.xlu1 %v5009_v53 }
 0x1b8   : > { %2098 = vadd.xlane.f32.xlu0 %v2097_v51 }
 0x1c0   : > { %v1008_v2 = vpop.permute.xlu0 %1007 }
 0x1c1   : > { %v1049_v3 = vsub.f32 %v972_v33, %v1008_v2  ;;  %v1514_v33 = vmul.f32 %v4068_v26, %v4955_v16  ;;  %v1517_v2 = vmul.f32 %v4071_v50, %v4981_v30 }
 0x1c3   : > { %v1065_v8 = vand.u32 2147483647, %v1049_v3  ;;  %v1526_v44 = vsel %vm865_vm0, %v1514_v33, 0.0  ;;  %v1057_v11 = vmax.f32 %v1049_v3, 0.0  ;;  %v1135_v33 = vadd.f32 1.0, %v1134_v57 }
 0x1c5   : > { %v1073_v9 = vsub.f32 0.0, %v1065_v8 }
 0x1c7   : > { %v1083_v12 = vmul.f32 1.442695, %v1073_v9 }
 0x1c9   : > { %4270 = vpow2.f32 %v1083_v12  ;;  %v5185_v12 = vpop.permute.xlu1 %1031 }
 0x1ca   : > { %4272 = vpow2.f32 %v1093_v20  ;;  %v5187_v20 = vpop.xlane.xlu2 %1249 }
 0x1cc   : > { %1563 = vperm.xlu0 %4196, %v5170_v14  }
 0x1cf   : > { %v4271_v29 = vpop.eup %4270 }
 0x1d0   : > { %v1113_v35 = vadd.f32 1.0, %v4271_v29  ;;  %v1116_v39 = vmul.f32 -0.5, %v4271_v29  ;;  %v4273_v46 = vpop.eup %4272  ;;  %v1119_v51 = vand.u32 2147483647, %v4271_v29 }
 0x1d1   : > { %v1158_v4 = vadd.f32 1.0, %v4273_v46  ;;  %v1161_v50 = vmul.f32 -0.5, %v4273_v46 }
 0x1d2   : > { %4274 = vlog2.f32 %v1113_v35  ;;  %v1117_v47 = vadd.f32 1.0, %v1116_v39  ;;  %vm1120_vm1 = vcmp.lt.f32.partialorder %v1119_v51, 0.0004427343  ;;  %v1137_v39 = vand.u32 2147483647, %v4269_v17 }
 0x1d3   : > { %4276 = vlog2.f32 %v1131_v36  ;;  %v1535_v36 = vsel %vm865_vm0, %v1517_v2, 0.0 }
 0x1d4   : > { %1841 = vperm.xlu0 %4196, %v5175_v32   ;;  %v1118_v8 = vmul.f32 %v4271_v29, %v1117_v47  ;;  %4278 = vlog2.f32 %v1158_v4  ;;  %v1136_v29 = vmul.f32 %v4269_v17, %v1135_v33  ;;  %vm1138_vm2 = vcmp.lt.f32.partialorder %v1137_v39, 0.0004427343  ;;  %v4091_v39 = vld [vmem:[%s4957_s12 + $0x188] sm:$0xff] }
 0x1d5   : > { %v1162_v47 = vadd.f32 1.0, %v1161_v50 }
 0x1d7   : > { %v1163_v4 = vmul.f32 %v4273_v46, %v1162_v47 }
 0x1d8   : > { %1527 = vadd.xlane.f32.xlu1 %v1526_v44  ;;  %v4275_v59 = vpop.eup %4274  ;;  %v5192_v57 = vpop.xlane.xlu1 %1243 }
 0x1d9   : > { %v1115_v6 = vmul.f32 0.6931472, %v4275_v59  ;;  %v4277_v9 = vpop.eup %4276  ;;  %v1059_v59 = vmax.f32 %v5162_v55, 0.0 }
 0x1da   : > { %v1133_v44 = vmul.f32 0.6931472, %v4277_v9  ;;  %v4279_v51 = vpop.eup %4278  ;;  %v1062_v9 = vmax.f32 %v5166_v63, 0.0 }
 0x1db   : > { %v1121_v26 = vsel %vm1120_vm1, %v1118_v8, %v1115_v6  ;;  %v1164_v6 = vand.u32 2147483647, %v4273_v46  ;;  %v1160_v2 = vmul.f32 0.6931472, %v4279_v51  ;;  %v2347_v46 = vmul.f32 %v4091_v39, %v4976_v27  ;;  %v4094_v51 = vld [vmem:[%s4957_s12 + $0x1a0] sm:$0xff] }
 0x1dc   : > { %2119 = vperm.xlu0 %4196, %v5182_v62   ;;  %v1169_v35 = vadd.f32 %v1121_v26, %v1057_v11  ;;  %v1139_v3 = vsel %vm1138_vm2, %v1136_v29, %v1133_v44  ;;  %v5194_v11 = vpop.xlane.xlu2 %1255 }
 0x1dd   : > { %v1171_v8 = vadd.f32 %v1139_v3, %v1059_v59  ;;  %vm1165_vm3 = vcmp.lt.f32.partialorder %v1164_v6, 0.0004427343  ;;  %v2357_v3 = vsel %vm865_vm0, %v2347_v46, 0.0  ;;  %v2350_v6 = vmul.f32 %v4094_v51, %v4966_v21 }
 0x1de   : > { %1190 = vperm.xlu2 %4202, %v1169_v35   ;;  %v1166_v17 = vsel %vm1165_vm3, %v1163_v4, %v1160_v2  ;;  %v4097_v2 = vld [vmem:[%s4957_s12 + $0x1b8] sm:$0xff] }
 0x1df   : > { %v1174_v26 = vadd.f32 %v1166_v17, %v1062_v9 }
 0x1e0   : > { %1536 = vadd.xlane.f32.xlu1 %v1535_v36  ;;  %v1253_v33 = vpop.xlane.xlu1 %1252 }
 0x1e4   : > { %v5197_v35 = vpop.xlane.xlu2 %1264 }
 0x1e5   : > { %6591 = vst [vmem:[#allocation39_spill] sm:$0xff] %v5197_v35 }
 0x1e6   : > { %1196 = vperm.xlu2 %4202, %v1171_v8  }
 0x1e8   : > { %v1262_v55 = vpop.xlane.xlu1 %1261 }
 0x1ec   : > { %v5200_v36 = vpop.permute.xlu2 %1285 }
 0x1ee   : > { %1205 = vperm.xlu2 %4202, %v1174_v26   ;;  %v2353_v26 = vmul.f32 %v4097_v2, %v4990_v37 }
 0x1f4   : > { %v1310_v29 = vpop.permute.xlu2 %1309 }
 0x1f5   : > { %v5208_v59 = vsub.f32 %v1262_v55, %v1310_v29  ;;  %v2375_v29 = vsel %vm865_vm0, %v2353_v26, 0.0 }
 0x1f7   : > { %v1347_v8 = vand.u32 2147483647, %v5208_v59 }
 0x1f9   : > { %995 = vperm.xlu1 %4203, %v5046_v19   ;;  %v1355_v9 = vsub.f32 0.0, %v1347_v8 }
 0x1fb   : > { %v1369_v46 = vmul.f32 1.442695, %v1355_v9 }
 0x200   : > { %v1280_v44 = vpop.permute.xlu1 %1279 }
 0x201   : > { %v1326_v50 = vsub.f32 %v5140_v34, %v1280_v44  ;;  %1551 = vperm.xlu1 %4203, %v5170_v14   ;;  %v2366_v34 = vsel %vm865_vm0, %v2350_v6, 0.0 }
 0x203   : > { %v1342_v63 = vand.u32 2147483647, %v1326_v50 }
 0x205   : > { %v1350_v47 = vsub.f32 0.0, %v1342_v63 }
 0x206   : > { %2358 = vadd.xlane.f32.xlu0 %v2357_v3 }
 0x207   : > { %v1359_v19 = vmul.f32 1.442695, %v1350_v47 }
 0x209   : > { %4280 = vpow2.f32 %v1359_v19  ;;  %4204 = vset.pattern.permute.xlu1 %v5120_v10 }
 0x20e   : > { %2367 = vadd.xlane.f32.xlu0 %v2366_v34  ;;  %v1334_v34 = vmax.f32 %v1326_v50, 0.0 }
 0x20f   : > { %v4281_v4 = vpop.eup %4280 }
 0x210   : > { %v1292_v17 = vpop.permute.xlu1 %1291  ;;  %v1382_v55 = vadd.f32 1.0, %v4281_v4  ;;  %v1385_v44 = vmul.f32 -0.5, %v4281_v4  ;;  %v1388_v51 = vand.u32 2147483647, %v4281_v4 }
 0x211   : > { %v1328_v39 = vsub.f32 %v1253_v33, %v1292_v17  ;;  %1569 = vperm.xlu1 %4204, %v5170_v14  }
 0x212   : > { %4282 = vlog2.f32 %v1382_v55  ;;  %v1386_v47 = vadd.f32 1.0, %v1385_v44  ;;  %vm1389_vm4 = vcmp.lt.f32.partialorder %v1388_v51, 0.0004427343 }
 0x213   : > { %v1344_v63 = vand.u32 2147483647, %v1328_v39  ;;  %4284 = vpow2.f32 %v1369_v46 }
 0x214   : > { %v1387_v33 = vmul.f32 %v4281_v4, %v1386_v47 }
 0x215   : > { %v1352_v3 = vsub.f32 0.0, %v1344_v63 }
 0x216   : > { %2376 = vadd.xlane.f32.xlu0 %v2375_v29 }
 0x217   : > { %v1363_v19 = vmul.f32 1.442695, %v1352_v3  ;;  %v5221_v3 = vld [vmem:[%s4805_s15 + $0x6] ss:$0 sm:$0xff] }
 0x218   : > { %v4283_v6 = vpop.eup %4282 }
 0x219   : > { %4286 = vpow2.f32 %v1363_v19  ;;  %4205 = vset.pattern.permute.xlu1 %v5137_v31  ;;  %v1384_v8 = vmul.f32 0.6931472, %v4283_v6  ;;  %v4285_v17 = vpop.eup %4284  ;;  %v1336_v6 = vmax.f32 %v1328_v39, 0.0  ;;  %v1339_v39 = vmax.f32 %v5208_v59, 0.0  ;;  %v4066_v59 = vld [vmem:[%s4957_s12 + $0xc0] sm:$0xff] }
 0x21a   : > { %v1427_v44 = vadd.f32 1.0, %v4285_v17  ;;  %v1430_v4 = vmul.f32 -0.5, %v4285_v17 }
 0x21b   : > { %v1390_v2 = vsel %vm1389_vm4, %v1387_v33, %v1384_v8 }
 0x21c   : > { %v1446_v9 = vadd.f32 %v1390_v2, %v1334_v34  ;;  %v1431_v33 = vadd.f32 1.0, %v1430_v4  ;;  %v1433_v2 = vand.u32 2147483647, %v4285_v17  ;;  %v4102_v4 = vld [vmem:[%s4957_s12 + $0x1e0] sm:$0xff] }
 0x21e   : > { %1465 = vperm.xlu2 %4202, %v1446_v9   ;;  %vm1434_vm6 = vcmp.lt.f32.partialorder %v1433_v2, 0.0004427343 }
 0x21f   : > { %v4287_v26 = vpop.eup %4286 }
 0x220   : > { %v1400_v55 = vadd.f32 1.0, %v4287_v26  ;;  %v1403_v46 = vmul.f32 -0.5, %v4287_v26  ;;  %v1406_v29 = vand.u32 2147483647, %v4287_v26 }
 0x221   : > { %1581 = vperm.xlu1 %4205, %v5170_v14  }
 0x222   : > { %4288 = vlog2.f32 %v1400_v55  ;;  %v1404_v63 = vadd.f32 1.0, %v1403_v46  ;;  %vm1407_vm5 = vcmp.lt.f32.partialorder %v1406_v29, 0.0004427343  ;;  %v1432_v55 = vmul.f32 %v4285_v17, %v1431_v33  ;;  %v4099_v46 = vld [vmem:[%s4957_s12 + $0x1c8] sm:$0xff]  ;;  %v4076_v29 = vld [vmem:[%s4957_s12 + $0x110] sm:$0xff]  ;;  %v4105_v33 = vld [vmem:[%s4957_s12 + $0x1f8] sm:$0xff] }
 0x223   : > { %4290 = vlog2.f32 %v1427_v44 }
 0x224   : > { %v1405_v51 = vmul.f32 %v4287_v26, %v1404_v63  ;;  %v2625_v63 = vmul.f32 %v4099_v46, %v4976_v27  ;;  %v5251_v46 = vld [vmem:[%s4805_s15 + $0x7] ss:$0 sm:$0xff] }
 0x226   : > { %v2635_v17 = vsel %vm865_vm0, %v2625_v63, 0.0  ;;  %v4072_v63 = vld [vmem:[%s4957_s12 + $0xf0] sm:$0xff] }
 0x228   : > { %v4289_v47 = vpop.eup %4288 }
 0x229   : > { %4207 = vset.pattern.permute.xlu1 %v5019_v58  ;;  %v1402_v50 = vmul.f32 0.6931472, %v4289_v47  ;;  %v4291_v19 = vpop.eup %4290  ;;  %v1792_v47 = vmul.f32 %v4076_v29, %v4955_v16  ;;  %v1518_v29 = vmul.f32 %v4072_v63, %v4995_v40  ;;  %v5293_v63 = vld [vmem:[%s4805_s15 + $0x8] ss:$0 sm:$0xff] }
 0x22a   : > { %2397 = vperm.xlu0 %4196, %v5221_v3   ;;  %v1429_v9 = vmul.f32 0.6931472, %v4291_v19  ;;  %v1512_v19 = vmul.f32 %v4066_v59, %v4961_v18 }
 0x22b   : > { %v1408_v8 = vsel %vm1407_vm5, %v1405_v51, %v1402_v50  ;;  %v2628_v50 = vmul.f32 %v4102_v4, %v4966_v21  ;;  %v1804_v51 = vsel %vm865_vm0, %v1792_v47, 0.0  ;;  %v5261_v4 = vpop.permute.xlu1 %1303  ;;  %v4107_v47 = vld [vmem:[%s4957_s12 + $0x208] sm:$0xff] }
 0x22c   : > { %v1448_v34 = vadd.f32 %v1408_v8, %v1336_v6  ;;  %v1435_v26 = vsel %vm1434_vm6, %v1432_v55, %v1429_v9  ;;  %v4079_v6 = vld [vmem:[%s4957_s12 + $0x128] sm:$0xff]  ;;  %v4069_v9 = vld [vmem:[%s4957_s12 + $0xd8] sm:$0xff]  ;;  %v2631_v55 = vmul.f32 %v4105_v33, %v4990_v37 }
 0x22d   : > { %v1451_v44 = vadd.f32 %v1435_v26, %v1339_v39  ;;  %v2644_v8 = vsel %vm865_vm0, %v2628_v50, 0.0  ;;  %v1795_v2 = vmul.f32 %v4079_v6, %v4981_v30  ;;  %v1515_v18 = vmul.f32 %v4069_v9, %v4972_v25  ;;  %v4110_v6 = vld [vmem:[%s4957_s12 + $0x220] sm:$0xff]  ;;  %v4113_v9 = vld [vmem:[%s4957_s12 + $0x238] sm:$0xff] }
 0x22e   : > { %1471 = vperm.xlu2 %4202, %v1448_v34   ;;  %v1520_v34 = vsel %vm865_vm0, %v1512_v19, 0.0  ;;  %v2653_v39 = vsel %vm865_vm0, %v2631_v55, 0.0  ;;  %v2903_v50 = vmul.f32 %v4107_v47, %v4976_v27  ;;  %v2909_v27 = vmul.f32 %v4113_v9, %v4990_v37  ;;  %v4087_v9 = vld [vmem:[%s4957_s12 + $0x168] sm:$0xff] }
 0x22f   : > { %v1813_v26 = vsel %vm865_vm0, %v1795_v2, 0.0 }
 0x230   : > { %v2913_v19 = vsel %vm865_vm0, %v2903_v50, 0.0 }
 0x231   : > { %1593 = vperm.xlu1 %4207, %v5170_v14  }
 0x236   : > { %1480 = vperm.xlu2 %4202, %v1451_v44   ;;  %v1529_v44 = vsel %vm865_vm0, %v1515_v18, 0.0 }
 0x238   : > { %v5264_v59 = vpop.permute.xlu2 %1190 }
 0x239   : > { %4210 = vset.pattern.permute.xlu1 %v5009_v53 }
 0x23e   : > { %4206 = vset.pattern.permute.xlu2 %v5052_v22 }
 0x240   : > { %v5274_v33 = vpop.permute.xlu2 %1196 }
 0x241   : > { %6593 = vst [vmem:[#allocation41_spill] sm:$0xff] %v5274_v33 }
 0x248   : > { %v5281_v55 = vpop.permute.xlu2 %1205 }
 0x249   : > { %6594 = vst [vmem:[#allocation42_spill] sm:$0xff] %v5281_v55 }
 0x254   : > { %2636 = vadd.xlane.f32.xlu0 %v2635_v17  ;;  %v1538_v17 = vsel %vm865_vm0, %v1518_v29, 0.0 }
 0x25b   : > { %1805 = vadd.xlane.f32.xlu1 %v1804_v51  ;;  %v5268_v51 = vpop.xlane.xlu1 %1527 }
 0x25c   : > { %2645 = vadd.xlane.f32.xlu0 %v2644_v8  ;;  %6592 = vst [vmem:[#allocation40_spill] sm:$0xff] %v5268_v51  ;;  %v2906_v8 = vmul.f32 %v4110_v6, %v4966_v21 }
 0x25e   : > { %v2922_v2 = vsel %vm865_vm0, %v2906_v8, 0.0 }
 0x25f   : > { %1521 = vadd.xlane.f32.xlu2 %v1520_v34 }
 0x263   : > { %1814 = vadd.xlane.f32.xlu1 %v1813_v26  ;;  %v1537_v34 = vpop.xlane.xlu1 %1536  ;;  %v2931_v26 = vsel %vm865_vm0, %v2909_v27, 0.0 }
 0x264   : > { %2654 = vadd.xlane.f32.xlu0 %v2653_v39 }
 0x267   : > { %1530 = vadd.xlane.f32.xlu2 %v1529_v44 }
 0x26b   : > { %v5285_v21 = vpop.permute.xlu1 %995 }
 0x26f   : > { %1539 = vadd.xlane.f32.xlu2 %v1538_v17  ;;  %v4084_v17 = vld [vmem:[%s4957_s12 + $0x150] sm:$0xff] }
 0x270   : > { %v2070_v50 = vmul.f32 %v4084_v17, %v4955_v16 }
 0x273   : > { %v1552_v39 = vpop.permute.xlu1 %1551 }
 0x278   : > { %2675 = vperm.xlu0 %4196, %v5251_v46   ;;  %v5288_v18 = vpop.permute.xlu2 %1465 }
 0x279   : > { %6595 = vst [vmem:[#allocation43_spill] sm:$0xff] %v5288_v18 }
 0x27c   : > { %1829 = vperm.xlu1 %4210, %v5175_v32  }
 0x283   : > { %v1570_v37 = vpop.permute.xlu1 %1569 }
 0x284   : > { %4211 = vset.pattern.permute.xlu1 %v5120_v10 }
 0x287   : > { %1587 = vperm.xlu2 %4206, %v5170_v14  }
 0x288   : > { %v5290_v44 = vpop.permute.xlu2 %1471 }
 0x289   : > { %6596 = vst [vmem:[#allocation44_spill] sm:$0xff] %v5290_v44 }
 0x28c   : > { %1847 = vperm.xlu1 %4211, %v5175_v32  }
 0x28f   : > { %4208 = vset.pattern.permute.xlu2 %v6550_v61  ;;  %v2073_v61 = vmul.f32 %v4087_v9, %v4981_v30 }
 0x290   : > { %v5296_v29 = vpop.permute.xlu2 %1480 }
 0x291   : > { %6597 = vst [vmem:[#allocation45_spill] sm:$0xff] %v5296_v29 }
 0x293   : > { %v1582_v47 = vpop.permute.xlu1 %1581 }
 0x294   : > { %4212 = vset.pattern.permute.xlu1 %v5137_v31 }
 0x29c   : > { %1859 = vperm.xlu1 %4212, %v5175_v32  }
 0x2a2   : > { %2914 = vadd.xlane.f32.xlu0 %v2913_v19  ;;  %v5301_v19 = vsub.f32 %v1537_v34, %v1582_v47  ;;  %v2091_v34 = vsel %vm865_vm0, %v2073_v61, 0.0 }
 0x2a4   : > { %4214 = vset.pattern.permute.xlu1 %v5019_v58  ;;  %v1624_v27 = vand.u32 2147483647, %v5301_v19 }
 0x2a6   : > { %v1632_v35 = vsub.f32 0.0, %v1624_v27 }
 0x2a8   : > { %v1645_v17 = vmul.f32 1.442695, %v1632_v35 }
 0x2aa   : > { %2923 = vadd.xlane.f32.xlu0 %v2922_v2  ;;  %v2082_v2 = vsel %vm865_vm0, %v2070_v50, 0.0 }
 0x2ac   : > { %1871 = vperm.xlu1 %4214, %v5175_v32  }
 0x2b2   : > { %2932 = vadd.xlane.f32.xlu0 %v2931_v26 }
 0x2b4   : > { %4217 = vset.pattern.permute.xlu1 %v5009_v53 }
 0x2c6   : > { %2953 = vperm.xlu0 %4196, %v5293_v63  }
 0x2ce   : > { %4239 = vset.pattern.permute.xlu0 %v5080_v43 }
 0x2d2   : > { %v1522_v6 = vpop.xlane.xlu2 %1521 }
 0x2d3   : > { %v1603_v8 = vsub.f32 %v1522_v6, %v1552_v39 }
 0x2d5   : > { %v1619_v26 = vand.u32 2147483647, %v1603_v8  ;;  %v1611_v18 = vmax.f32 %v1603_v8, 0.0 }
 0x2d6   : > { %2083 = vadd.xlane.f32.xlu1 %v2082_v2 }
 0x2d7   : > { %v1627_v48 = vsub.f32 0.0, %v1619_v26 }
 0x2d9   : > { %v1635_v51 = vmul.f32 1.442695, %v1627_v48 }
 0x2da   : > { %v1531_v29 = vpop.xlane.xlu2 %1530 }
 0x2db   : > { %4292 = vpow2.f32 %v1635_v51  ;;  %v1606_v16 = vsub.f32 %v1531_v29, %v1570_v37 }
 0x2dc   : > { %4294 = vpow2.f32 %v1645_v17 }
 0x2dd   : > { %v1622_v47 = vand.u32 2147483647, %v1606_v16  ;;  %v1614_v60 = vmax.f32 %v1606_v16, 0.0 }
 0x2de   : > { %2092 = vadd.xlane.f32.xlu1 %v2091_v34 }
 0x2df   : > { %v1630_v39 = vsub.f32 0.0, %v1622_v47 }
 0x2e1   : > { %v4293_v50 = vpop.eup %4292  ;;  %v1641_v6 = vmul.f32 1.442695, %v1630_v39 }
 0x2e2   : > { %v1651_v44 = vadd.f32 1.0, %v4293_v50  ;;  %v1654_v2 = vmul.f32 -0.5, %v4293_v50  ;;  %v4295_v26 = vpop.eup %4294  ;;  %v1657_v9 = vand.u32 2147483647, %v4293_v50 }
 0x2e3   : > { %4296 = vpow2.f32 %v1641_v6  ;;  %v1696_v37 = vadd.f32 1.0, %v4295_v26  ;;  %v1699_v39 = vmul.f32 -0.5, %v4295_v26 }
 0x2e4   : > { %4298 = vlog2.f32 %v1651_v44  ;;  %v1655_v30 = vadd.f32 1.0, %v1654_v2  ;;  %vm1658_vm7 = vcmp.lt.f32.partialorder %v1657_v9, 0.0004427343 }
 0x2e5   : > { %v1700_v33 = vadd.f32 1.0, %v1699_v39  ;;  %v5333_v39 = vld [vmem:[%s4800_s11 + $0x18] sm:$0xff] }
 0x2e6   : > { %v1656_v61 = vmul.f32 %v4293_v50, %v1655_v30 }
 0x2e7   : > { %v1701_v30 = vmul.f32 %v4295_v26, %v1700_v33 }
 0x2e9   : > { %v4297_v48 = vpop.eup %4296 }
 0x2ea   : > { %v4299_v27 = vpop.eup %4298  ;;  %v1678_v51 = vadd.f32 1.0, %v4297_v48  ;;  %v1681_v35 = vmul.f32 -0.5, %v4297_v48  ;;  %v1684_v44 = vand.u32 2147483647, %v4297_v48 }
 0x2eb   : > { %v1653_v29 = vmul.f32 0.6931472, %v4299_v27  ;;  %v1702_v27 = vand.u32 2147483647, %v4295_v26 }
 0x2ec   : > { %4300 = vlog2.f32 %v1678_v51  ;;  %v1682_v47 = vadd.f32 1.0, %v1681_v35  ;;  %vm1685_vm8 = vcmp.lt.f32.partialorder %v1684_v44, 0.0004427343  ;;  %v1616_v51 = vmax.f32 %v5301_v19, 0.0  ;;  %v4077_v19 = vld [vmem:[%s4957_s12 + $0x118] sm:$0xff]  ;;  %v4090_v35 = vld [vmem:[%s4957_s12 + $0x180] sm:$0xff] }
 0x2ed   : > { %v1659_v34 = vsel %vm1658_vm7, %v1656_v61, %v1653_v29  ;;  %4302 = vlog2.f32 %v1696_v37  ;;  %vm1703_vm9 = vcmp.lt.f32.partialorder %v1702_v27, 0.0004427343  ;;  %v1793_v16 = vmul.f32 %v4077_v19, %v4972_v25  ;;  %v4080_v37 = vld [vmem:[%s4957_s12 + $0x130] sm:$0xff]  ;;  %v4098_v19 = vld [vmem:[%s4957_s12 + $0x1c0] sm:$0xff] }
 0x2ee   : > { %v1723_v17 = vadd.f32 %v1659_v34, %v1611_v18  ;;  %v1683_v55 = vmul.f32 %v4297_v48, %v1682_v47  ;;  %v1796_v29 = vmul.f32 %v4080_v37, %v4995_v40  ;;  %v4093_v47 = vld [vmem:[%s4957_s12 + $0x198] sm:$0xff] }
 0x2ef   : > { %v1807_v26 = vsel %vm865_vm0, %v1793_v16, 0.0  ;;  %v2349_v25 = vmul.f32 %v5333_v39, %v4093_v47  ;;  %v4101_v47 = vld [vmem:[%s4957_s12 + $0x1d8] sm:$0xff] }
 0x2f0   : > { %1740 = vperm.xlu2 %4208, %v1723_v17   ;;  %v1816_v61 = vsel %vm865_vm0, %v1796_v29, 0.0 }
 0x2f1   : > { %v2363_v44 = vsel %vm865_vm0, %v2349_v25, 0.0 }
 0x2f2   : > { %v4301_v6 = vpop.eup %4300 }
 0x2f3   : > { %v1680_v2 = vmul.f32 0.6931472, %v4301_v6  ;;  %v4303_v15 = vpop.eup %4302  ;;  %v4096_v6 = vld [vmem:[%s4957_s12 + $0x1b0] sm:$0xff] }
 0x2f4   : > { %v1698_v18 = vmul.f32 0.6931472, %v4303_v15  ;;  %v5318_v15 = vld [vmem:[%s4800_s11] sm:$0xff] }
 0x2f5   : > { %v1686_v50 = vsel %vm1685_vm8, %v1683_v55, %v1680_v2  ;;  %v2346_v34 = vmul.f32 %v5318_v15, %v4090_v35  ;;  %v2352_v2 = vmul.f32 %v4096_v6, %v4995_v40  ;;  %v2624_v29 = vmul.f32 %v5318_v15, %v4098_v19 }
 0x2f6   : > { %v1726_v8 = vadd.f32 %v1686_v50, %v1614_v60  ;;  %v1704_v9 = vsel %vm1703_vm9, %v1701_v30, %v1698_v18  ;;  %v4074_v60 = vld [vmem:[%s4957_s12 + $0x100] sm:$0xff]  ;;  %v5344_v50 = vpop.permute.xlu1 %1593  ;;  %v6600_v18 = vmov 0  }
 0x2f7   : > { %2107 = vperm.xlu1 %4217, %v5182_v62   ;;  %v1728_v48 = vadd.f32 %v1704_v9, %v1616_v51  ;;  %v1790_v33 = vmul.f32 %v5318_v15, %v4074_v60  ;;  %v2354_v17 = vsel %vm865_vm0, %v2346_v34, 0.0  ;;  %v2372_v27 = vsel %vm865_vm0, %v2352_v2, 0.0  ;;  %6598 = vst [vmem:[#allocation46_spill] sm:$0xff] %v5344_v50 }
 0x2f8   : > { %1749 = vperm.xlu2 %4208, %v1726_v8   ;;  %v5347_v8 = vpop.xlane.xlu2 %1539 }
 0x2f9   : > { %v1798_v55 = vsel %vm865_vm0, %v1790_v33, 0.0 }
 0x2fe   : > { %v5351_v40 = vpop.xlane.xlu1 %1805 }
 0x2ff   : > { %4218 = vset.pattern.permute.xlu1 %v5014_v56  ;;  %6599 = vst [vmem:[#allocation47_spill] sm:$0xff] %v5351_v40 }
 0x300   : > { %1755 = vperm.xlu2 %4208, %v1728_v48  }
 0x306   : > { %v1815_v30 = vpop.xlane.xlu1 %1814 }
 0x307   : > { %2131 = vperm.xlu1 %4218, %v5182_v62  }
 0x308   : > { %4209 = vset.pattern.permute.xlu2 %v5014_v56 }
 0x30e   : > { %v1830_v51 = vpop.permute.xlu1 %1829 }
 0x30f   : > { %4219 = vset.pattern.permute.xlu1 %v5052_v22 }
 0x316   : > { %v1848_v60 = vpop.permute.xlu1 %1847 }
 0x317   : > { %2143 = vperm.xlu1 %4219, %v5182_v62  }
 0x31f   : > { %4222 = vset.pattern.permute.xlu1 %v5014_v56 }
 0x329   : > { %1799 = vadd.xlane.f32.xlu2 %v1798_v55  ;;  %v1860_v55 = vpop.permute.xlu1 %1859 }
 0x32a   : > { %v5365_v16 = vsub.f32 %v1815_v30, %v1860_v55 }
 0x331   : > { %1808 = vadd.xlane.f32.xlu2 %v1807_v26 }
 0x339   : > { %1817 = vadd.xlane.f32.xlu2 %v1816_v61  ;;  %v1902_v61 = vand.u32 2147483647, %v5365_v16 }
 0x33b   : > { %v1910_v25 = vsub.f32 0.0, %v1902_v61  ;;  %v5375_v61 = vld [vmem:[%s4800_s11 + $0x30] sm:$0xff] }
 0x33d   : > { %v1923_v30 = vmul.f32 1.442695, %v1910_v25 }
 0x341   : > { %2355 = vadd.xlane.f32.xlu1 %v2354_v17  ;;  %v2632_v17 = vsel %vm865_vm0, %v2624_v29, 0.0 }
 0x349   : > { %2364 = vadd.xlane.f32.xlu1 %v2363_v44 }
 0x351   : > { %2373 = vadd.xlane.f32.xlu1 %v2372_v27  ;;  %1297 = vperm.xlu2 %4209, %v5061_v24   ;;  %v5353_v24 = vpop.permute.xlu2 %1587  ;;  %v2627_v27 = vmul.f32 %v5333_v39, %v4101_v47 }
 0x353   : > { %v2641_v19 = vsel %vm865_vm0, %v2627_v27, 0.0 }
 0x359   : > { %1575 = vperm.xlu2 %4209, %v5170_v14   ;;  %v5357_v9 = vpop.permute.xlu2 %1740 }
 0x361   : > { %1853 = vperm.xlu2 %4209, %v5175_v32   ;;  %v5360_v48 = vpop.permute.xlu2 %1749 }
 0x362   : > { %6601 = vst [vmem:[#allocation48_spill] sm:$0xff] %v5360_v48 }
 0x369   : > { %4213 = vset.pattern.permute.xlu2 %v5052_v22  ;;  %v5362_v33 = vpop.permute.xlu2 %1755 }
 0x36a   : > { %2409 = vperm.xlu1 %4222, %v5221_v3   ;;  %6602 = vst [vmem:[#allocation49_spill] sm:$0xff] %v5362_v33 }
 0x371   : > { %1865 = vperm.xlu2 %4213, %v5175_v32  }
 0x372   : > { %4223 = vset.pattern.permute.xlu1 %v5052_v22 }
 0x379   : > { %4215 = vset.pattern.permute.xlu2 %v6600_v18 }
 0x37a   : > { %2421 = vperm.xlu1 %4223, %v5221_v3  }
 0x382   : > { %4227 = vset.pattern.permute.xlu1 %v5014_v56 }
 0x39c   : > { %v1800_v26 = vpop.xlane.xlu2 %1799 }
 0x39d   : > { %v1881_v37 = vsub.f32 %v1800_v26, %v1830_v51  ;;  %v4104_v26 = vld [vmem:[%s4957_s12 + $0x1f0] sm:$0xff] }
 0x39f   : > { %v1897_v35 = vand.u32 2147483647, %v1881_v37  ;;  %v1889_v40 = vmax.f32 %v1881_v37, 0.0 }
 0x3a1   : > { %v1905_v34 = vsub.f32 0.0, %v1897_v35 }
 0x3a3   : > { %v1913_v44 = vmul.f32 1.442695, %v1905_v34  ;;  %v2630_v34 = vmul.f32 %v5375_v61, %v4104_v26 }
 0x3a4   : > { %2633 = vadd.xlane.f32.xlu1 %v2632_v17  ;;  %v1809_v6 = vpop.xlane.xlu2 %1808 }
 0x3a5   : > { %4304 = vpow2.f32 %v1913_v44  ;;  %v1884_v2 = vsub.f32 %v1809_v6, %v1848_v60  ;;  %v5378_v60 = vpop.xlane.xlu0 %1524  ;;  %v2650_v25 = vsel %vm865_vm0, %v2630_v34, 0.0 }
 0x3a6   : > { %4306 = vpow2.f32 %v1923_v30 }
 0x3a7   : > { %v1900_v51 = vand.u32 2147483647, %v1884_v2 }
 0x3a9   : > { %v1908_v55 = vsub.f32 0.0, %v1900_v51 }
 0x3ab   : > { %v4305_v33 = vpop.eup %4304  ;;  %v1919_v35 = vmul.f32 1.442695, %v1908_v55 }
 0x3ac   : > { %2642 = vadd.xlane.f32.xlu1 %v2641_v19  ;;  %v1929_v29 = vadd.f32 1.0, %v4305_v33  ;;  %v1932_v17 = vmul.f32 -0.5, %v4305_v33  ;;  %v4307_v47 = vpop.eup %4306  ;;  %v1935_v6 = vand.u32 2147483647, %v4305_v33 }
 0x3ad   : > { %4308 = vpow2.f32 %v1919_v35  ;;  %v1974_v55 = vadd.f32 1.0, %v4307_v47  ;;  %v5381_v50 = vpop.xlane.xlu0 %1533  ;;  %v1977_v34 = vmul.f32 -0.5, %v4307_v47 }
 0x3ae   : > { %4310 = vlog2.f32 %v1929_v29  ;;  %v1933_v44 = vadd.f32 1.0, %v1932_v17  ;;  %vm1936_vm10 = vcmp.lt.f32.partialorder %v1935_v6, 0.0004427343  ;;  %6603 = vst [vmem:[#allocation50_spill] sm:$0xff] %v5381_v50 }
 0x3af   : > { %v1978_v53 = vadd.f32 1.0, %v1977_v34 }
 0x3b0   : > { %v1934_v35 = vmul.f32 %v4305_v33, %v1933_v44  ;;  %v1980_v33 = vand.u32 2147483647, %v4307_v47 }
 0x3b2   : > { %vm1981_vm12 = vcmp.lt.f32.partialorder %v1980_v33, 0.0004427343 }
 0x3b3   : > { %v4309_v27 = vpop.eup %4308 }
 0x3b4   : > { %v4311_v51 = vpop.eup %4310  ;;  %2651 = vadd.xlane.f32.xlu1 %v2650_v25  ;;  %v1956_v30 = vadd.f32 1.0, %v4309_v27  ;;  %v1959_v48 = vmul.f32 -0.5, %v4309_v27  ;;  %v1962_v17 = vand.u32 2147483647, %v4309_v27 }
 0x3b5   : > { %v1931_v19 = vmul.f32 0.6931472, %v4311_v51  ;;  %v1892_v51 = vmax.f32 %v1884_v2, 0.0 }
 0x3b6   : > { %4312 = vlog2.f32 %v1956_v30  ;;  %v1960_v13 = vadd.f32 1.0, %v1959_v48  ;;  %vm1963_vm11 = vcmp.lt.f32.partialorder %v1962_v17, 0.0004427343  ;;  %v1979_v30 = vmul.f32 %v4307_v47, %v1978_v53  ;;  %v4106_v17 = vld [vmem:[%s4957_s12 + $0x200] sm:$0xff] }
 0x3b7   : > { %v1937_v26 = vsel %vm1936_vm10, %v1934_v35, %v1931_v19  ;;  %4314 = vlog2.f32 %v1974_v55  ;;  %v5383_v19 = vpop.xlane.xlu0 %1542  ;;  %v2902_v33 = vmul.f32 %v5318_v15, %v4106_v17 }
 0x3b8   : > { %v2001_v29 = vadd.f32 %v1937_v26, %v1889_v40  ;;  %v1961_v25 = vmul.f32 %v4309_v27, %v1960_v13  ;;  %6604 = vst [vmem:[#allocation51_spill] sm:$0xff] %v5383_v19  ;;  %v1894_v40 = vmax.f32 %v5365_v16, 0.0  ;;  %v4085_v27 = vld [vmem:[%s4957_s12 + $0x158] sm:$0xff] }
 0x3b9   : > { %v2071_v35 = vmul.f32 %v5333_v39, %v4085_v27 }
 0x3ba   : > { %2018 = vperm.xlu2 %4215, %v2001_v29   ;;  %v4088_v29 = vld [vmem:[%s4957_s12 + $0x170] sm:$0xff] }
 0x3bb   : > { %v2085_v26 = vsel %vm865_vm0, %v2071_v35, 0.0  ;;  %v2074_v34 = vmul.f32 %v5375_v61, %v4088_v29  ;;  %v4595_v35 = vld [vmem:[%s4805_s15 + $0x1] ss:$0 sm:$0xff] }
 0x3bc   : > { %v4313_v5 = vpop.eup %4312 }
 0x3bd   : > { %v1958_v7 = vmul.f32 0.6931472, %v4313_v5  ;;  %v4315_v0 = vpop.eup %4314 }
 0x3be   : > { %v1976_v6 = vmul.f32 0.6931472, %v4315_v0 }
 0x3bf   : > { %v1964_v37 = vsel %vm1963_vm11, %v1961_v25, %v1958_v7  ;;  %v5386_v13 = vpop.xlane.xlu0 %1802  ;;  %v4082_v7 = vld [vmem:[%s4957_s12 + $0x140] sm:$0xff]  ;;  %vm903_vm11 = vcmask 130112  }
 0x3c0   : > { %v2004_v44 = vadd.f32 %v1964_v37, %v1892_v51  ;;  %v1982_v48 = vsel %vm1981_vm12, %v1979_v30, %v1976_v6  ;;  %v2068_v2 = vmul.f32 %v5318_v15, %v4082_v7  ;;  %v2094_v51 = vsel %vm865_vm0, %v2074_v34, 0.0  ;;  %v5428_v34 = vpop.xlane.xlu2 %1817 }
 0x3c1   : > { %v2006_v5 = vadd.f32 %v1982_v48, %v1894_v40  ;;  %v2910_v37 = vsel %vm865_vm0, %v2902_v33, 0.0  ;;  %v5417_v40 = vpop.permute.xlu1 %1871 }
 0x3c2   : > { %2027 = vperm.xlu2 %4215, %v2004_v44   ;;  %v2076_v47 = vsel %vm865_vm0, %v2068_v2, 0.0  ;;  %v4109_v44 = vld [vmem:[%s4957_s12 + $0x218] sm:$0xff]  ;;  %6608 = vst [vmem:[#allocation55_spill] sm:$0xff] %v5417_v40 }
 0x3c3   : > { %v2905_v30 = vmul.f32 %v5333_v39, %v4109_v44 }
 0x3c5   : > { %v2919_v48 = vsel %vm865_vm0, %v2905_v30, 0.0 }
 0x3c7   : > { %v5391_v53 = vpop.xlane.xlu0 %1811 }
 0x3c8   : > { %6605 = vst [vmem:[#allocation52_spill] sm:$0xff] %v5391_v53  ;;  %v5433_v44 = vpop.permute.xlu2 %1297 }
 0x3ca   : > { %2033 = vperm.xlu2 %4215, %v2006_v5   ;;  %v4112_v5 = vld [vmem:[%s4957_s12 + $0x230] sm:$0xff] }
 0x3cb   : > { %v2908_v7 = vmul.f32 %v5375_v61, %v4112_v5 }
 0x3cd   : > { %2687 = vperm.xlu1 %4227, %v5251_v46   ;;  %v2928_v27 = vsel %vm865_vm0, %v2908_v7, 0.0 }
 0x3cf   : > { %v5394_v0 = vpop.xlane.xlu0 %1820 }
 0x3d0   : > { %6606 = vst [vmem:[#allocation53_spill] sm:$0xff] %v5394_v0  ;;  %v5436_v7 = vpop.permute.xlu2 %1575 }
 0x3d1   : > { %6612 = vst [vmem:[#allocation59_spill] sm:$0xff] %v5436_v7 }
 0x3d2   : > { %4216 = vset.pattern.permute.xlu2 %v5080_v43 }
 0x3d5   : > { %4228 = vset.pattern.permute.xlu1 %v5052_v22 }
 0x3d7   : > { %v5398_v16 = vpop.xlane.xlu0 %2080 }
 0x3dd   : > { %2699 = vperm.xlu1 %4228, %v5251_v46  }
 0x3df   : > { %v2090_v55 = vpop.xlane.xlu0 %2089 }
 0x3e5   : > { %4232 = vset.pattern.permute.xlu1 %v5080_v43 }
 0x3e7   : > { %v5408_v25 = vpop.xlane.xlu0 %2098 }
 0x3ef   : > { %v5414_v6 = vpop.permute.xlu0 %1563 }
 0x3f0   : > { %6607 = vst [vmem:[#allocation54_spill] sm:$0xff] %v5414_v6 }
 0x3f3   : > { %2077 = vadd.xlane.f32.xlu2 %v2076_v47  ;;  %v2084_v47 = vpop.xlane.xlu1 %2083 }
 0x3f7   : > { %v5422_v2 = vpop.permute.xlu0 %1841 }
 0x3f8   : > { %6609 = vst [vmem:[#allocation56_spill] sm:$0xff] %v5422_v2 }
 0x3fb   : > { %2086 = vadd.xlane.f32.xlu2 %v2085_v26  ;;  %v5426_v26 = vpop.xlane.xlu1 %2092 }
 0x3fc   : > { %6610 = vst [vmem:[#allocation57_spill] sm:$0xff] %v5426_v26 }
 0x3ff   : > { %v2120_v29 = vpop.permute.xlu0 %2119 }
 0x400   : > { %v2161_v17 = vsub.f32 %v2084_v47, %v2120_v29 }
 0x402   : > { %v2169_v40 = vmax.f32 %v2161_v17, 0.0 }
 0x403   : > { %2095 = vadd.xlane.f32.xlu2 %v2094_v51  ;;  %v2177_v51 = vand.u32 2147483647, %v2161_v17  ;;  %v5431_v33 = vpop.permute.xlu1 %2107 }
 0x404   : > { %6611 = vst [vmem:[#allocation58_spill] sm:$0xff] %v5431_v33 }
 0x407   : > { %2911 = vadd.xlane.f32.xlu1 %v2910_v37  ;;  %v2185_v37 = vsub.f32 0.0, %v2177_v51  ;;  %v5440_v51 = vpop.permute.xlu2 %1853 }
 0x408   : > { %6613 = vst [vmem:[#allocation60_spill] sm:$0xff] %v5440_v51 }
 0x409   : > { %v2195_v30 = vmul.f32 1.442695, %v2185_v37 }
 0x40b   : > { %4316 = vpow2.f32 %v2195_v30 }
 0x40f   : > { %2920 = vadd.xlane.f32.xlu1 %v2919_v48  ;;  %v2132_v48 = vpop.permute.xlu1 %2131 }
 0x410   : > { %v2163_v5 = vsub.f32 %v2090_v55, %v2132_v48  ;;  %v5445_v48 = vpop.permute.xlu2 %1865 }
 0x411   : > { %v4317_v29 = vpop.eup %4316 }
 0x412   : > { %v2228_v55 = vmul.f32 -0.5, %v4317_v29 }
 0x417   : > { %2929 = vadd.xlane.f32.xlu1 %v2928_v27  ;;  %v2179_v27 = vand.u32 2147483647, %v2163_v5 }
 0x419   : > { %v2187_v47 = vsub.f32 0.0, %v2179_v27  ;;  %v2231_v27 = vand.u32 2147483647, %v4317_v29 }
 0x41b   : > { %1001 = vperm.xlu2 %4216, %v4595_v35   ;;  %v2199_v35 = vmul.f32 1.442695, %v2187_v47  ;;  %vm2232_vm13 = vcmp.lt.f32.partialorder %v2231_v27, 0.0004427343 }
 0x41d   : > { %4318 = vpow2.f32 %v2199_v35 }
 0x423   : > { %1557 = vperm.xlu2 %4216, %v5170_v14   ;;  %v2225_v14 = vadd.f32 1.0, %v4317_v29 }
 0x425   : > { %4320 = vlog2.f32 %v2225_v14 }
 0x42b   : > { %1835 = vperm.xlu2 %4216, %v5175_v32   ;;  %v4319_v32 = vpop.eup %4318 }
 0x42c   : > { %v2243_v37 = vadd.f32 1.0, %v4319_v32  ;;  %v4321_v30 = vpop.eup %4320  ;;  %v2246_v47 = vmul.f32 -0.5, %v4319_v32  ;;  %v2249_v33 = vand.u32 2147483647, %v4319_v32 }
 0x42d   : > { %v2227_v35 = vmul.f32 0.6931472, %v4321_v30 }
 0x42e   : > { %4322 = vlog2.f32 %v2243_v37  ;;  %vm2250_vm14 = vcmp.lt.f32.partialorder %v2249_v33, 0.0004427343 }
 0x430   : > { %2391 = vperm.xlu1 %4232, %v5221_v3   ;;  %v2229_v3 = vadd.f32 1.0, %v2228_v55  ;;  %v5449_v55 = vpop.permute.xlu2 %2018 }
 0x432   : > { %v2230_v26 = vmul.f32 %v4317_v29, %v2229_v3  ;;  %v4114_v29 = vld [vmem:[%s4957_s12 + $0x240] sm:$0xff] }
 0x433   : > { %2113 = vperm.xlu2 %4216, %v5182_v62   ;;  %v3180_v3 = vmul.f32 %v5318_v15, %v4114_v29 }
 0x434   : > { %v4323_v14 = vpop.eup %4322  ;;  %v2233_v0 = vsel %vm2232_vm13, %v2230_v26, %v2227_v35  ;;  %v5474_v35 = vld [vmem:[%s4805_s15 + $0x9] ss:$0 sm:$0xff] }
 0x435   : > { %v2245_v53 = vmul.f32 0.6931472, %v4323_v14  ;;  %v2281_v51 = vadd.f32 %v2233_v0, %v2169_v40  ;;  %v3188_v26 = vsel %vm865_vm0, %v3180_v3, 0.0  ;;  %v4117_v0 = vld [vmem:[%s4957_s12 + $0x258] sm:$0xff] }
 0x436   : > { %3189 = vadd.xlane.f32.xlu0 %v3188_v26  ;;  %v3183_v40 = vmul.f32 %v5333_v39, %v4117_v0 }
 0x438   : > { %2669 = vperm.xlu1 %4232, %v5251_v46   ;;  %v2247_v46 = vadd.f32 1.0, %v2246_v47  ;;  %v3197_v33 = vsel %vm865_vm0, %v3183_v40, 0.0  ;;  %v4596_v40 = vld [vmem:[%s4800_s11 + $0x8] sm:$0xff] }
 0x43a   : > { %v2248_v37 = vmul.f32 %v4319_v32, %v2247_v46  ;;  %v5456_v32 = vpop.permute.xlu2 %2027  ;;  %v5476_v46 = vpop.xlane.xlu0 %2358 }
 0x43b   : > { %4220 = vset.pattern.permute.xlu2 %v5019_v58  ;;  %6614 = vst [vmem:[#allocation61_spill] sm:$0xff] %v5456_v32 }
 0x43c   : > { %v2251_v30 = vsel %vm2250_vm14, %v2248_v37, %v2245_v53  ;;  %v4120_v53 = vld [vmem:[%s4957_s12 + $0x270] sm:$0xff] }
 0x43d   : > { %v3186_v15 = vmul.f32 %v5375_v61, %v4120_v53  ;;  %v5481_v61 = vsub.f32 %v5156_v49, %v5185_v12  ;;  %v4115_v49 = vld [vmem:[%s4957_s12 + $0x248] sm:$0xff] }
 0x43e   : > { %3198 = vadd.xlane.f32.xlu0 %v3197_v33  ;;  %v3181_v33 = vmul.f32 %v4596_v40, %v4115_v49  ;;  %v4597_v49 = vld [vmem:[%s4800_s11 + $0x20] sm:$0xff] }
 0x43f   : > { %v1069_v14 = vand.u32 2147483647, %v5481_v61 }
 0x440   : > { %2947 = vperm.xlu1 %4232, %v5293_v63  }
 0x441   : > { %v1077_v37 = vsub.f32 0.0, %v1069_v14  ;;  %v4118_v14 = vld [vmem:[%s4957_s12 + $0x260] sm:$0xff] }
 0x442   : > { %v5491_v29 = vpop.xlane.xlu0 %2367 }
 0x443   : > { %2149 = vperm.xlu2 %4220, %v5182_v62   ;;  %v2171_v62 = vmax.f32 %v2163_v5, 0.0  ;;  %v5464_v5 = vpop.permute.xlu2 %2033  ;;  %v1091_v12 = vmul.f32 1.442695, %v1077_v37 }
 0x444   : > { %6615 = vst [vmem:[#allocation62_spill] sm:$0xff] %v5464_v5 }
 0x445   : > { %v2283_v17 = vadd.f32 %v2251_v30, %v2171_v62  ;;  %v5489_v62 = vsub.f32 %v5194_v11, %v5433_v44  ;;  %4324 = vpow2.f32 %v1091_v12  ;;  %v3184_v12 = vmul.f32 %v4597_v49, %v4118_v14 }
 0x447   : > { %v1345_v26 = vand.u32 2147483647, %v5489_v62 }
 0x448   : > { %4233 = vset.pattern.permute.xlu1 %v5014_v56 }
 0x449   : > { %v1353_v11 = vsub.f32 0.0, %v1345_v26  ;;  %v5509_v26 = vpop.permute.xlu1 %2143 }
 0x44b   : > { %4221 = vset.pattern.permute.xlu2 %v6600_v18  ;;  %v1365_v37 = vmul.f32 1.442695, %v1353_v11 }
 0x44c   : > { %2302 = vperm.xlu2 %4221, %v2281_v51   ;;  %v3206_v51 = vsel %vm865_vm0, %v3186_v15, 0.0 }
 0x44d   : > { %3207 = vadd.xlane.f32.xlu0 %v3206_v51  ;;  %v5504_v51 = vpop.xlane.xlu0 %2376 }
 0x450   : > { %2965 = vperm.xlu1 %4233, %v5293_v63  }
 0x454   : > { %2308 = vperm.xlu2 %4221, %v2283_v17  }
 0x455   : > { %v5518_v32 = vpop.permute.xlu0 %2397 }
 0x458   : > { %4235 = vset.pattern.permute.xlu1 %v5052_v22 }
 0x460   : > { %2977 = vperm.xlu1 %4235, %v5293_v63  }
 0x461   : > { %3225 = vperm.xlu0 %4239, %v5474_v35  }
 0x466   : > { %v5468_v27 = vpop.xlane.xlu2 %2077 }
 0x467   : > { %6616 = vst [vmem:[#allocation63_spill] sm:$0xff] %v5468_v27  ;;  %v5523_v27 = vpop.xlane.xlu1 %2355 }
 0x468   : > { %4243 = vset.pattern.permute.xlu1 %v5137_v31  ;;  %6618 = vst [vmem:[#allocation65_spill] sm:$0xff] %v5523_v27 }
 0x469   : > { %4240 = vset.pattern.permute.xlu0 %v6600_v18 }
 0x46e   : > { %v5471_v47 = vpop.xlane.xlu2 %2086 }
 0x46f   : > { %6617 = vst [vmem:[#allocation64_spill] sm:$0xff] %v5471_v47 }
 0x476   : > { %v5483_v63 = vpop.xlane.xlu2 %2095 }
 0x47e   : > { %v1002_v30 = vpop.permute.xlu2 %1001 }
 0x47f   : > { %v5494_v3 = vsub.f32 %v5106_v1, %v1002_v30  ;;  %v3191_v1 = vsel %vm865_vm0, %v3181_v33, 0.0 }
 0x481   : > { %v1064_v17 = vand.u32 2147483647, %v5494_v3 }
 0x483   : > { %v1072_v0 = vsub.f32 0.0, %v1064_v17  ;;  %v4325_v17 = vpop.eup %4324 }
 0x484   : > { %v1149_v11 = vadd.f32 1.0, %v4325_v17  ;;  %v1155_v27 = vand.u32 2147483647, %v4325_v17 }
 0x485   : > { %v1081_v44 = vmul.f32 1.442695, %v1072_v0 }
 0x486   : > { %v1558_v53 = vpop.permute.xlu2 %1557  ;;  %vm1156_vm1 = vcmp.lt.f32.partialorder %v1155_v27, 0.0004427343 }
 0x487   : > { %4326 = vpow2.f32 %v1081_v44  ;;  %v5501_v15 = vsub.f32 %v5378_v60, %v1558_v53  ;;  %v5513_v60 = vsub.f32 %v5347_v8, %v5353_v24  ;;  %v3200_v53 = vsel %vm865_vm0, %v3184_v12, 0.0  ;;  %v4598_v24 = vld [vmem:[%s4800_s11 + $0x38] sm:$0xff] }
 0x488   : > { %4328 = vpow2.f32 %v1365_v37 }
 0x489   : > { %v1620_v30 = vand.u32 2147483647, %v5501_v15  ;;  %v1625_v14 = vand.u32 2147483647, %v5513_v60 }
 0x48a   : > { %3192 = vadd.xlane.f32.xlu1 %v3191_v1  ;;  %v4121_v1 = vld [vmem:[%s4957_s12 + $0x278] sm:$0xff] }
 0x48b   : > { %v1628_v40 = vsub.f32 0.0, %v1620_v30  ;;  %v3187_v37 = vmul.f32 %v4598_v24, %v4121_v1  ;;  %v1633_v2 = vsub.f32 0.0, %v1625_v14 }
 0x48d   : > { %v4327_v0 = vpop.eup %4326  ;;  %v1637_v49 = vmul.f32 1.442695, %v1628_v40  ;;  %v1647_v1 = vmul.f32 1.442695, %v1633_v2  ;;  %v5539_v2 = vpop.xlane.xlu1 %2364 }
 0x48e   : > { %v1836_v33 = vpop.permute.xlu2 %1835  ;;  %v1104_v44 = vadd.f32 1.0, %v4327_v0  ;;  %v1107_v5 = vmul.f32 -0.5, %v4327_v0  ;;  %v5520_v8 = vpop.eup %4328  ;;  %v1110_v47 = vand.u32 2147483647, %v4327_v0  ;;  %6619 = vst [vmem:[#allocation66_spill] sm:$0xff] %v5539_v2 }
 0x48f   : > { %v5526_v12 = vsub.f32 %v5386_v13, %v1836_v33  ;;  %v1409_v50 = vadd.f32 1.0, %v5520_v8  ;;  %v5532_v13 = vpop.xlane.xlu0 %2636 }
 0x490   : > { %4330 = vlog2.f32 %v1104_v44  ;;  %v1108_v30 = vadd.f32 1.0, %v1107_v5  ;;  %v1152_v44 = vmul.f32 -0.5, %v4325_v17  ;;  %v1056_v5 = vmax.f32 %v5494_v3, 0.0 }
 0x491   : > { %4332 = vlog2.f32 %v1149_v11  ;;  %v3209_v11 = vsel %vm865_vm0, %v3187_v37, 0.0  ;;  %vm1111_vm15 = vcmp.lt.f32.partialorder %v1110_v47, 0.0004427343  ;;  %v1898_v14 = vand.u32 2147483647, %v5526_v12 }
 0x492   : > { %3201 = vadd.xlane.f32.xlu1 %v3200_v53  ;;  %4334 = vpow2.f32 %v1637_v49  ;;  %v1109_v7 = vmul.f32 %v4327_v0, %v1108_v30  ;;  %v1153_v24 = vadd.f32 1.0, %v1152_v44  ;;  %v1412_v47 = vmul.f32 -0.5, %v5520_v8 }
 0x493   : > { %4336 = vlog2.f32 %v1409_v50  ;;  %v1061_v44 = vmax.f32 %v5481_v61, 0.0 }
 0x494   : > { %4338 = vpow2.f32 %v1647_v1  ;;  %v1154_v3 = vmul.f32 %v4325_v17, %v1153_v24  ;;  %v1415_v1 = vand.u32 2147483647, %v5520_v8 }
 0x495   : > { %v5551_v61 = vpop.xlane.xlu1 %2373 }
 0x496   : > { %v4331_v19 = vpop.eup %4330  ;;  %v2114_v40 = vpop.permute.xlu2 %2113  ;;  %vm1416_vm2 = vcmp.lt.f32.partialorder %v1415_v1, 0.0004427343 }
 0x497   : > { %v1106_v53 = vmul.f32 0.6931472, %v4331_v19  ;;  %v4333_v6 = vpop.eup %4332  ;;  %v5536_v19 = vsub.f32 %v5428_v34, %v5445_v48  ;;  %v1413_v48 = vadd.f32 1.0, %v1412_v47  ;;  %v5554_v24 = vsub.f32 %v5398_v16, %v2114_v40 }
 0x498   : > { %v4335_v43 = vpop.eup %4334  ;;  %v1151_v22 = vmul.f32 0.6931472, %v4333_v6 }
 0x499   : > { %v1112_v49 = vsel %vm1111_vm15, %v1109_v7, %v1106_v53  ;;  %v1906_v7 = vsub.f32 0.0, %v1898_v14  ;;  %v1660_v37 = vadd.f32 1.0, %v4335_v43  ;;  %v4337_v6 = vpop.eup %4336  ;;  %v1903_v34 = vand.u32 2147483647, %v5536_v19 }
 0x49a   : > { %3210 = vadd.xlane.f32.xlu1 %v3209_v11  ;;  %v1168_v33 = vadd.f32 %v1112_v49, %v1056_v5  ;;  %v1157_v50 = vsel %vm1156_vm1, %v1154_v3, %v1151_v22  ;;  %v4339_v17 = vpop.eup %4338  ;;  %v1411_v14 = vmul.f32 0.6931472, %v4337_v6  ;;  %v5548_v49 = vpop.xlane.xlu0 %2645  ;;  %v1414_v22 = vmul.f32 %v5520_v8, %v1413_v48 }
 0x49b   : > { %v1915_v11 = vmul.f32 1.442695, %v1906_v7  ;;  %v1173_v5 = vadd.f32 %v1157_v50, %v1061_v44  ;;  %4340 = vlog2.f32 %v1660_v37  ;;  %v1663_v47 = vmul.f32 -0.5, %v4335_v43 }
 0x49c   : > { %1187 = vperm.xlu0 %4240, %v1168_v33   ;;  %v1705_v7 = vadd.f32 1.0, %v4339_v17  ;;  %v1417_v3 = vsel %vm1416_vm2, %v1414_v22, %v1411_v14  ;;  %v1337_v37 = vmax.f32 %v5489_v62, 0.0  ;;  %v2176_v6 = vand.u32 2147483647, %v5554_v24 }
 0x49d   : > { %4342 = vpow2.f32 %v1915_v11  ;;  %v1664_v44 = vadd.f32 1.0, %v1663_v47  ;;  %v1708_v40 = vmul.f32 -0.5, %v4339_v17  ;;  %v5560_v11 = vpop.permute.xlu1 %2409 }
 0x49e   : > { %v2150_v0 = vpop.permute.xlu2 %2149  ;;  %v1449_v8 = vadd.f32 %v1417_v3, %v1337_v37  ;;  %v2184_v62 = vsub.f32 0.0, %v2176_v6  ;;  %v1612_v3 = vmax.f32 %v5501_v15, 0.0 }
 0x49f   : > { %v5542_v30 = vsub.f32 %v5408_v25, %v2150_v0  ;;  %v1911_v25 = vsub.f32 0.0, %v1903_v34  ;;  %v1666_v34 = vand.u32 2147483647, %v4335_v43  ;;  %v1665_v1 = vmul.f32 %v4335_v43, %v1664_v44 }
 0x4a1   : > { %v2182_v53 = vand.u32 2147483647, %v5542_v30  ;;  %v4341_v0 = vpop.eup %4340  ;;  %v1925_v50 = vmul.f32 1.442695, %v1911_v25  ;;  %vm1667_vm3 = vcmp.lt.f32.partialorder %v1666_v34, 0.0004427343 }
 0x4a2   : > { %v1662_v16 = vmul.f32 0.6931472, %v4341_v0  ;;  %v1711_v0 = vand.u32 2147483647, %v4339_v17 }
 0x4a3   : > { %v2190_v27 = vsub.f32 0.0, %v2182_v53  ;;  %v5558_v48 = vpop.eup %4342 }
 0x4a4   : > { %1202 = vperm.xlu0 %4240, %v1173_v5   ;;  %v5564_v5 = vsub.f32 %v5483_v63, %v5509_v26  ;;  %v1938_v25 = vadd.f32 1.0, %v5558_v48  ;;  %v1668_v22 = vsel %vm1667_vm3, %v1665_v1, %v1662_v16  ;;  %v2193_v63 = vmul.f32 1.442695, %v2184_v62 }
 0x4a5   : > { %v2205_v33 = vmul.f32 1.442695, %v2190_v27  ;;  %v5566_v27 = vpop.xlane.xlu0 %2654  ;;  %v1724_v26 = vadd.f32 %v1668_v22, %v1612_v3  ;;  %vm5572_vm4 = vcmp.lt.f32.partialorder %v1711_v0, 0.0004427343  ;;  %v5576_v15 = vpop.permute.xlu1 %2421  ;;  %v1617_v1 = vmax.f32 %v5513_v60, 0.0 }
 0x4a6   : > { %v2181_v37 = vand.u32 2147483647, %v5564_v5  ;;  %v1944_v2 = vand.u32 2147483647, %v5558_v48 }
 0x4a7   : > { %4344 = vpow2.f32 %v2205_v33  ;;  %v1709_v33 = vadd.f32 1.0, %v1708_v40  ;;  %v1941_v40 = vmul.f32 -0.5, %v5558_v48 }
 0x4a8   : > { %4346 = vlog2.f32 %v1705_v7  ;;  %v2189_v16 = vsub.f32 0.0, %v2181_v37  ;;  %vm1945_vm6 = vcmp.lt.f32.partialorder %v1944_v2, 0.0004427343 }
 0x4a9   : > { %4348 = vpow2.f32 %v1925_v50  ;;  %v1710_v6 = vmul.f32 %v4339_v17, %v1709_v33  ;;  %v1942_v37 = vadd.f32 1.0, %v1941_v40 }
 0x4aa   : > { %v2203_v3 = vmul.f32 1.442695, %v2189_v16 }
 0x4ac   : > { %1474 = vperm.xlu0 %4240, %v1449_v8  }
 0x4ad   : > { %v4345_v53 = vpop.eup %4344 }
 0x4ae   : > { %v2270_v14 = vadd.f32 1.0, %v4345_v53  ;;  %v2273_v47 = vmul.f32 -0.5, %v4345_v53  ;;  %v4347_v7 = vpop.eup %4346  ;;  %v2276_v34 = vand.u32 2147483647, %v4345_v53 }
 0x4af   : > { %v4349_v43 = vpop.eup %4348  ;;  %v1707_v50 = vmul.f32 0.6931472, %v4347_v7  ;;  %v2174_v7 = vmax.f32 %v5542_v30, 0.0  ;;  %v1943_v30 = vmul.f32 %v5558_v48, %v1942_v37 }
 0x4b0   : > { %4350 = vlog2.f32 %v2270_v14  ;;  %v2274_v44 = vadd.f32 1.0, %v2273_v47  ;;  %v1983_v14 = vadd.f32 1.0, %v4349_v43  ;;  %v5582_v47 = vpop.permute.xlu0 %2675  ;;  %vm2277_vm5 = vcmp.lt.f32.partialorder %v2276_v34, 0.0004427343 }
 0x4b1   : > { %4352 = vlog2.f32 %v1938_v25  ;;  %v1713_v17 = vsel %vm5572_vm4, %v1710_v6, %v1707_v50  ;;  %v1986_v6 = vmul.f32 -0.5, %v4349_v43  ;;  %vm907_vm4 = vcmask 195712  }
 0x4b2   : > { %4354 = vpow2.f32 %v2193_v63  ;;  %v2275_v22 = vmul.f32 %v4345_v53, %v2274_v44  ;;  %v1729_v63 = vadd.f32 %v1713_v17, %v1617_v1  ;;  %v5587_v53 = vpop.xlane.xlu1 %2633  ;;  %v1989_v1 = vand.u32 2147483647, %v4349_v43 }
 0x4b3   : > { %3249 = vperm.xlu1 %4243, %v5474_v35   ;;  %4356 = vlog2.f32 %v1983_v14  ;;  %6622 = vst [vmem:[#allocation67_spill] sm:$0xff] %v5587_v53  ;;  %v1987_v34 = vadd.f32 1.0, %v1986_v6 }
 0x4b4   : > { %1743 = vperm.xlu0 %4240, %v1724_v26   ;;  %4358 = vpow2.f32 %v2203_v3  ;;  %vm1990_vm7 = vcmp.lt.f32.partialorder %v1989_v1, 0.0004427343 }
 0x4b6   : > { %v4351_v62 = vpop.eup %4350 }
 0x4b7   : > { %v2272_v25 = vmul.f32 0.6931472, %v4351_v62  ;;  %v4353_v33 = vpop.eup %4352  ;;  %v1890_v62 = vmax.f32 %v5526_v12, 0.0 }
 0x4b8   : > { %v4355_v60 = vpop.eup %4354  ;;  %v1940_v50 = vmul.f32 0.6931472, %v4353_v33  ;;  %v5590_v40 = vpop.xlane.xlu0 %2914  ;;  %v1895_v33 = vmax.f32 %v5536_v19, 0.0 }
 0x4b9   : > { %v2278_v0 = vsel %vm2277_vm5, %v2275_v22, %v2272_v25  ;;  %v2216_v44 = vadd.f32 1.0, %v4355_v60  ;;  %v4357_v16 = vpop.eup %4356  ;;  %6623 = vst [vmem:[#allocation68_spill] sm:$0xff] %v5590_v40  ;;  %v1988_v22 = vmul.f32 %v4349_v43, %v1987_v34  ;;  %v2219_v2 = vmul.f32 -0.5, %v4355_v60 }
 0x4ba   : > { %v2286_v26 = vadd.f32 %v2278_v0, %v2174_v7  ;;  %v1946_v8 = vsel %vm1945_vm6, %v1943_v30, %v1940_v50  ;;  %v4359_v17 = vpop.eup %4358  ;;  %v1985_v25 = vmul.f32 0.6931472, %v4357_v16  ;;  %v5595_v48 = vpop.xlane.xlu1 %2642 }
 0x4bb   : > { %4245 = vset.pattern.permute.xlu1 %v5019_v58  ;;  %v2002_v14 = vadd.f32 %v1946_v8, %v1890_v62  ;;  %4360 = vlog2.f32 %v2216_v44  ;;  %6624 = vst [vmem:[#allocation69_spill] sm:$0xff] %v5595_v48  ;;  %v2261_v7 = vadd.f32 1.0, %v4359_v17  ;;  %v2220_v0 = vadd.f32 1.0, %v2219_v2 }
 0x4bc   : > { %1758 = vperm.xlu0 %4240, %v1729_v63   ;;  %2317 = vperm.xlu2 %4221, %v2286_v26   ;;  %v1991_v3 = vsel %vm1990_vm7, %v1988_v22, %v1985_v25  ;;  %v2222_v26 = vand.u32 2147483647, %v4355_v60  ;;  %v2264_v6 = vmul.f32 -0.5, %v4359_v17  ;;  %v2168_v8 = vmax.f32 %v5554_v24, 0.0  ;;  %v4092_v24 = vld [vmem:[%s4957_s12 + $0x190] sm:$0xff] }
 0x4bd   : > { %v2007_v63 = vadd.f32 %v1991_v3, %v1895_v33  ;;  %4362 = vlog2.f32 %v2261_v7  ;;  %v2221_v43 = vmul.f32 %v4355_v60, %v2220_v0  ;;  %v2267_v62 = vand.u32 2147483647, %v4359_v17  ;;  %v5615_v3 = vld [vmem:[%s4800_s11 + $0x10] sm:$0xff] }
 0x4be   : > { %vm2223_vm8 = vcmp.lt.f32.partialorder %v2222_v26, 0.0004427343  ;;  %v2265_v34 = vadd.f32 1.0, %v2264_v6  ;;  %v2173_v22 = vmax.f32 %v5564_v5, 0.0  ;;  %v4124_v0 = vld [vmem:[%s4957_s12 + $0x290] sm:$0xff] }
 0x4bf   : > { %vm2268_vm9 = vcmp.lt.f32.partialorder %v2267_v62, 0.0004427343  ;;  %v3460_v5 = vmul.f32 %v5615_v3, %v4124_v0  ;;  %v5647_v0 = vld [vmem:[%s4805_s15 + $0x6] ss:$0 sm:$0xff] }
 0x4c0   : > { %v5598_v37 = vpop.xlane.xlu0 %2923 }
 0x4c1   : > { %v4361_v12 = vpop.eup %4360 }
 0x4c2   : > { %v2218_v50 = vmul.f32 0.6931472, %v4361_v12  ;;  %v5601_v30 = vpop.xlane.xlu1 %2651  ;;  %v2348_v12 = vmul.f32 %v5615_v3, %v4092_v24 }
 0x4c3   : > { %3261 = vperm.xlu1 %4245, %v5474_v35   ;;  %v4363_v44 = vpop.eup %4362 }
 0x4c4   : > { %2021 = vperm.xlu0 %4240, %v2002_v14   ;;  %4224 = vset.pattern.permute.xlu2 %v5019_v58  ;;  %v2224_v19 = vsel %vm2223_vm8, %v2221_v43, %v2218_v50  ;;  %v2263_v1 = vmul.f32 0.6931472, %v4363_v44  ;;  %v5625_v50 = vld [vmem:[%s4800_s11 + $0x28] sm:$0xff] }
 0x4c5   : > { %v2280_v16 = vadd.f32 %v2224_v19, %v2168_v8  ;;  %v3472_v19 = vsel %vm865_vm0, %v3460_v5, 0.0  ;;  %v4125_v8 = vld [vmem:[%s4957_s12 + $0x298] sm:$0xff]  ;;  %v6632_v5 = vlaneseq }
 0x4c8   : > { %v5604_v14 = vpop.xlane.xlu0 %2932 }
 0x4ca   : > { %v5606_v60 = vpop.permute.xlu1 %2687 }
 0x4cb   : > { %4250 = vset.pattern.permute.xlu1 %v5055_v23  ;;  %v2266_v23 = vmul.f32 %v4359_v17, %v2265_v34  ;;  %v2360_v17 = vsel %vm865_vm0, %v2348_v12, 0.0  ;;  %v3461_v34 = vmul.f32 %v5333_v39, %v4125_v8 }
 0x4cc   : > { %2036 = vperm.xlu0 %4240, %v2007_v63   ;;  %v4095_v63 = vld [vmem:[%s4957_s12 + $0x1a8] sm:$0xff] }
 0x4cd   : > { %v2269_v25 = vsel %vm2268_vm9, %v2266_v23, %v2263_v1  ;;  %v2351_v43 = vmul.f32 %v5625_v50, %v4095_v63  ;;  %v3475_v1 = vsel %vm865_vm0, %v3461_v34, 0.0  ;;  %v2443_v63 = vsub.f32 %v5551_v61, %v5576_v15  ;;  %v4267_v61 = vld [vmem:[%s4805_s15 + $0xa] ss:$0 sm:$0xff] }
 0x4ce   : > { %v2285_v2 = vadd.f32 %v2269_v25, %v2173_v22 }
 0x4cf   : > { %v2369_v44 = vsel %vm865_vm0, %v2351_v43, 0.0  ;;  %v5653_v43 = vand.u32 127, %v6632_v5 }
 0x4d0   : > { %v5612_v7 = vpop.permute.xlu0 %2953 }
 0x4d1   : > { %v5673_v53 = vadd.s32 4294967264, %v5653_v43 }
 0x4d2   : > { %v5610_v33 = vpop.permute.xlu1 %2699 }
 0x4d4   : > { %2299 = vperm.xlu0 %4240, %v2280_v16  }
 0x4d8   : > { %v5628_v6 = vpop.xlane.xlu0 %3189 }
 0x4d9   : > { %6626 = vst [vmem:[#allocation71_spill] sm:$0xff] %v5628_v6 }
 0x4da   : > { %v5621_v26 = vpop.xlane.xlu1 %2911 }
 0x4db   : > { %6625 = vst [vmem:[#allocation70_spill] sm:$0xff] %v5621_v26 }
 0x4dc   : > { %2314 = vperm.xlu0 %4240, %v2285_v2  }
 0x4e0   : > { %v5636_v62 = vpop.xlane.xlu0 %3198 }
 0x4e1   : > { %6628 = vst [vmem:[#allocation73_spill] sm:$0xff] %v5636_v62 }
 0x4e2   : > { %v5634_v16 = vpop.xlane.xlu1 %2920 }
 0x4e3   : > { %6627 = vst [vmem:[#allocation72_spill] sm:$0xff] %v5634_v16 }
 0x4e5   : > { %2361 = vadd.xlane.f32.xlu2 %v2360_v17 }
 0x4e8   : > { %v5641_v25 = vpop.xlane.xlu0 %3207 }
 0x4e9   : > { %6630 = vst [vmem:[#allocation75_spill] sm:$0xff] %v5641_v25 }
 0x4ea   : > { %v5639_v23 = vpop.xlane.xlu1 %2929 }
 0x4eb   : > { %6629 = vst [vmem:[#allocation74_spill] sm:$0xff] %v5639_v23 }
 0x4ed   : > { %3473 = vadd.xlane.f32.xlu1 %v3472_v19  ;;  %2370 = vadd.xlane.f32.xlu2 %v2369_v44  ;;  %v2459_v44 = vand.u32 2147483647, %v2443_v63 }
 0x4f0   : > { %v5644_v17 = vpop.permute.xlu0 %3225 }
 0x4f1   : > { %6631 = vst [vmem:[#allocation76_spill] sm:$0xff] %v5644_v17 }
 0x4f2   : > { %v2392_v22 = vpop.permute.xlu1 %2391 }
 0x4f3   : > { %v2438_v2 = vsub.f32 %v5476_v46, %v2392_v22  ;;  %v5656_v46 = vadd.s32 4294967288, %v5653_v43  ;;  %v2467_v22 = vsub.f32 0.0, %v2459_v44 }
 0x4f5   : > { %3476 = vadd.xlane.f32.xlu1 %v3475_v1  ;;  %v2454_v24 = vand.u32 2147483647, %v2438_v2  ;;  %v2446_v16 = vmax.f32 %v2438_v2, 0.0 }
 0x4f7   : > { %v2462_v12 = vsub.f32 0.0, %v2454_v24  ;;  %v5666_v24 = vadd.s32 4294967248, %v5653_v43 }
 0x4f9   : > { %v2471_v39 = vmul.f32 1.442695, %v2462_v12  ;;  %v2481_v12 = vmul.f32 1.442695, %v2467_v22 }
 0x4fb   : > { %4364 = vpow2.f32 %v2471_v39 }
 0x501   : > { %v4365_v19 = vpop.eup %4364 }
 0x502   : > { %v2494_v1 = vadd.f32 1.0, %v4365_v19  ;;  %v2497_v15 = vmul.f32 -0.5, %v4365_v19  ;;  %v2500_v40 = vand.u32 2147483647, %v4365_v19 }
 0x504   : > { %4366 = vlog2.f32 %v2494_v1  ;;  %v2498_v5 = vadd.f32 1.0, %v2497_v15  ;;  %vm2501_vm10 = vcmp.lt.f32.partialorder %v2500_v40, 0.0004427343  ;;  %v1763_v40 = vperm.slane %v5357_v9, %v5653_v43 }
 0x505   : > { %2427 = vperm.xlu2 %4224, %v5647_v0   ;;  %4368 = vpow2.f32 %v2481_v12 }
 0x506   : > { %v2499_v48 = vmul.f32 %v4365_v19, %v2498_v5  ;;  %v2451_v5 = vmax.f32 %v2443_v63, 0.0 }
 0x50a   : > { %v4367_v23 = vpop.eup %4366 }
 0x50b   : > { %v2496_v34 = vmul.f32 0.6931472, %v4367_v23  ;;  %v4369_v15 = vpop.eup %4368 }
 0x50c   : > { %v2539_v2 = vadd.f32 1.0, %v4369_v15 }
 0x50d   : > { %4225 = vset.pattern.permute.xlu2 %v6600_v18  ;;  %v2502_v44 = vsel %vm2501_vm10, %v2499_v48, %v2496_v34 }
 0x50e   : > { %3231 = vperm.xlu1 %4250, %v5474_v35   ;;  %v5660_v8 = vpop.permute.xlu0 %1187  ;;  %v2558_v1 = vadd.f32 %v2502_v44, %v2446_v16  ;;  %4370 = vlog2.f32 %v2539_v2  ;;  %v2542_v16 = vmul.f32 -0.5, %v4369_v15  ;;  %v2545_v44 = vand.u32 2147483647, %v4369_v15 }
 0x510   : > { %2577 = vperm.xlu0 %4240, %v2558_v1   ;;  %v2543_v34 = vadd.f32 1.0, %v2542_v16  ;;  %vm2546_vm12 = vcmp.lt.f32.partialorder %v2545_v44, 0.0004427343  ;;  %v2670_v44 = vpop.permute.xlu1 %2669 }
 0x512   : > { %v2544_v35 = vmul.f32 %v4369_v15, %v2543_v34  ;;  %v5702_v34 = vpop.permute.xlu2 %2302 }
 0x513   : > { %6638 = vst [vmem:[#allocation82_spill] sm:$0xff] %v5702_v34 }
 0x514   : > { %v4371_v12 = vpop.eup %4370 }
 0x515   : > { %v2541_v1 = vmul.f32 0.6931472, %v4371_v12 }
 0x516   : > { %3509 = vperm.xlu1 %4250, %v4267_v61   ;;  %v5668_v39 = vpop.permute.xlu0 %1202 }
 0x517   : > { %v2547_v2 = vsel %vm2546_vm12, %v2544_v35, %v2541_v1 }
 0x518   : > { %v2563_v9 = vadd.f32 %v2547_v2, %v2451_v5  ;;  %v5712_v5 = vsub.f32 %v5133_v28, %v5285_v21  ;;  %v5717_v2 = vsub.f32 %v5491_v29, %v5560_v11  ;;  %v5726_v28 = vpop.permute.xlu1 %2947 }
 0x519   : > { %6643 = vst [vmem:[#allocation87_spill] sm:$0xff] %v5726_v28 }
 0x51a   : > { %2592 = vperm.xlu0 %4240, %v2563_v9   ;;  %v5708_v12 = vpop.permute.xlu2 %2308  ;;  %v1063_v1 = vand.u32 2147483647, %v5712_v5 }
 0x51b   : > { %6640 = vst [vmem:[#allocation84_spill] sm:$0xff] %v5708_v12  ;;  %v5731_v12 = vsub.f32 %v5601_v30, %v5610_v33 }
 0x51e   : > { %4251 = vset.pattern.permute.xlu1 %v5120_v10  ;;  %v5676_v22 = vpop.permute.xlu0 %1474 }
 0x51f   : > { %6633 = vst [vmem:[#allocation77_spill] sm:$0xff] %v5676_v22 }
 0x520   : > { %v5739_v34 = vpop.permute.xlu1 %2965 }
 0x526   : > { %3515 = vperm.xlu1 %4251, %v4267_v61   ;;  %v1744_v23 = vpop.permute.xlu0 %1743 }
 0x527   : > { %v1764_v48 = vperm.slane %v1744_v23, %v5656_v46  ;;  %v4128_v23 = vld [vmem:[%s4957_s12 + $0x2b0] sm:$0xff] }
 0x529   : > { %v5684_v19 = vsel %vm903_vm11, %v1764_v48, %v1763_v40  ;;  %v2041_v48 = vperm.slane %v5449_v55, %v5653_v43  ;;  %v2457_v55 = vand.u32 2147483647, %v5717_v2 }
 0x52a   : > { %6634 = vst [vmem:[#allocation78_spill] sm:$0xff] %v5684_v19 }
 0x52b   : > { %v2465_v16 = vsub.f32 0.0, %v2457_v55 }
 0x52e   : > { %4252 = vset.pattern.permute.xlu1 %v5014_v56  ;;  %v5687_v25 = vpop.permute.xlu0 %1758 }
 0x52f   : > { %6635 = vst [vmem:[#allocation79_spill] sm:$0xff] %v5687_v25 }
 0x536   : > { %3521 = vperm.xlu1 %4252, %v4267_v61   ;;  %v2022_v40 = vpop.permute.xlu0 %2021 }
 0x537   : > { %v2042_v63 = vperm.slane %v2022_v40, %v5656_v46  ;;  %v4602_v40 = vld [vmem:[%s4800_s11 + $0x30] sm:$0xff] }
 0x539   : > { %v5695_v15 = vsel %vm903_vm11, %v2042_v63, %v2041_v48  ;;  %v5723_v48 = vpop.permute.xlu2 %2317  ;;  %v1071_v63 = vsub.f32 0.0, %v1063_v1  ;;  %v2737_v1 = vand.u32 2147483647, %v5731_v12 }
 0x53a   : > { %6636 = vst [vmem:[#allocation80_spill] sm:$0xff] %v5695_v15 }
 0x53b   : > { %6642 = vst [vmem:[#allocation86_spill] sm:$0xff] %v5723_v48  ;;  %v1079_v21 = vmul.f32 1.442695, %v1071_v63  ;;  %v2477_v48 = vmul.f32 1.442695, %v2465_v16  ;;  %v2745_v33 = vsub.f32 0.0, %v2737_v1 }
 0x53d   : > { %4372 = vpow2.f32 %v1079_v21 }
 0x53e   : > { %v5697_v35 = vpop.permute.xlu0 %2036  ;;  %4253 = vset.pattern.permute.xlu1 %v6600_v18  ;;  %4374 = vpow2.f32 %v2477_v48 }
 0x53f   : > { %6637 = vst [vmem:[#allocation81_spill] sm:$0xff] %v5697_v35 }
 0x543   : > { %v4373_v30 = vpop.eup %4372 }
 0x544   : > { %v4375_v16 = vpop.eup %4374  ;;  %v1101_v62 = vand.u32 2147483647, %v4373_v30 }
 0x545   : > { %v2521_v48 = vadd.f32 1.0, %v4375_v16  ;;  %v2527_v22 = vand.u32 2147483647, %v4375_v16 }
 0x546   : > { %v5704_v61 = vpop.permute.xlu0 %2299  ;;  %vm5757_vm14 = vcmp.lt.f32.partialorder %v1101_v62, 0.0004427343  ;;  %v2729_v62 = vmax.f32 %v5731_v12, 0.0 }
 0x547   : > { %6639 = vst [vmem:[#allocation83_spill] sm:$0xff] %v5704_v61  ;;  %vm5766_vm15 = vcmp.lt.f32.partialorder %v2527_v22, 0.0004427343 }
 0x54e   : > { %v5719_v9 = vpop.permute.xlu0 %2314 }
 0x54f   : > { %6641 = vst [vmem:[#allocation85_spill] sm:$0xff] %v5719_v9  ;;  %v3464_v9 = vmul.f32 %v4602_v40, %v4128_v23  ;;  %v2759_v23 = vmul.f32 1.442695, %v2745_v33  ;;  %v5745_v40 = vsub.f32 %v5532_v13, %v2670_v44  ;;  %v1098_v33 = vmul.f32 -0.5, %v4373_v30 }
 0x551   : > { %v3484_v63 = vsel %vm865_vm0, %v3464_v9, 0.0 }
 0x558   : > { %v2362_v29 = vpop.xlane.xlu2 %2361 }
 0x559   : > { %v5734_v11 = vsub.f32 %v2362_v29, %v5518_v32  ;;  %v1095_v32 = vadd.f32 1.0, %v4373_v30  ;;  %v5747_v29 = vpop.permute.xlu1 %2977 }
 0x55a   : > { %6645 = vst [vmem:[#allocation89_spill] sm:$0xff] %v5747_v29  ;;  %v2524_v29 = vmul.f32 -0.5, %v4375_v16 }
 0x55b   : > { %v2455_v61 = vand.u32 2147483647, %v5734_v11 }
 0x55d   : > { %v2463_v55 = vsub.f32 0.0, %v2455_v61  ;;  %v2732_v61 = vand.u32 2147483647, %v5745_v40 }
 0x55f   : > { %v2473_v35 = vmul.f32 1.442695, %v2463_v55  ;;  %v2740_v55 = vsub.f32 0.0, %v2732_v61  ;;  %v1099_v61 = vadd.f32 1.0, %v1098_v33 }
 0x560   : > { %3485 = vadd.xlane.f32.xlu1 %v3484_v63  ;;  %v5742_v21 = vpop.xlane.xlu2 %2370 }
 0x561   : > { %6644 = vst [vmem:[#allocation88_spill] sm:$0xff] %v5742_v21  ;;  %4376 = vpow2.f32 %v2473_v35  ;;  %v2749_v25 = vmul.f32 1.442695, %v2740_v55 }
 0x562   : > { %4378 = vlog2.f32 %v1095_v32  ;;  %v5754_v32 = vpop.xlane.xlu1 %3192 }
 0x563   : > { %4380 = vpow2.f32 %v2759_v23  ;;  %6646 = vst [vmem:[#allocation90_spill] sm:$0xff] %v5754_v32  ;;  %v2447_v32 = vmax.f32 %v5734_v11, 0.0 }
 0x567   : > { %v4377_v9 = vpop.eup %4376 }
 0x568   : > { %v2428_v1 = vpop.permute.xlu2 %2427  ;;  %v2503_v63 = vadd.f32 1.0, %v4377_v9  ;;  %v2506_v35 = vmul.f32 -0.5, %v4377_v9  ;;  %v4379_v44 = vpop.eup %4378  ;;  %v2509_v21 = vand.u32 2147483647, %v4377_v9 }
 0x569   : > { %v5751_v15 = vsub.f32 %v5504_v51, %v2428_v1  ;;  %v4381_v19 = vpop.eup %4380  ;;  %v1097_v6 = vmul.f32 0.6931472, %v4379_v44 }
 0x56a   : > { %4382 = vlog2.f32 %v2503_v63  ;;  %v2507_v28 = vadd.f32 1.0, %v2506_v35  ;;  %v2817_v26 = vadd.f32 1.0, %v4381_v19  ;;  %v2525_v63 = vadd.f32 1.0, %v2524_v29 }
 0x56b   : > { %4384 = vlog2.f32 %v2521_v48  ;;  %v2460_v13 = vand.u32 2147483647, %v5751_v15  ;;  %vm2510_vm13 = vcmp.lt.f32.partialorder %v2509_v21, 0.0004427343  ;;  %v2820_v11 = vmul.f32 -0.5, %v4381_v19 }
 0x56c   : > { %4386 = vpow2.f32 %v2749_v25  ;;  %v2508_v56 = vmul.f32 %v4377_v9, %v2507_v28  ;;  %v1100_v25 = vmul.f32 %v4373_v30, %v1099_v61  ;;  %v1055_v28 = vmax.f32 %v5712_v5, 0.0 }
 0x56d   : > { %v2468_v23 = vsub.f32 0.0, %v2460_v13  ;;  %v2526_v9 = vmul.f32 %v4375_v16, %v2525_v63 }
 0x56e   : > { %v1103_v44 = vsel %vm5757_vm14, %v1100_v25, %v1097_v6  ;;  %v2724_v25 = vmax.f32 %v5745_v40, 0.0 }
 0x56f   : > { %v2483_v51 = vmul.f32 1.442695, %v2468_v23  ;;  %v1167_v61 = vadd.f32 %v1103_v44, %v1055_v28 }
 0x570   : > { %v4383_v1 = vpop.eup %4382 }
 0x571   : > { %v4385_v55 = vpop.eup %4384  ;;  %4388 = vpow2.f32 %v2483_v51  ;;  %v2505_v48 = vmul.f32 0.6931472, %v4383_v1  ;;  %v5763_v51 = vpop.xlane.xlu1 %3201 }
 0x572   : > { %v4387_v17 = vpop.eup %4386  ;;  %4390 = vlog2.f32 %v2817_v26  ;;  %6649 = vst [vmem:[#allocation91_spill] sm:$0xff] %v5763_v51  ;;  %v2523_v30 = vmul.f32 0.6931472, %v4385_v55  ;;  %v2449_v26 = vmax.f32 %v5717_v2, 0.0  ;;  %v2821_v55 = vadd.f32 1.0, %v2820_v11 }
 0x573   : > { %v2772_v33 = vadd.f32 1.0, %v4387_v17  ;;  %v2775_v13 = vmul.f32 -0.5, %v4387_v17  ;;  %v2511_v23 = vsel %vm2510_vm13, %v2508_v56, %v2505_v48  ;;  %v2778_v1 = vand.u32 2147483647, %v4387_v17 }
 0x574   : > { %v2559_v29 = vadd.f32 %v2511_v23, %v2447_v32  ;;  %v2529_v32 = vsel %vm5766_vm15, %v2526_v9, %v2523_v30  ;;  %v2823_v48 = vand.u32 2147483647, %v4381_v19  ;;  %v2822_v44 = vmul.f32 %v4381_v19, %v2821_v55 }
 0x575   : > { %4392 = vlog2.f32 %v2772_v33  ;;  %v2776_v21 = vadd.f32 1.0, %v2775_v13  ;;  %vm2779_vm1 = vcmp.lt.f32.partialorder %v2778_v1, 0.0004427343  ;;  %v2561_v35 = vadd.f32 %v2529_v32, %v2449_v26 }
 0x576   : > { %2580 = vperm.xlu2 %4225, %v2559_v29   ;;  %vm2824_vm2 = vcmp.lt.f32.partialorder %v2823_v48, 0.0004427343 }
 0x577   : > { %v4389_v56 = vpop.eup %4388  ;;  %v2777_v22 = vmul.f32 %v4387_v17, %v2776_v21  ;;  %v2452_v21 = vmax.f32 %v5751_v15, 0.0 }
 0x578   : > { %v2548_v6 = vadd.f32 1.0, %v4389_v56  ;;  %v2551_v5 = vmul.f32 -0.5, %v4389_v56  ;;  %v4391_v16 = vpop.eup %4390  ;;  %v2554_v29 = vand.u32 2147483647, %v4389_v56 }
 0x579   : > { %1184 = vperm.xlu1 %4253, %v1167_v61   ;;  %v3211_v13 = vpop.xlane.xlu1 %3210  ;;  %v2819_v2 = vmul.f32 0.6931472, %v4391_v16 }
 0x57a   : > { %4394 = vlog2.f32 %v2548_v6  ;;  %v2552_v23 = vadd.f32 1.0, %v2551_v5  ;;  %vm2555_vm3 = vcmp.lt.f32.partialorder %v2554_v29, 0.0004427343 }
 0x57b   : > { %v4393_v63 = vpop.eup %4392  ;;  %v2825_v40 = vsel %vm2824_vm2, %v2822_v44, %v2819_v2  ;;  %v5805_v2 = vld [vmem:[%s4805_s15 + $0x1] ss:$0 sm:$0xff]  ;;  %vm911_vm2 = vcmask 261312  }
 0x57c   : > { %v2774_v33 = vmul.f32 0.6931472, %v4393_v63  ;;  %v2553_v11 = vmul.f32 %v4389_v56, %v2552_v23  ;;  %v2841_v26 = vadd.f32 %v2825_v40, %v2729_v62  ;;  %v4100_v56 = vld [vmem:[%s4957_s12 + $0x1d0] sm:$0xff]  ;;  %v5802_v23 = vadd.s32 4294967280, %v5653_v43 }
 0x57d   : > { %v2626_v16 = vmul.f32 %v5615_v3, %v4100_v56  ;;  %v2719_v56 = vsub.f32 %v5548_v49, %v5606_v60 }
 0x57e   : > { %v2780_v28 = vsel %vm2779_vm1, %v2777_v22, %v2774_v33  ;;  %2586 = vperm.xlu2 %4225, %v2561_v35   ;;  %v4103_v22 = vld [vmem:[%s4957_s12 + $0x1e8] sm:$0xff] }
 0x57f   : > { %v2836_v30 = vadd.f32 %v2780_v28, %v2724_v25  ;;  %v2638_v55 = vsel %vm865_vm0, %v2626_v16, 0.0  ;;  %v2629_v48 = vmul.f32 %v5625_v50, %v4103_v22  ;;  %v5813_v28 = vld [vmem:[%s4805_s15 + $0x5] ss:$0 sm:$0xff] }
 0x580   : > { %v4395_v9 = vpop.eup %4394 }
 0x581   : > { %v2550_v17 = vmul.f32 0.6931472, %v4395_v9  ;;  %2855 = vperm.xlu0 %4240, %v2836_v30   ;;  %v5776_v19 = vpop.permute.xlu1 %3249  ;;  %v2647_v25 = vsel %vm865_vm0, %v2629_v48, 0.0 }
 0x582   : > { %v5781_v12 = vpop.permute.xlu0 %2577 }
 0x583   : > { %v2556_v61 = vsel %vm2555_vm3, %v2553_v11, %v2550_v17  ;;  %6653 = vst [vmem:[#allocation93_spill] sm:$0xff] %v5781_v12  ;;  %v5826_v11 = vld [vmem:[%s4805_s15 + $0x7] ss:$0 sm:$0xff]  ;;  %vm915_vm3 = vcmask 326912  }
 0x584   : > { %v2564_v1 = vadd.f32 %v2556_v61, %v2452_v21  ;;  %v1210_v61 = vperm.slane %v5264_v59, %v5802_v23  ;;  %v2735_v59 = vand.u32 2147483647, %v2719_v56 }
 0x586   : > { %2595 = vperm.xlu2 %4225, %v2564_v1   ;;  %v6658_v1 = vperm.slane %v5660_v8, %v5656_v46 }
 0x589   : > { %2870 = vperm.xlu0 %4240, %v2841_v26   ;;  %v3262_v6 = vpop.permute.xlu1 %3261 }
 0x58a   : > { %v5778_v32 = vsub.f32 %v3211_v13, %v3262_v6 }
 0x58c   : > { %6652 = vst [vmem:[#allocation92_spill] sm:$0xff] %v5778_v32  ;;  %v5853_v51 = vpop.permute.xlu0 %2592 }
 0x58e   : > { %4226 = vset.pattern.permute.xlu2 %v5137_v31 }
 0x591   : > { %v5786_v5 = vpop.xlane.xlu1 %3473 }
 0x599   : > { %v5791_v63 = vpop.xlane.xlu1 %3476 }
 0x5a1   : > { %v5795_v35 = vpop.permute.xlu1 %3231 }
 0x5a9   : > { %v5797_v33 = vpop.permute.xlu1 %3509 }
 0x5af   : > { %2639 = vadd.xlane.f32.xlu2 %v2638_v55  ;;  %v2743_v55 = vsub.f32 0.0, %v2735_v59 }
 0x5b1   : > { %v5799_v13 = vpop.permute.xlu1 %3515  ;;  %v2755_v48 = vmul.f32 1.442695, %v2743_v55 }
 0x5b3   : > { %4396 = vpow2.f32 %v2755_v48 }
 0x5b7   : > { %2648 = vadd.xlane.f32.xlu2 %v2647_v25 }
 0x5b9   : > { %v5816_v30 = vpop.permute.xlu1 %3521 }
 0x5ba   : > { %6655 = vst [vmem:[#allocation95_spill] sm:$0xff] %v5816_v30 }
 0x5cf   : > { %1025 = vperm.xlu2 %4226, %v5805_v2  }
 0x5d0   : > { %v5808_v44 = vpop.permute.xlu2 %2580 }
 0x5d1   : > { %6654 = vst [vmem:[#allocation94_spill] sm:$0xff] %v5808_v44 }
 0x5d3   : > { %v5823_v17 = vpop.xlane.xlu1 %3485 }
 0x5d4   : > { %6657 = vst [vmem:[#allocation97_spill] sm:$0xff] %v5823_v17 }
 0x5d7   : > { %2137 = vperm.xlu2 %4226, %v5813_v28  }
 0x5d8   : > { %v5818_v9 = vpop.permute.xlu2 %2586 }
 0x5d9   : > { %6656 = vst [vmem:[#allocation96_spill] sm:$0xff] %v5818_v9 }
 0x5df   : > { %2415 = vperm.xlu2 %4226, %v5647_v0  }
 0x5e0   : > { %v5844_v16 = vpop.permute.xlu2 %2595 }
 0x5e1   : > { %6659 = vst [vmem:[#allocation98_spill] sm:$0xff] %v5844_v16 }
 0x5e7   : > { %2693 = vperm.xlu2 %4226, %v5826_v11  }
 0x5eb   : > { %v1185_v40 = vpop.permute.xlu1 %1184 }
 0x5ec   : > { %v1207_v21 = vperm.slane %v1185_v40, %v5653_v43 }
 0x5ee   : > { %v1209_v26 = vsel %vm903_vm11, %v6658_v1, %v1207_v21  ;;  %v4397_v1 = vpop.eup %4396 }
 0x5ef   : > { %4229 = vset.pattern.permute.xlu2 %v5019_v58  ;;  %v5838_v6 = vsel %vm907_vm4, %v1210_v61, %v1209_v26  ;;  %v2799_v62 = vadd.f32 1.0, %v4397_v1  ;;  %v2802_v60 = vmul.f32 -0.5, %v4397_v1 }
 0x5f7   : > { %2705 = vperm.xlu2 %4229, %v5826_v11  }
 0x5ff   : > { %4230 = vset.pattern.permute.xlu2 %v6600_v18 }
 0x622   : > { %v2640_v22 = vpop.xlane.xlu2 %2639 }
 0x623   : > { %v2717_v8 = vsub.f32 %v2640_v22, %v5582_v47  ;;  %v2803_v22 = vadd.f32 1.0, %v2802_v60 }
 0x625   : > { %v2733_v25 = vand.u32 2147483647, %v2717_v8  ;;  %v2725_v9 = vmax.f32 %v2717_v8, 0.0  ;;  %v2804_v30 = vmul.f32 %v4397_v1, %v2803_v22 }
 0x627   : > { %v2741_v40 = vsub.f32 0.0, %v2733_v25 }
 0x629   : > { %v2751_v21 = vmul.f32 1.442695, %v2741_v40 }
 0x62a   : > { %v2649_v61 = vpop.xlane.xlu2 %2648 }
 0x62b   : > { %4398 = vpow2.f32 %v2751_v21  ;;  %v2805_v21 = vand.u32 2147483647, %v4397_v1 }
 0x62d   : > { %vm2806_vm6 = vcmp.lt.f32.partialorder %v2805_v21, 0.0004427343 }
 0x631   : > { %v4399_v26 = vpop.eup %4398 }
 0x632   : > { %v2781_v29 = vadd.f32 1.0, %v4399_v26  ;;  %v5847_v15 = vpop.permute.xlu2 %1025  ;;  %v2784_v49 = vmul.f32 -0.5, %v4399_v26  ;;  %v2787_v16 = vand.u32 2147483647, %v4399_v26 }
 0x634   : > { %4400 = vlog2.f32 %v2781_v29  ;;  %v2785_v59 = vadd.f32 1.0, %v2784_v49  ;;  %vm2788_vm5 = vcmp.lt.f32.partialorder %v2787_v16, 0.0004427343  ;;  %v2727_v29 = vmax.f32 %v2719_v56, 0.0 }
 0x635   : > { %4402 = vlog2.f32 %v2799_v62 }
 0x636   : > { %v2786_v25 = vmul.f32 %v4399_v26, %v2785_v59  ;;  %v5857_v59 = vpop.permute.xlu0 %2855 }
 0x63a   : > { %v4401_v47 = vpop.eup %4400  ;;  %v5849_v55 = vpop.permute.xlu2 %2137 }
 0x63b   : > { %v2783_v48 = vmul.f32 0.6931472, %v4401_v47  ;;  %v4403_v40 = vpop.eup %4402 }
 0x63c   : > { %v2801_v17 = vmul.f32 0.6931472, %v4403_v40 }
 0x63d   : > { %v2789_v44 = vsel %vm2788_vm5, %v2786_v25, %v2783_v48  ;;  %vm919_vm5 = vcmask 392512  }
 0x63e   : > { %v2837_v12 = vadd.f32 %v2789_v44, %v2725_v9  ;;  %v2807_v49 = vsel %vm2806_vm6, %v2804_v30, %v2801_v17  ;;  %vm923_vm6 = vcmask 458112  }
 0x63f   : > { %v2839_v32 = vadd.f32 %v2807_v49, %v2727_v29 }
 0x640   : > { %2858 = vperm.xlu2 %4230, %v2837_v12  }
 0x642   : > { %v5851_v62 = vpop.permute.xlu2 %2415 }
 0x648   : > { %2864 = vperm.xlu2 %4230, %v2839_v32  }
 0x64a   : > { %v2694_v60 = vpop.permute.xlu2 %2693 }
 0x64b   : > { %v5855_v26 = vsub.f32 %v2649_v61, %v2694_v60  ;;  %v4111_v60 = vld [vmem:[%s4957_s12 + $0x228] sm:$0xff] }
 0x652   : > { %v2706_v9 = vpop.permute.xlu2 %2705 }
 0x653   : > { %v2722_v16 = vsub.f32 %v5566_v27, %v2706_v9  ;;  %v4108_v27 = vld [vmem:[%s4957_s12 + $0x210] sm:$0xff] }
 0x654   : > { %v2904_v29 = vmul.f32 %v5615_v3, %v4108_v27  ;;  %v5882_v3 = vld [vmem:[%s4805_s15 + $0x8] ss:$0 sm:$0xff] }
 0x655   : > { %v2738_v12 = vand.u32 2147483647, %v2722_v16  ;;  %v2730_v25 = vmax.f32 %v2722_v16, 0.0 }
 0x656   : > { %v2916_v49 = vsel %vm865_vm0, %v2904_v29, 0.0 }
 0x657   : > { %v2746_v56 = vsub.f32 0.0, %v2738_v12  ;;  %v2907_v12 = vmul.f32 %v5625_v50, %v4111_v60  ;;  %v5892_v50 = vsub.f32 %v5598_v37, %v5739_v34 }
 0x659   : > { %v2761_v8 = vmul.f32 1.442695, %v2746_v56  ;;  %v2925_v56 = vsel %vm865_vm0, %v2907_v12, 0.0 }
 0x65b   : > { %4404 = vpow2.f32 %v2761_v8 }
 0x661   : > { %v4405_v30 = vpop.eup %4404 }
 0x662   : > { %v2826_v17 = vadd.f32 1.0, %v4405_v30  ;;  %v2829_v1 = vmul.f32 -0.5, %v4405_v30  ;;  %v2832_v61 = vand.u32 2147483647, %v4405_v30 }
 0x664   : > { %4406 = vlog2.f32 %v2826_v17  ;;  %v2830_v32 = vadd.f32 1.0, %v2829_v1  ;;  %vm2833_vm7 = vcmp.lt.f32.partialorder %v2832_v61, 0.0004427343 }
 0x666   : > { %v2831_v48 = vmul.f32 %v4405_v30, %v2830_v32 }
 0x66a   : > { %v4407_v47 = vpop.eup %4406 }
 0x66b   : > { %v2828_v22 = vmul.f32 0.6931472, %v4407_v47 }
 0x66d   : > { %v2834_v40 = vsel %vm2833_vm7, %v2831_v48, %v2828_v22  ;;  %v5900_v22 = vsub.f32 %v5148_v41, %v5847_v15  ;;  %vm927_vm7 = vcmask 523712  }
 0x66e   : > { %v2842_v21 = vadd.f32 %v2834_v40, %v2730_v25 }
 0x66f   : > { %v1068_v37 = vand.u32 2147483647, %v5900_v22 }
 0x670   : > { %2873 = vperm.xlu2 %4230, %v2842_v21   ;;  %v5907_v21 = vsub.f32 %v5192_v57, %v5160_v52 }
 0x672   : > { %v1341_v15 = vand.u32 2147483647, %v5907_v21 }
 0x674   : > { %v1349_v57 = vsub.f32 0.0, %v1341_v15 }
 0x678   : > { %4231 = vset.pattern.permute.xlu2 %v5120_v10 }
 0x699   : > { %2917 = vadd.xlane.f32.xlu2 %v2916_v49 }
 0x69a   : > { %v5867_v9 = vpop.permute.xlu2 %2858 }
 0x6a1   : > { %2926 = vadd.xlane.f32.xlu2 %v2925_v56 }
 0x6a2   : > { %v5873_v8 = vpop.permute.xlu2 %2864 }
 0x6b9   : > { %1013 = vperm.xlu2 %4231, %v5805_v2   ;;  %v3013_v2 = vand.u32 2147483647, %v5892_v50 }
 0x6c1   : > { %2125 = vperm.xlu2 %4231, %v5813_v28   ;;  %v3021_v28 = vsub.f32 0.0, %v3013_v2 }
 0x6c3   : > { %v3033_v32 = vmul.f32 1.442695, %v3021_v28 }
 0x6c5   : > { %4408 = vpow2.f32 %v3033_v32  ;;  %v5916_v32 = vsub.f32 %v5187_v20, %v5200_v36 }
 0x6c7   : > { %v1343_v15 = vand.u32 2147483647, %v5916_v32 }
 0x6c9   : > { %2403 = vperm.xlu2 %4231, %v5647_v0  }
 0x6ca   : > { %v5894_v0 = vpop.permute.xlu2 %2873 }
 0x6cb   : > { %6660 = vst [vmem:[#allocation99_spill] sm:$0xff] %v5894_v0  ;;  %v4409_v34 = vpop.eup %4408 }
 0x6cc   : > { %v3077_v27 = vadd.f32 1.0, %v4409_v34  ;;  %v3080_v2 = vmul.f32 -0.5, %v4409_v34 }
 0x6d1   : > { %2681 = vperm.xlu2 %4231, %v5826_v11  }
 0x6d9   : > { %2959 = vperm.xlu2 %4231, %v5882_v3  }
 0x6e1   : > { %4234 = vset.pattern.permute.xlu2 %v5137_v31 }
 0x6e9   : > { %2971 = vperm.xlu2 %4234, %v5882_v3  }
 0x6f1   : > { %4236 = vset.pattern.permute.xlu2 %v5019_v58 }
 0x6f9   : > { %2983 = vperm.xlu2 %4236, %v5882_v3  }
 0x701   : > { %4237 = vset.pattern.permute.xlu2 %v6600_v18 }
 0x70c   : > { %v2918_v17 = vpop.xlane.xlu2 %2917 }
 0x70d   : > { %v2995_v1 = vsub.f32 %v2918_v17, %v5612_v7  ;;  %v1076_v7 = vsub.f32 0.0, %v1068_v37 }
 0x70f   : > { %v3011_v61 = vand.u32 2147483647, %v2995_v1  ;;  %v1089_v12 = vmul.f32 1.442695, %v1076_v7 }
 0x711   : > { %v3019_v47 = vsub.f32 0.0, %v3011_v61 }
 0x713   : > { %v3029_v48 = vmul.f32 1.442695, %v3019_v47 }
 0x714   : > { %v5902_v25 = vpop.xlane.xlu2 %2926 }
 0x715   : > { %4410 = vpow2.f32 %v3029_v48  ;;  %v3081_v48 = vadd.f32 1.0, %v3080_v2  ;;  %v1351_v2 = vsub.f32 0.0, %v1343_v15 }
 0x71b   : > { %v4411_v40 = vpop.eup %4410 }
 0x71c   : > { %v3059_v29 = vadd.f32 1.0, %v4411_v40  ;;  %v1014_v49 = vpop.permute.xlu2 %1013  ;;  %v3062_v60 = vmul.f32 -0.5, %v4411_v40  ;;  %v3065_v52 = vand.u32 2147483647, %v4411_v40 }
 0x71d   : > { %v5910_v41 = vsub.f32 %v5145_v38, %v1014_v49  ;;  %v3003_v49 = vmax.f32 %v2995_v1, 0.0  ;;  %v3005_v1 = vmax.f32 %v5892_v50, 0.0 }
 0x71e   : > { %4412 = vlog2.f32 %v3059_v29  ;;  %v3063_v28 = vadd.f32 1.0, %v3062_v60  ;;  %vm3066_vm8 = vcmp.lt.f32.partialorder %v3065_v52, 0.0004427343  ;;  %v1357_v60 = vmul.f32 1.442695, %v1349_v57 }
 0x71f   : > { %v1066_v56 = vand.u32 2147483647, %v5910_v41  ;;  %4414 = vlog2.f32 %v3077_v27  ;;  %v3083_v27 = vand.u32 2147483647, %v4409_v34 }
 0x720   : > { %4416 = vpow2.f32 %v1089_v12  ;;  %v3064_v7 = vmul.f32 %v4411_v40, %v3063_v28  ;;  %v3082_v12 = vmul.f32 %v4409_v34, %v3081_v48  ;;  %v5923_v40 = vsub.f32 %v5150_v42, %v5261_v4 }
 0x721   : > { %v1074_v17 = vsub.f32 0.0, %v1066_v56  ;;  %vm3084_vm9 = vcmp.lt.f32.partialorder %v3083_v27, 0.0004427343 }
 0x722   : > { %v1346_v34 = vand.u32 2147483647, %v5923_v40 }
 0x723   : > { %v1085_v61 = vmul.f32 1.442695, %v1074_v17 }
 0x724   : > { %v4413_v38 = vpop.eup %4412  ;;  %v5918_v47 = vpop.permute.xlu2 %2125  ;;  %v1354_v42 = vsub.f32 0.0, %v1346_v34 }
 0x725   : > { %v3061_v37 = vmul.f32 0.6931472, %v4413_v38  ;;  %4418 = vpow2.f32 %v1085_v61  ;;  %v4415_v29 = vpop.eup %4414 }
 0x726   : > { %v4417_v20 = vpop.eup %4416  ;;  %v3079_v36 = vmul.f32 0.6931472, %v4415_v29  ;;  %4420 = vpow2.f32 %v1357_v60 }
 0x727   : > { %v3067_v56 = vsel %vm3066_vm8, %v3064_v7, %v3061_v37  ;;  %v1140_v28 = vadd.f32 1.0, %v4417_v20  ;;  %v1361_v37 = vmul.f32 1.442695, %v1351_v2  ;;  %v1143_v4 = vmul.f32 -0.5, %v4417_v20 }
 0x728   : > { %v3115_v30 = vadd.f32 %v3067_v56, %v3003_v49  ;;  %v3085_v61 = vsel %vm3084_vm9, %v3082_v12, %v3079_v36  ;;  %v1058_v36 = vmax.f32 %v5910_v41, 0.0  ;;  %v1367_v12 = vmul.f32 1.442695, %v1354_v42 }
 0x729   : > { %v1144_v2 = vadd.f32 1.0, %v1143_v4  ;;  %v1060_v41 = vmax.f32 %v5900_v22, 0.0  ;;  %v1333_v22 = vmax.f32 %v5907_v21, 0.0 }
 0x72a   : > { %3136 = vperm.xlu2 %4237, %v3115_v30   ;;  %v3117_v30 = vadd.f32 %v3085_v61, %v3005_v1 }
 0x72b   : > { %v4419_v17 = vpop.eup %4418  ;;  %v1145_v34 = vmul.f32 %v4417_v20, %v1144_v2 }
 0x72c   : > { %v1122_v52 = vadd.f32 1.0, %v4419_v17  ;;  %v5926_v57 = vpop.permute.xlu2 %2403  ;;  %v1125_v38 = vmul.f32 -0.5, %v4419_v17  ;;  %v4421_v48 = vpop.eup %4420  ;;  %v1128_v29 = vand.u32 2147483647, %v4419_v17 }
 0x72d   : > { %v1373_v27 = vadd.f32 1.0, %v4421_v48  ;;  %v1379_v42 = vand.u32 2147483647, %v4421_v48 }
 0x72e   : > { %4422 = vlog2.f32 %v1122_v52  ;;  %v1126_v7 = vadd.f32 1.0, %v1125_v38  ;;  %vm1129_vm10 = vcmp.lt.f32.partialorder %v1128_v29, 0.0004427343 }
 0x72f   : > { %4424 = vlog2.f32 %v1140_v28  ;;  %v1146_v28 = vand.u32 2147483647, %v4417_v20  ;;  %vm1380_vm13 = vcmp.lt.f32.partialorder %v1379_v42, 0.0004427343 }
 0x730   : > { %4426 = vpow2.f32 %v1361_v37  ;;  %v1127_v15 = vmul.f32 %v4419_v17, %v1126_v7  ;;  %v1376_v37 = vmul.f32 -0.5, %v4421_v48 }
 0x731   : > { %4428 = vlog2.f32 %v1373_v27  ;;  %vm1147_vm12 = vcmp.lt.f32.partialorder %v1146_v28, 0.0004427343 }
 0x732   : > { %3142 = vperm.xlu2 %4237, %v3117_v30   ;;  %4430 = vpow2.f32 %v1367_v12  ;;  %v1377_v29 = vadd.f32 1.0, %v1376_v37 }
 0x734   : > { %v4423_v50 = vpop.eup %4422  ;;  %v5929_v49 = vpop.permute.xlu2 %2681 }
 0x735   : > { %v1124_v60 = vmul.f32 0.6931472, %v4423_v50  ;;  %v4425_v56 = vpop.eup %4424 }
 0x736   : > { %v4427_v61 = vpop.eup %4426  ;;  %v1142_v38 = vmul.f32 0.6931472, %v4425_v56  ;;  %v1378_v56 = vmul.f32 %v4421_v48, %v1377_v29  ;;  %v1335_v48 = vmax.f32 %v5916_v32, 0.0 }
 0x737   : > { %v1130_v1 = vsel %vm1129_vm10, %v1127_v15, %v1124_v60  ;;  %v1391_v30 = vadd.f32 1.0, %v4427_v61  ;;  %v4429_v7 = vpop.eup %4428  ;;  %v1394_v15 = vmul.f32 -0.5, %v4427_v61 }
 0x738   : > { %v1170_v52 = vadd.f32 %v1130_v1, %v1058_v36  ;;  %v1148_v17 = vsel %vm1147_vm12, %v1145_v34, %v1142_v38  ;;  %v4431_v27 = vpop.eup %4430  ;;  %v1375_v60 = vmul.f32 0.6931472, %v4429_v7 }
 0x739   : > { %4432 = vlog2.f32 %v1391_v30  ;;  %v1172_v4 = vadd.f32 %v1148_v17, %v1060_v41  ;;  %v1418_v36 = vadd.f32 1.0, %v4431_v27  ;;  %v1395_v2 = vadd.f32 1.0, %v1394_v15 }
 0x73a   : > { %1193 = vperm.xlu1 %4253, %v1170_v52   ;;  %v1381_v12 = vsel %vm1380_vm13, %v1378_v56, %v1375_v60  ;;  %v1397_v52 = vand.u32 2147483647, %v4427_v61  ;;  %v1421_v30 = vmul.f32 -0.5, %v4431_v27  ;;  %v1424_v42 = vand.u32 2147483647, %v4431_v27 }
 0x73b   : > { %v1445_v38 = vadd.f32 %v1381_v12, %v1333_v22  ;;  %4434 = vlog2.f32 %v1418_v36  ;;  %v1396_v34 = vmul.f32 %v4427_v61, %v1395_v2  ;;  %v1338_v61 = vmax.f32 %v5923_v40, 0.0 }
 0x73c   : > { %v5932_v50 = vpop.permute.xlu2 %2959  ;;  %vm1398_vm14 = vcmp.lt.f32.partialorder %v1397_v52, 0.0004427343  ;;  %v1422_v41 = vadd.f32 1.0, %v1421_v30  ;;  %vm1425_vm15 = vcmp.lt.f32.partialorder %v1424_v42, 0.0004427343  ;;  %v900_v40 = vperm.slane %v5084_v45, %v5653_v43  ;;  %v6662_v42 = vld [vmem:[#allocation29_spill] sm:$0xff] }
 0x73d   : > { %v5957_v45 = vadd.s32 4294967256, %v5653_v43 }
 0x73f   : > { %v4433_v28 = vpop.eup %4432 }
 0x740   : > { %v1393_v37 = vmul.f32 0.6931472, %v4433_v28 }
 0x741   : > { %v4435_v7 = vpop.eup %4434 }
 0x742   : > { %1199 = vperm.xlu1 %4253, %v1172_v4   ;;  %v1399_v17 = vsel %vm1398_vm14, %v1396_v34, %v1393_v37  ;;  %v1423_v4 = vmul.f32 %v4431_v27, %v1422_v41  ;;  %v6661_v41 = vld [vmem:[#allocation34_spill] sm:$0xff] }
 0x743   : > { %v1447_v29 = vadd.f32 %v1399_v17, %v1335_v48  ;;  %v902_v48 = vperm.slane %v5092_v54, %v5656_v46  ;;  %v5947_v17 = vadd.s32 4294967272, %v5653_v43  ;;  %v6664_v54 = vld [vmem:[#allocation35_spill] sm:$0xff] }
 0x744   : > { %v2972_v20 = vpop.permute.xlu2 %2971 }
 0x745   : > { %v5936_v1 = vsub.f32 %v5902_v25, %v2972_v20  ;;  %v1420_v25 = vmul.f32 0.6931472, %v4435_v7  ;;  %v904_v7 = vsel %vm903_vm11, %v902_v48, %v900_v40 }
 0x747   : > { %v1426_v15 = vsel %vm1425_vm15, %v1423_v4, %v1420_v25  ;;  %v6663_v4 = vld [vmem:[#allocation36_spill] sm:$0xff] }
 0x748   : > { %v1450_v36 = vadd.f32 %v1426_v15, %v1338_v61  ;;  %v6665_v61 = vld [vmem:[#allocation37_spill] sm:$0xff] }
 0x74a   : > { %1462 = vperm.xlu1 %4253, %v1445_v38  }
 0x752   : > { %1468 = vperm.xlu1 %4253, %v1447_v29   ;;  %v906_v29 = vperm.slane %v6661_v41, %v5802_v23 }
 0x753   : > { %v2984_v60 = vpop.permute.xlu2 %2983 }
 0x754   : > { %v3000_v21 = vsub.f32 %v5604_v14, %v2984_v60  ;;  %v908_v25 = vsel %vm907_vm4, %v906_v29, %v904_v7  ;;  %v910_v60 = vperm.slane %v6663_v4, %v5947_v17  ;;  %v4116_v7 = vld [vmem:[%s4957_s12 + $0x250] sm:$0xff] }
 0x755   : > { %v4607_v29 = vld [vmem:[%s4800_s11 + $0x10] sm:$0xff] }
 0x756   : > { %v3016_v56 = vand.u32 2147483647, %v3000_v21  ;;  %v3008_v34 = vmax.f32 %v3000_v21, 0.0  ;;  %v914_v21 = vperm.slane %v6664_v54, %v5673_v53  ;;  %v912_v15 = vsel %vm911_vm2, %v910_v60, %v908_v25  ;;  %v4119_v54 = vld [vmem:[%s4957_s12 + $0x268] sm:$0xff] }
 0x757   : > { %v3182_v25 = vmul.f32 %v4607_v29, %v4116_v7 }
 0x758   : > { %v3024_v20 = vsub.f32 0.0, %v3016_v56  ;;  %v918_v56 = vperm.slane %v6665_v61, %v5957_v45 }
 0x759   : > { %v3194_v60 = vsel %vm865_vm0, %v3182_v25, 0.0 }
 0x75a   : > { %1477 = vperm.xlu1 %4253, %v1450_v36   ;;  %v3039_v32 = vmul.f32 1.442695, %v3024_v20  ;;  %v5965_v36 = vadd.s32 4294967240, %v5653_v43  ;;  %v916_v20 = vsel %vm915_vm3, %v914_v21, %v912_v15  ;;  %v5989_v21 = vld [vmem:[%s4800_s11 + $0x28] sm:$0xff] }
 0x75b   : > { %v3185_v15 = vmul.f32 %v5989_v21, %v4119_v54 }
 0x75c   : > { %4436 = vpow2.f32 %v3039_v32  ;;  %v6666_v32 = vld [vmem:[#allocation33_spill] sm:$0xff] }
 0x75d   : > { %v3203_v61 = vsel %vm865_vm0, %v3185_v15, 0.0  ;;  %v6671_v15 = vld [vmem:[#allocation42_spill] sm:$0xff] }
 0x762   : > { %v4437_v12 = vpop.eup %4436 }
 0x763   : > { %v3104_v2 = vadd.f32 1.0, %v4437_v12  ;;  %v3107_v28 = vmul.f32 -0.5, %v4437_v12  ;;  %v3110_v52 = vand.u32 2147483647, %v4437_v12 }
 0x765   : > { %4438 = vlog2.f32 %v3104_v2  ;;  %v3108_v22 = vadd.f32 1.0, %v3107_v28  ;;  %vm3111_vm1 = vcmp.lt.f32.partialorder %v3110_v52, 0.0004427343  ;;  %v920_v2 = vsel %vm919_vm5, %v918_v56, %v916_v20  ;;  %v6667_v28 = vld [vmem:[#allocation38_spill] sm:$0xff] }
 0x767   : > { %v3109_v37 = vmul.f32 %v4437_v12, %v3108_v22  ;;  %v922_v12 = vperm.slane %v6666_v32, %v5666_v24  ;;  %v926_v22 = vperm.slane %v6667_v28, %v5965_v36 }
 0x76b   : > { %v4439_v27 = vpop.eup %4438 }
 0x76c   : > { %v3106_v38 = vmul.f32 0.6931472, %v4439_v27  ;;  %v924_v27 = vsel %vm923_vm6, %v922_v12, %v920_v2 }
 0x76e   : > { %v3112_v14 = vsel %vm3111_vm1, %v3109_v37, %v3106_v38  ;;  %v847_v37 = vld [vmem:[%s4805_s15] sm:$0x1] }
 0x76f   : > { %v3120_v30 = vadd.f32 %v3112_v14, %v3008_v34  ;;  %v928_v34 = vsel %vm927_vm7, %v926_v22, %v924_v27  ;;  %v6670_v22 = vld [vmem:[#allocation41_spill] sm:$0xff] }
 0x770   : > { %v930_v14 = vsub.f32 %v847_v37, %v928_v34  ;;  %v1214_v27 = vperm.slane %v6670_v22, %v5673_v53 }
 0x771   : > { %3151 = vperm.xlu2 %4237, %v3120_v30  }
 0x772   : > { %v932_v48 = vand.u32 2147483647, %v930_v14  ;;  %v931_v54 = vmax.f32 %v930_v14, 0.0  ;;  %v6673_v14 = vld [vmem:[#allocation43_spill] sm:$0xff] }
 0x774   : > { %v933_v41 = vsub.f32 0.0, %v932_v48 }
 0x776   : > { %v934_v4 = vmul.f32 1.442695, %v933_v41 }
 0x778   : > { %4440 = vpow2.f32 %v934_v4 }
 0x779   : > { %4238 = vset.pattern.permute.xlu2 %v6662_v42 }
 0x77e   : > { %v4441_v56 = vpop.eup %4440 }
 0x77f   : > { %v936_v20 = vadd.f32 1.0, %v4441_v56  ;;  %v939_v32 = vmul.f32 -0.5, %v4441_v56  ;;  %v942_v7 = vand.u32 2147483647, %v4441_v56 }
 0x781   : > { %4442 = vlog2.f32 %v936_v20  ;;  %v940_v34 = vadd.f32 1.0, %v939_v32  ;;  %vm943_vm8 = vcmp.lt.f32.partialorder %v942_v7, 0.0004427343  ;;  %v6674_v7 = vld [vmem:[#allocation44_spill] sm:$0xff] }
 0x783   : > { %v941_v29 = vmul.f32 %v4441_v56, %v940_v34 }
 0x784   : > { %v5973_v52 = vpop.permute.xlu2 %3136 }
 0x785   : > { %6668 = vst [vmem:[#allocation34_spill] sm:$0xff] %v5973_v52 }
 0x787   : > { %v4443_v28 = vpop.eup %4442 }
 0x788   : > { %v938_v41 = vmul.f32 0.6931472, %v4443_v28  ;;  %v4609_v28 = vld [vmem:[%s4805_s15 + $0x6] ss:$0 sm:$0xff] }
 0x78c   : > { %v5980_v30 = vpop.permute.xlu2 %3142 }
 0x78d   : > { %6669 = vst [vmem:[#allocation29_spill] sm:$0xff] %v5980_v30 }
 0x79a   : > { %3195 = vadd.xlane.f32.xlu2 %v3194_v60  ;;  %v944_v60 = vsel %vm943_vm8, %v941_v29, %v938_v41  ;;  %v1490_v41 = vperm.slane %v6674_v7, %v5947_v17  ;;  %v6681_v7 = vld [vmem:[#allocation31_spill] sm:$0xff] }
 0x7a2   : > { %3204 = vadd.xlane.f32.xlu2 %v3203_v61  ;;  %v1220_v61 = vperm.slane %v6671_v15, %v5965_v36 }
 0x7ac   : > { %v1194_v12 = vpop.permute.xlu1 %1193 }
 0x7ad   : > { %v1212_v2 = vperm.slane %v1194_v12, %v5947_v17  ;;  %v945_v12 = vadd.f32 %v944_v60, %v931_v54 }
 0x7af   : > { %v1213_v37 = vsel %vm911_vm2, %v1212_v2, %v5838_v6  ;;  %v6672_v6 = vperm.slane %v5668_v39, %v5666_v24 }
 0x7b0   : > { %v1215_v48 = vsel %vm915_vm3, %v1214_v27, %v1213_v37  ;;  %v1486_v27 = vperm.slane %v6673_v14, %v5656_v46 }
 0x7b4   : > { %v1200_v25 = vpop.permute.xlu1 %1199 }
 0x7b5   : > { %v1216_v4 = vperm.slane %v1200_v25, %v5957_v45 }
 0x7b7   : > { %v1217_v20 = vsel %vm919_vm5, %v1216_v4, %v1215_v48  ;;  %v6675_v4 = vld [vmem:[#allocation77_spill] sm:$0xff] }
 0x7b8   : > { %v1219_v32 = vsel %vm923_vm6, %v6672_v6, %v1217_v20  ;;  %v6676_v60 = vperm.slane %v6675_v4, %v5673_v53 }
 0x7b9   : > { %v1221_v2 = vsel %vm927_vm7, %v1220_v61, %v1219_v32  ;;  %v6677_v61 = vld [vmem:[#allocation45_spill] sm:$0xff] }
 0x7ba   : > { %v6008_v56 = vadd.f32 %v1221_v2, %v945_v12  ;;  %2385 = vperm.xlu2 %4238, %v4609_v28   ;;  %v1496_v20 = vperm.slane %v6677_v61, %v5666_v24  ;;  %v4610_v12 = vld [vmem:[%s4805_s15 + $0x9] ss:$0 sm:$0xff]  ;;  %v6678_v2 = vld [vmem:[#allocation76_spill] sm:$0xff]  ;;  %v6679_v28 = vld [vmem:[#allocation90_spill] sm:$0xff] }
 0x7bc   : > { %v1463_v22 = vpop.permute.xlu1 %1462 }
 0x7bd   : > { %v1485_v37 = vperm.slane %v1463_v22, %v5653_v43  ;;  %v3272_v22 = vsub.f32 %v6679_v28, %v6678_v2  ;;  %v3014_v28 = vand.u32 2147483647, %v5936_v1 }
 0x7bf   : > { %v1487_v34 = vsel %vm903_vm11, %v1486_v27, %v1485_v37  ;;  %v3288_v14 = vand.u32 2147483647, %v3272_v22  ;;  %v6680_v37 = vld [vmem:[#allocation30_spill] sm:$0xff] }
 0x7c2   : > { %2663 = vperm.xlu2 %4238, %v5826_v11  }
 0x7c4   : > { %v1469_v39 = vpop.permute.xlu1 %1468 }
 0x7c5   : > { %v1488_v48 = vperm.slane %v1469_v39, %v5802_v23 }
 0x7c7   : > { %v1489_v29 = vsel %vm907_vm4, %v1488_v48, %v1487_v34 }
 0x7c8   : > { %v1491_v25 = vsel %vm911_vm2, %v1490_v41, %v1489_v29 }
 0x7c9   : > { %v1493_v54 = vsel %vm915_vm3, %v6676_v60, %v1491_v25 }
 0x7ca   : > { %2941 = vperm.xlu2 %4238, %v5882_v3   ;;  %v3296_v3 = vsub.f32 0.0, %v3288_v14  ;;  %v3022_v14 = vsub.f32 0.0, %v3014_v28 }
 0x7cc   : > { %v1478_v15 = vpop.permute.xlu1 %1477  ;;  %v3305_v27 = vmul.f32 1.442695, %v3296_v3 }
 0x7cd   : > { %v1494_v11 = vperm.slane %v1478_v15, %v5957_v45  ;;  %v6039_v15 = vpop.permute.xlu2 %3151 }
 0x7ce   : > { %4444 = vpow2.f32 %v3305_v27  ;;  %6682 = vst [vmem:[#allocation36_spill] sm:$0xff] %v6039_v15  ;;  %v3035_v27 = vmul.f32 1.442695, %v3022_v14 }
 0x7cf   : > { %v1495_v6 = vsel %vm919_vm5, %v1494_v11, %v1493_v54 }
 0x7d0   : > { %v6031_v32 = vsel %vm923_vm6, %v1496_v20, %v1495_v6 }
 0x7d2   : > { %3219 = vperm.xlu2 %4238, %v4610_v12  }
 0x7d4   : > { %v4445_v34 = vpop.eup %4444 }
 0x7d5   : > { %v3328_v39 = vadd.f32 1.0, %v4445_v34  ;;  %v3331_v48 = vmul.f32 -0.5, %v4445_v34  ;;  %v3334_v25 = vand.u32 2147483647, %v4445_v34 }
 0x7d7   : > { %4446 = vlog2.f32 %v3328_v39  ;;  %v3332_v41 = vadd.f32 1.0, %v3331_v48  ;;  %vm3335_vm9 = vcmp.lt.f32.partialorder %v3334_v25, 0.0004427343 }
 0x7d8   : > { %4448 = vpow2.f32 %v3035_v27 }
 0x7d9   : > { %v3333_v60 = vmul.f32 %v4445_v34, %v3332_v41 }
 0x7da   : > { %4241 = vset.pattern.permute.xlu2 %v5120_v10  ;;  %v3280_v10 = vmax.f32 %v3272_v22, 0.0 }
 0x7dd   : > { %v4447_v29 = vpop.eup %4446 }
 0x7de   : > { %v3330_v4 = vmul.f32 0.6931472, %v4447_v29  ;;  %v6684_v29 = vld [vmem:[#allocation71_spill] sm:$0xff] }
 0x7e0   : > { %v3336_v54 = vsel %vm3335_vm9, %v3333_v60, %v3330_v4 }
 0x7e1   : > { %v3392_v11 = vadd.f32 %v3336_v54, %v3280_v10  ;;  %v4449_v10 = vpop.eup %4448 }
 0x7e2   : > { %3237 = vperm.xlu2 %4241, %v4610_v12   ;;  %v3089_v38 = vmul.f32 -0.5, %v4449_v10 }
 0x7ea   : > { %4242 = vset.pattern.permute.xlu2 %v6680_v37 }
 0x7f2   : > { %3243 = vperm.xlu2 %4242, %v4610_v12  }
 0x7fa   : > { %4244 = vset.pattern.permute.xlu2 %v6681_v7 }
 0x802   : > { %3255 = vperm.xlu2 %4244, %v4610_v12   ;;  %v6683_v12 = vld [vmem:[#allocation70_spill] sm:$0xff] }
 0x80a   : > { %4246 = vset.pattern.permute.xlu2 %v6600_v18 }
 0x80b   : > { %3411 = vperm.xlu2 %4246, %v3392_v11  }
 0x80d   : > { %v6042_v61 = vpop.xlane.xlu2 %3195 }
 0x815   : > { %v3205_v20 = vpop.xlane.xlu2 %3204 }
 0x816   : > { %v6051_v39 = vsub.f32 %v3205_v20, %v5776_v19  ;;  %v6685_v20 = vld [vmem:[#allocation73_spill] sm:$0xff] }
 0x818   : > { %v3292_v4 = vand.u32 2147483647, %v6051_v39 }
 0x81a   : > { %v3300_v28 = vsub.f32 0.0, %v3292_v4 }
 0x81d   : > { %v6044_v6 = vpop.permute.xlu2 %2385 }
 0x825   : > { %v6046_v2 = vpop.permute.xlu2 %2663 }
 0x82d   : > { %v2942_v3 = vpop.permute.xlu2 %2941 }
 0x82e   : > { %v2993_v22 = vsub.f32 %v6683_v12, %v2942_v3  ;;  %v3086_v3 = vadd.f32 1.0, %v4449_v10 }
 0x830   : > { %v3009_v37 = vand.u32 2147483647, %v2993_v22 }
 0x832   : > { %v3017_v34 = vsub.f32 0.0, %v3009_v37 }
 0x834   : > { %v3025_v48 = vmul.f32 1.442695, %v3017_v34  ;;  %v3313_v34 = vmul.f32 1.442695, %v3300_v28 }
 0x835   : > { %v3220_v41 = vpop.permute.xlu2 %3219 }
 0x836   : > { %4450 = vpow2.f32 %v3025_v48  ;;  %v6054_v25 = vsub.f32 %v6684_v29, %v3220_v41 }
 0x838   : > { %v3287_v60 = vand.u32 2147483647, %v6054_v25 }
 0x83a   : > { %v3295_v54 = vsub.f32 0.0, %v3287_v60 }
 0x83c   : > { %v4451_v11 = vpop.eup %4450  ;;  %v3303_v14 = vmul.f32 1.442695, %v3295_v54 }
 0x83d   : > { %v3041_v12 = vadd.f32 1.0, %v4451_v11  ;;  %v3238_v27 = vpop.permute.xlu2 %3237  ;;  %v3044_v19 = vmul.f32 -0.5, %v4451_v11  ;;  %v3047_v40 = vand.u32 2147483647, %v4451_v11 }
 0x83e   : > { %4452 = vpow2.f32 %v3303_v14  ;;  %v6059_v37 = vsub.f32 %v6685_v20, %v3238_v27  ;;  %v3001_v27 = vmax.f32 %v2993_v22, 0.0  ;;  %v3092_v20 = vand.u32 2147483647, %v4449_v10 }
 0x83f   : > { %4454 = vlog2.f32 %v3041_v12  ;;  %v3045_v41 = vadd.f32 1.0, %v3044_v19  ;;  %vm3048_vm10 = vcmp.lt.f32.partialorder %v3047_v40, 0.0004427343  ;;  %v3090_v12 = vadd.f32 1.0, %v3089_v38 }
 0x840   : > { %v3290_v48 = vand.u32 2147483647, %v6059_v37  ;;  %4456 = vlog2.f32 %v3086_v3  ;;  %vm3093_vm12 = vcmp.lt.f32.partialorder %v3092_v20, 0.0004427343  ;;  %v3006_v22 = vmax.f32 %v5936_v1, 0.0 }
 0x841   : > { %4458 = vpow2.f32 %v3313_v34  ;;  %v3046_v15 = vmul.f32 %v4451_v11, %v3045_v41  ;;  %v3091_v52 = vmul.f32 %v4449_v10, %v3090_v12  ;;  %v3282_v1 = vmax.f32 %v6059_v37, 0.0 }
 0x842   : > { %v3298_v29 = vsub.f32 0.0, %v3290_v48 }
 0x844   : > { %v4453_v60 = vpop.eup %4452  ;;  %v3309_v4 = vmul.f32 1.442695, %v3298_v29 }
 0x845   : > { %v4455_v54 = vpop.eup %4454  ;;  %v3319_v16 = vadd.f32 1.0, %v4453_v60  ;;  %v3322_v34 = vmul.f32 -0.5, %v4453_v60  ;;  %v3325_v40 = vand.u32 2147483647, %v4453_v60 }
 0x846   : > { %v3043_v44 = vmul.f32 0.6931472, %v4455_v54  ;;  %4460 = vpow2.f32 %v3309_v4  ;;  %v4457_v14 = vpop.eup %4456 }
 0x847   : > { %4462 = vlog2.f32 %v3319_v16  ;;  %v4459_v3 = vpop.eup %4458  ;;  %v3088_v19 = vmul.f32 0.6931472, %v4457_v14  ;;  %v3323_v38 = vadd.f32 1.0, %v3322_v34  ;;  %vm3326_vm13 = vcmp.lt.f32.partialorder %v3325_v40, 0.0004427343 }
 0x848   : > { %v3049_v28 = vsel %vm3048_vm10, %v3046_v15, %v3043_v44  ;;  %v3364_v29 = vadd.f32 1.0, %v4459_v3  ;;  %v3284_v40 = vmax.f32 %v6051_v39, 0.0 }
 0x849   : > { %v3113_v30 = vadd.f32 %v3049_v28, %v3001_v27  ;;  %v3094_v54 = vsel %vm3093_vm12, %v3091_v52, %v3088_v19  ;;  %v3324_v10 = vmul.f32 %v4453_v60, %v3323_v38  ;;  %v6686_v38 = vld [vmem:[#allocation75_spill] sm:$0xff] }
 0x84a   : > { %v3118_v44 = vadd.f32 %v3094_v54, %v3006_v22 }
 0x84b   : > { %3130 = vperm.xlu0 %4240, %v3113_v30   ;;  %v3367_v30 = vmul.f32 -0.5, %v4459_v3 }
 0x84c   : > { %v4461_v48 = vpop.eup %4460  ;;  %v6063_v14 = vpop.permute.xlu2 %3243 }
 0x84d   : > { %v3346_v0 = vadd.f32 1.0, %v4461_v48  ;;  %v3349_v11 = vmul.f32 -0.5, %v4461_v48  ;;  %v4463_v41 = vpop.eup %4462  ;;  %v3352_v4 = vand.u32 2147483647, %v4461_v48  ;;  %v3368_v19 = vadd.f32 1.0, %v3367_v30 }
 0x84e   : > { %v3321_v16 = vmul.f32 0.6931472, %v4463_v41 }
 0x84f   : > { %4464 = vlog2.f32 %v3346_v0  ;;  %v3350_v15 = vadd.f32 1.0, %v3349_v11  ;;  %v3279_v0 = vmax.f32 %v6054_v25, 0.0  ;;  %vm3353_vm14 = vcmp.lt.f32.partialorder %v3352_v4, 0.0004427343  ;;  %v6687_v4 = vld [vmem:[#allocation32_spill] sm:$0xff] }
 0x850   : > { %4466 = vlog2.f32 %v3364_v29  ;;  %v3327_v52 = vsel %vm3326_vm13, %v3324_v10, %v3321_v16  ;;  %v3370_v29 = vand.u32 2147483647, %v4459_v3  ;;  %v3369_v60 = vmul.f32 %v4459_v3, %v3368_v19  ;;  %v4122_v19 = vld [vmem:[%s4957_s12 + $0x280] sm:$0xff] }
 0x851   : > { %v3351_v28 = vmul.f32 %v4461_v48, %v3350_v15  ;;  %v3391_v54 = vadd.f32 %v3327_v52, %v3279_v0 }
 0x852   : > { %vm3371_vm15 = vcmp.lt.f32.partialorder %v3370_v29, 0.0004427343 }
 0x853   : > { %3145 = vperm.xlu0 %4240, %v3118_v44  }
 0x855   : > { %v4465_v27 = vpop.eup %4464 }
 0x856   : > { %v3348_v12 = vmul.f32 0.6931472, %v4465_v27  ;;  %v4467_v20 = vpop.eup %4466 }
 0x857   : > { %v3366_v41 = vmul.f32 0.6931472, %v4467_v20 }
 0x858   : > { %v3354_v34 = vsel %vm3353_vm14, %v3351_v28, %v3348_v12 }
 0x859   : > { %v3394_v11 = vadd.f32 %v3354_v34, %v3282_v1  ;;  %v3372_v48 = vsel %vm3371_vm15, %v3369_v60, %v3366_v41  ;;  %v4611_v34 = vld [vmem:[%s4800_s11] sm:$0xff]  ;;  %v4612_v41 = vld [vmem:[%s4800_s11 + $0x8] sm:$0xff] }
 0x85a   : > { %v3396_v16 = vadd.f32 %v3372_v48, %v3284_v40  ;;  %v3458_v29 = vmul.f32 %v4611_v34, %v4122_v19  ;;  %v4614_v48 = vld [vmem:[%s4805_s15 + $0x2] ss:$0 sm:$0xff] }
 0x85b   : > { %3408 = vperm.xlu0 %4240, %v3391_v54   ;;  %3417 = vperm.xlu2 %4246, %v3394_v11   ;;  %v4123_v11 = vld [vmem:[%s4957_s12 + $0x288] sm:$0xff]  ;;  %v4616_v19 = vld [vmem:[%s4800_s11 + $0x20] sm:$0xff] }
 0x85c   : > { %v3256_v22 = vpop.permute.xlu2 %3255  ;;  %v3466_v54 = vsel %vm865_vm0, %v3458_v29, 0.0  ;;  %v3459_v60 = vmul.f32 %v4612_v41, %v4123_v11 }
 0x85d   : > { %v3277_v44 = vsub.f32 %v6686_v38, %v3256_v22  ;;  %v4613_v22 = vld [vmem:[%s4805_s15 + $0xa] ss:$0 sm:$0xff] }
 0x85e   : > { %v3469_v38 = vsel %vm865_vm0, %v3459_v60, 0.0 }
 0x85f   : > { %v3293_v25 = vand.u32 2147483647, %v3277_v44  ;;  %v3285_v20 = vmax.f32 %v3277_v44, 0.0 }
 0x861   : > { %v3301_v37 = vsub.f32 0.0, %v3293_v25 }
 0x863   : > { %3423 = vperm.xlu0 %4240, %v3396_v16   ;;  %v3315_v15 = vmul.f32 1.442695, %v3301_v37  ;;  %v6699_v37 = vld [vmem:[#allocation56_spill] sm:$0xff] }
 0x865   : > { %4468 = vpow2.f32 %v3315_v15  ;;  %v3412_v44 = vpop.permute.xlu2 %3411 }
 0x86b   : > { %4248 = vset.pattern.permute.xlu0 %v6687_v4  ;;  %v4469_v30 = vpop.eup %4468 }
 0x86c   : > { %v3373_v10 = vadd.f32 1.0, %v4469_v30  ;;  %v3376_v3 = vmul.f32 -0.5, %v4469_v30  ;;  %v3379_v52 = vand.u32 2147483647, %v4469_v30 }
 0x86e   : > { %4470 = vlog2.f32 %v3373_v10  ;;  %v3377_v27 = vadd.f32 1.0, %v3376_v3  ;;  %vm3380_vm1 = vcmp.lt.f32.partialorder %v3379_v52, 0.0004427343 }
 0x870   : > { %v3378_v28 = vmul.f32 %v4469_v30, %v3377_v27  ;;  %v3432_v30 = vperm.slane %v3412_v44, %v5656_v46  ;;  %v4127_v27 = vld [vmem:[%s4957_s12 + $0x2a8] sm:$0xff]  ;;  %v6125_v44 = vsub.f32 %v5791_v63, %v5799_v13 }
 0x871   : > { %v3463_v52 = vmul.f32 %v5989_v21, %v4127_v27  ;;  %v6117_v21 = vsub.f32 %v5786_v5, %v5797_v33 }
 0x872   : > { %v3568_v33 = vand.u32 2147483647, %v6125_v44 }
 0x873   : > { %v3567_v60 = vand.u32 2147483647, %v6117_v21 }
 0x874   : > { %v4471_v12 = vpop.eup %4470 }
 0x875   : > { %v3375_v39 = vmul.f32 0.6931472, %v4471_v12 }
 0x877   : > { %v3381_v0 = vsel %vm3380_vm1, %v3378_v28, %v3375_v39  ;;  %v3481_v39 = vsel %vm865_vm0, %v3463_v52, 0.0  ;;  %v4129_v28 = vld [vmem:[%s4957_s12 + $0x2b8] sm:$0xff] }
 0x878   : > { %v3397_v1 = vadd.f32 %v3381_v0, %v3285_v20  ;;  %v4126_v20 = vld [vmem:[%s4957_s12 + $0x2a0] sm:$0xff]  ;;  %v4615_v0 = vld [vmem:[%s4800_s11 + $0x38] sm:$0xff] }
 0x879   : > { %v3462_v34 = vmul.f32 %v4616_v19, %v4126_v20 }
 0x87a   : > { %3426 = vperm.xlu2 %4246, %v3397_v1   ;;  %v3465_v1 = vmul.f32 %v4615_v0, %v4129_v28  ;;  %v6694_v0 = vld [vmem:[#allocation59_spill] sm:$0xff] }
 0x87c   : > { %v3487_v29 = vsel %vm865_vm0, %v3465_v1, 0.0  ;;  %v6695_v1 = vld [vmem:[#allocation50_spill] sm:$0xff] }
 0x87d   : > { %v6137_v19 = vsub.f32 %v6695_v1, %v6694_v0 }
 0x882   : > { %4247 = vset.pattern.permute.xlu2 %v6662_v42  ;;  %v6080_v42 = vpop.permute.xlu0 %2870 }
 0x88d   : > { %3467 = vadd.xlane.f32.xlu0 %v3466_v54  ;;  %v3478_v54 = vsel %vm865_vm0, %v3462_v34, 0.0 }
 0x8a1   : > { %3503 = vperm.xlu0 %4248, %v4613_v22  }
 0x8a3   : > { %3470 = vadd.xlane.f32.xlu2 %v3469_v38  ;;  %v3575_v38 = vsub.f32 0.0, %v3567_v60  ;;  %v6696_v60 = vld [vmem:[#allocation39_spill] sm:$0xff] }
 0x8a5   : > { %v3585_v5 = vmul.f32 1.442695, %v3575_v38 }
 0x8a7   : > { %4472 = vpow2.f32 %v3585_v5 }
 0x8a9   : > { %4249 = vset.pattern.permute.xlu0 %v5019_v58 }
 0x8b1   : > { %1315 = vperm.xlu0 %4249, %v4614_v48  }
 0x8b5   : > { %v6082_v40 = vpop.permute.xlu2 %3417 }
 0x8b6   : > { %6688 = vst [vmem:[#allocation35_spill] sm:$0xff] %v6082_v40 }
 0x8bb   : > { %3497 = vperm.xlu2 %4247, %v4613_v22  }
 0x8bd   : > { %v6086_v16 = vpop.permute.xlu0 %3130 }
 0x8c3   : > { %4254 = vset.pattern.permute.xlu2 %v5137_v31 }
 0x8c5   : > { %v6091_v58 = vpop.permute.xlu0 %3145 }
 0x8cd   : > { %v3409_v4 = vpop.permute.xlu0 %3408 }
 0x8ce   : > { %v3431_v10 = vperm.slane %v3409_v4, %v5653_v43 }
 0x8d0   : > { %v6098_v3 = vsel %vm903_vm11, %v3432_v30, %v3431_v10  ;;  %v6693_v30 = vld [vmem:[#allocation40_spill] sm:$0xff] }
 0x8d1   : > { %6689 = vst [vmem:[#allocation37_spill] sm:$0xff] %v6098_v3 }
 0x8d4   : > { %v6119_v11 = vpop.permute.xlu2 %3426 }
 0x8d5   : > { %v6102_v12 = vpop.permute.xlu0 %3423  ;;  %6691 = vst [vmem:[#allocation38_spill] sm:$0xff] %v6119_v11 }
 0x8d6   : > { %6690 = vst [vmem:[#allocation33_spill] sm:$0xff] %v6102_v12 }
 0x8db   : > { %3482 = vadd.xlane.f32.xlu0 %v3481_v39 }
 0x8e3   : > { %3488 = vadd.xlane.f32.xlu0 %v3487_v29 }
 0x8e4   : > { %3479 = vadd.xlane.f32.xlu2 %v3478_v54  ;;  %v4473_v54 = vpop.eup %4472 }
 0x8f7   : > { %3539 = vperm.xlu0 %4249, %v4613_v22  }
 0x8fc   : > { %3527 = vperm.xlu2 %4254, %v4613_v22  }
 0x8ff   : > { %4257 = vset.pattern.permute.xlu0 %v6600_v18 }
 0x900   : > { %v3468_v41 = vpop.xlane.xlu0 %3467 }
 0x904   : > { %4255 = vset.pattern.permute.xlu2 %v6681_v7 }
 0x90c   : > { %3533 = vperm.xlu2 %4255, %v4613_v22   ;;  %v6692_v22 = vld [vmem:[#allocation54_spill] sm:$0xff] }
 0x90d   : > { %v6129_v10 = vsub.f32 %v6693_v30, %v6692_v22  ;;  %v1623_v22 = vand.u32 2147483647, %v6137_v19 }
 0x90f   : > { %v1621_v39 = vand.u32 2147483647, %v6129_v10 }
 0x911   : > { %v1629_v13 = vsub.f32 0.0, %v1621_v39  ;;  %v6698_v39 = vld [vmem:[#allocation51_spill] sm:$0xff] }
 0x913   : > { %v3504_v48 = vpop.permute.xlu0 %3503 }
 0x914   : > { %4256 = vset.pattern.permute.xlu2 %v6600_v18  ;;  %v3576_v18 = vsub.f32 0.0, %v3568_v33 }
 0x916   : > { %v3471_v4 = vpop.xlane.xlu2 %3470  ;;  %v3587_v34 = vmul.f32 1.442695, %v3576_v18 }
 0x917   : > { %v3550_v7 = vsub.f32 %v3471_v4, %v3504_v48  ;;  %v1639_v4 = vmul.f32 1.442695, %v1629_v13  ;;  %v3618_v13 = vmul.f32 -0.5, %v4473_v54 }
 0x919   : > { %v3566_v27 = vand.u32 2147483647, %v3550_v7 }
 0x91b   : > { %v3574_v52 = vsub.f32 0.0, %v3566_v27 }
 0x91d   : > { %v3583_v28 = vmul.f32 1.442695, %v3574_v52  ;;  %v6697_v52 = vld [vmem:[#allocation46_spill] sm:$0xff] }
 0x91e   : > { %v3498_v20 = vpop.permute.xlu2 %3497  ;;  %v6146_v18 = vsub.f32 %v6698_v39, %v6697_v52  ;;  %v3621_v39 = vand.u32 2147483647, %v4473_v54 }
 0x91f   : > { %4474 = vpow2.f32 %v3583_v28  ;;  %v6133_v63 = vsub.f32 %v3468_v41, %v3498_v20  ;;  %v3615_v41 = vadd.f32 1.0, %v4473_v54  ;;  %v1631_v28 = vsub.f32 0.0, %v1623_v22 }
 0x920   : > { %4476 = vpow2.f32 %v3587_v34  ;;  %v3558_v22 = vmax.f32 %v3550_v7, 0.0  ;;  %vm6156_vm8 = vcmp.lt.f32.partialorder %v3621_v39, 0.0004427343  ;;  %v6704_v39 = vld [vmem:[#allocation52_spill] sm:$0xff] }
 0x923   : > { %v1316_v29 = vpop.permute.xlu0 %1315 }
 0x924   : > { %v6140_v38 = vsub.f32 %v6696_v60, %v1316_v29  ;;  %v1626_v29 = vand.u32 2147483647, %v6146_v18  ;;  %v1643_v60 = vmul.f32 1.442695, %v1631_v28 }
 0x925   : > { %v4475_v48 = vpop.eup %4474 }
 0x926   : > { %v1348_v30 = vand.u32 2147483647, %v6140_v38  ;;  %v3606_v5 = vadd.f32 1.0, %v4475_v48  ;;  %v3609_v33 = vmul.f32 -0.5, %v4475_v48  ;;  %v4477_v0 = vpop.eup %4476  ;;  %v3612_v34 = vand.u32 2147483647, %v4475_v48 }
 0x927   : > { %v3624_v25 = vadd.f32 1.0, %v4477_v0 }
 0x928   : > { %v1356_v27 = vsub.f32 0.0, %v1348_v30  ;;  %4478 = vlog2.f32 %v3606_v5  ;;  %v3610_v1 = vadd.f32 1.0, %v3609_v33  ;;  %vm3613_vm0 = vcmp.lt.f32.partialorder %v3612_v34, 0.0004427343  ;;  %v6700_v33 = vld [vmem:[#allocation47_spill] sm:$0xff] }
 0x929   : > { %4480 = vpow2.f32 %v1639_v4  ;;  %v3619_v4 = vadd.f32 1.0, %v3618_v13 }
 0x92a   : > { %v1371_v20 = vmul.f32 1.442695, %v1356_v27  ;;  %4482 = vlog2.f32 %v3615_v41  ;;  %v3611_v15 = vmul.f32 %v4475_v48, %v3610_v1  ;;  %v1634_v27 = vsub.f32 0.0, %v1626_v29 }
 0x92b   : > { %v3627_v48 = vmul.f32 -0.5, %v4477_v0 }
 0x92c   : > { %4484 = vpow2.f32 %v1371_v20  ;;  %v6153_v20 = vsub.f32 %v6700_v33, %v6699_v37  ;;  %v1649_v34 = vmul.f32 1.442695, %v1634_v27 }
 0x92d   : > { %4486 = vpow2.f32 %v1643_v60 }
 0x92e   : > { %v4479_v31 = vpop.eup %4478  ;;  %4488 = vlog2.f32 %v3624_v25  ;;  %v1899_v37 = vand.u32 2147483647, %v6153_v20 }
 0x92f   : > { %v6149_v30 = vpop.eup %4480  ;;  %v3608_v5 = vmul.f32 0.6931472, %v4479_v31  ;;  %v3620_v31 = vmul.f32 %v4473_v54, %v3619_v4  ;;  %v3630_v4 = vand.u32 2147483647, %v4477_v0 }
 0x930   : > { %v4483_v52 = vpop.eup %4482  ;;  %v1669_v28 = vadd.f32 1.0, %v6149_v30 }
 0x931   : > { %v3614_v12 = vsel %vm3613_vm0, %v3611_v15, %v3608_v5  ;;  %v3617_v13 = vmul.f32 0.6931472, %v4483_v52  ;;  %v3559_v15 = vmax.f32 %v6117_v21, 0.0  ;;  %v1672_v52 = vmul.f32 -0.5, %v6149_v30 }
 0x932   : > { %v4485_v41 = vpop.eup %4484  ;;  %v3670_v11 = vadd.f32 %v3614_v12, %v3558_v22  ;;  %v3628_v12 = vadd.f32 1.0, %v3627_v48  ;;  %vm6169_vm9 = vcmp.lt.f32.partialorder %v3630_v4, 0.0004427343  ;;  %v6707_v4 = vld [vmem:[#allocation55_spill] sm:$0xff] }
 0x933   : > { %v1436_v40 = vadd.f32 1.0, %v4485_v41  ;;  %v1439_v1 = vmul.f32 -0.5, %v4485_v41  ;;  %v4487_v29 = vpop.eup %4486  ;;  %v3623_v25 = vsel %vm6156_vm8, %v3620_v31, %v3617_v13  ;;  %v1442_v5 = vand.u32 2147483647, %v4485_v41 }
 0x934   : > { %3689 = vperm.xlu2 %4256, %v3670_v11   ;;  %v4489_v60 = vpop.eup %4488  ;;  %v6703_v11 = vld [vmem:[#allocation60_spill] sm:$0xff]  ;;  %v1687_v33 = vadd.f32 1.0, %v4487_v29  ;;  %v3671_v21 = vadd.f32 %v3623_v25, %v3559_v15  ;;  %v3629_v3 = vmul.f32 %v4477_v0, %v3628_v12  ;;  %v1675_v15 = vand.u32 2147483647, %v6149_v30 }
 0x935   : > { %4490 = vlog2.f32 %v1436_v40  ;;  %v1440_v54 = vadd.f32 1.0, %v1439_v1  ;;  %v1907_v40 = vsub.f32 0.0, %v1899_v37  ;;  %v6167_v22 = vsub.f32 %v6704_v39, %v6703_v11 }
 0x936   : > { %4492 = vlog2.f32 %v1669_v28  ;;  %v3626_v28 = vmul.f32 0.6931472, %v4489_v60  ;;  %v1340_v1 = vmax.f32 %v6140_v38, 0.0  ;;  %vm1443_vm10 = vcmp.lt.f32.partialorder %v1442_v5, 0.0004427343  ;;  %v6708_v5 = vld [vmem:[#allocation53_spill] sm:$0xff] }
 0x937   : > { %4494 = vpow2.f32 %v1649_v34  ;;  %v1441_v13 = vmul.f32 %v4485_v41, %v1440_v54  ;;  %v1673_v34 = vadd.f32 1.0, %v1672_v52  ;;  %v1917_v37 = vmul.f32 1.442695, %v1907_v40 }
 0x938   : > { %v1901_v11 = vand.u32 2147483647, %v6167_v22  ;;  %4496 = vlog2.f32 %v1687_v33  ;;  %v3560_v0 = vmax.f32 %v6125_v44, 0.0  ;;  %v1690_v54 = vmul.f32 -0.5, %v4487_v29 }
 0x939   : > { %v3632_v60 = vsel %vm6169_vm9, %v3629_v3, %v3626_v28  ;;  %v1674_v38 = vmul.f32 %v6149_v30, %v1673_v34  ;;  %4498 = vpow2.f32 %v1917_v37  ;;  %v6182_v52 = vsub.f32 %v6708_v5, %v6707_v4 }
 0x93a   : > { %v1909_v40 = vsub.f32 0.0, %v1901_v11  ;;  %vm1676_vm12 = vcmp.lt.f32.partialorder %v1675_v15, 0.0004427343  ;;  %v3672_v33 = vadd.f32 %v3632_v60, %v3560_v0  ;;  %v6710_v15 = vld [vmem:[#allocation63_spill] sm:$0xff] }
 0x93b   : > { %v4491_v27 = vpop.eup %4490  ;;  %v1904_v3 = vand.u32 2147483647, %v6182_v52 }
 0x93c   : > { %v1438_v7 = vmul.f32 0.6931472, %v4491_v27  ;;  %v4493_v31 = vpop.eup %4492  ;;  %3692 = vperm.xlu2 %4256, %v3671_v21   ;;  %v1691_v21 = vadd.f32 1.0, %v1690_v54  ;;  %v1921_v28 = vmul.f32 1.442695, %v1909_v40 }
 0x93d   : > { %v4495_v25 = vpop.eup %4494  ;;  %v1671_v12 = vmul.f32 0.6931472, %v4493_v31  ;;  %v1693_v31 = vand.u32 2147483647, %v4487_v29  ;;  %v1912_v11 = vsub.f32 0.0, %v1904_v3 }
 0x93e   : > { %v1444_v39 = vsel %vm1443_vm10, %v1441_v13, %v1438_v7  ;;  %v1714_v27 = vadd.f32 1.0, %v4495_v25  ;;  %v4497_v7 = vpop.eup %4496  ;;  %v1613_v13 = vmax.f32 %v6129_v10, 0.0  ;;  %v1692_v37 = vmul.f32 %v4487_v29, %v1691_v21 }
 0x93f   : > { %v1452_v41 = vadd.f32 %v1444_v39, %v1340_v1  ;;  %v1677_v44 = vsel %vm1676_vm12, %v1674_v38, %v1671_v12  ;;  %v4499_v48 = vpop.eup %4498  ;;  %v1717_v1 = vmul.f32 -0.5, %v4495_v25  ;;  %v1689_v34 = vmul.f32 0.6931472, %v4497_v7  ;;  %v6709_v39 = vld [vmem:[#allocation58_spill] sm:$0xff]  ;;  %v6711_v7 = vld [vmem:[#allocation64_spill] sm:$0xff] }
 0x940   : > { %v1725_v30 = vadd.f32 %v1677_v44, %v1613_v13  ;;  %4500 = vlog2.f32 %v1714_v27  ;;  %vm1694_vm13 = vcmp.lt.f32.partialorder %v1693_v31, 0.0004427343  ;;  %v6188_v0 = vsub.f32 %v6710_v15, %v6709_v39 }
 0x941   : > { %1483 = vperm.xlu1 %4253, %v1452_v41   ;;  %4502 = vpow2.f32 %v1921_v28  ;;  %v1947_v10 = vadd.f32 1.0, %v4499_v48  ;;  %v1615_v41 = vmax.f32 %v6137_v19, 0.0  ;;  %v1718_v12 = vadd.f32 1.0, %v1717_v1 }
 0x942   : > { %v1695_v54 = vsel %vm1694_vm13, %v1692_v37, %v1689_v34  ;;  %v1720_v38 = vand.u32 2147483647, %v4495_v25  ;;  %v1927_v4 = vmul.f32 1.442695, %v1912_v11  ;;  %v2175_v5 = vand.u32 2147483647, %v6188_v0 }
 0x943   : > { %4504 = vlog2.f32 %v1947_v10  ;;  %v1727_v29 = vadd.f32 %v1695_v54, %v1615_v41  ;;  %v1950_v44 = vmul.f32 -0.5, %v4499_v48  ;;  %v6194_v19 = vsub.f32 %v6711_v7, %v5918_v47 }
 0x944   : > { %3695 = vperm.xlu2 %4256, %v3672_v33   ;;  %v1719_v33 = vmul.f32 %v4495_v25, %v1718_v12  ;;  %vm1721_vm14 = vcmp.lt.f32.partialorder %v1720_v38, 0.0004427343  ;;  %4506 = vpow2.f32 %v1927_v4  ;;  %v2183_v21 = vsub.f32 0.0, %v2175_v5 }
 0x945   : > { %v1618_v13 = vmax.f32 %v6146_v18, 0.0  ;;  %v1951_v1 = vadd.f32 1.0, %v1950_v44  ;;  %v2178_v37 = vand.u32 2147483647, %v6194_v19  ;;  %v1953_v11 = vand.u32 2147483647, %v4499_v48 }
 0x946   : > { %v4501_v60 = vpop.eup %4500  ;;  %v2191_v34 = vmul.f32 1.442695, %v2183_v21  ;;  %v6712_v18 = vld [vmem:[#allocation57_spill] sm:$0xff] }
 0x947   : > { %v4503_v40 = vpop.eup %4502  ;;  %v1716_v27 = vmul.f32 0.6931472, %v4501_v60  ;;  %v1952_v47 = vmul.f32 %v4499_v48, %v1951_v1  ;;  %v6202_v12 = vsub.f32 %v6712_v18, %v5849_v55  ;;  %v2186_v54 = vsub.f32 0.0, %v2178_v37  ;;  %v6715_v1 = vld [vmem:[#allocation65_spill] sm:$0xff] }
 0x948   : > { %v1965_v31 = vadd.f32 1.0, %v4503_v40  ;;  %v1968_v10 = vmul.f32 -0.5, %v4503_v40  ;;  %vm1954_vm15 = vcmp.lt.f32.partialorder %v1953_v11, 0.0004427343 }
 0x949   : > { %1746 = vperm.xlu1 %4253, %v1725_v30   ;;  %v1722_v3 = vsel %vm1721_vm14, %v1719_v33, %v1716_v27  ;;  %v4505_v28 = vpop.eup %4504  ;;  %v1971_v27 = vand.u32 2147483647, %v4503_v40  ;;  %v2180_v33 = vand.u32 2147483647, %v6202_v12  ;;  %v2197_v44 = vmul.f32 1.442695, %v2186_v54 }
 0x94a   : > { %v1730_v25 = vadd.f32 %v1722_v3, %v1618_v13  ;;  %4508 = vlog2.f32 %v1965_v31  ;;  %v4507_v39 = vpop.eup %4506  ;;  %v1949_v15 = vmul.f32 0.6931472, %v4505_v28  ;;  %v1969_v4 = vadd.f32 1.0, %v1968_v10 }
 0x94b   : > { %4510 = vpow2.f32 %v2191_v34  ;;  %v1992_v60 = vadd.f32 1.0, %v4507_v39  ;;  %v1995_v13 = vmul.f32 -0.5, %v4507_v39  ;;  %vm6206_vm1 = vcmp.lt.f32.partialorder %v1971_v27, 0.0004427343 }
 0x94c   : > { %v1955_v38 = vsel %vm1954_vm15, %v1952_v47, %v1949_v15  ;;  %v1970_v55 = vmul.f32 %v4503_v40, %v1969_v4  ;;  %v6212_v34 = vsub.f32 %v6715_v1, %v6044_v6  ;;  %v2188_v37 = vsub.f32 0.0, %v2180_v33 }
 0x94d   : > { %4512 = vlog2.f32 %v1992_v60  ;;  %v1996_v40 = vadd.f32 1.0, %v1995_v13  ;;  %v1998_v18 = vand.u32 2147483647, %v4507_v39 }
 0x94e   : > { %v3483_v30 = vpop.xlane.xlu0 %3482  ;;  %4514 = vpow2.f32 %v2197_v44  ;;  %v2453_v54 = vand.u32 2147483647, %v6212_v34  ;;  %v2201_v60 = vmul.f32 1.442695, %v2188_v37 }
 0x94f   : > { %vm6223_vm0 = vcmp.lt.f32.partialorder %v1998_v18, 0.0004427343 }
 0x950   : > { %v4509_v5 = vpop.eup %4508  ;;  %v2461_v27 = vsub.f32 0.0, %v2453_v54 }
 0x951   : > { %1752 = vperm.xlu1 %4253, %v1727_v29   ;;  %v1891_v29 = vmax.f32 %v6153_v20, 0.0  ;;  %v4511_v7 = vpop.eup %4510  ;;  %v1967_v31 = vmul.f32 0.6931472, %v4509_v5 }
 0x952   : > { %v2207_v11 = vadd.f32 1.0, %v4511_v7  ;;  %v2210_v44 = vmul.f32 -0.5, %v4511_v7  ;;  %v2469_v37 = vmul.f32 1.442695, %v2461_v27 }
 0x953   : > { %v2003_v21 = vadd.f32 %v1955_v38, %v1891_v29  ;;  %v1973_v10 = vsel %vm6206_vm1, %v1970_v55, %v1967_v31  ;;  %v4513_v47 = vpop.eup %4512  ;;  %v1896_v55 = vmax.f32 %v6182_v52, 0.0 }
 0x954   : > { %4516 = vlog2.f32 %v2207_v11  ;;  %v6221_v4 = vpop.eup %4514  ;;  %v1994_v5 = vmul.f32 0.6931472, %v4513_v47 }
 0x956   : > { %v3489_v48 = vpop.xlane.xlu0 %3488 }
 0x957   : > { %v6198_v41 = vpop.xlane.xlu2 %3479 }
 0x959   : > { %1761 = vperm.xlu1 %4253, %v1730_v25   ;;  %v1893_v25 = vmax.f32 %v6167_v22, 0.0  ;;  %v1997_v22 = vmul.f32 %v4507_v39, %v1996_v40  ;;  %v2234_v39 = vadd.f32 1.0, %v6221_v4 }
 0x95a   : > { %v4517_v1 = vpop.eup %4516 }
 0x95b   : > { %v2209_v52 = vmul.f32 0.6931472, %v4517_v1 }
 0x95f   : > { %v3528_v3 = vpop.permute.xlu2 %3527 }
 0x960   : > { %v6214_v20 = vsub.f32 %v3483_v30, %v3528_v3  ;;  %v2005_v30 = vadd.f32 %v1973_v10, %v1893_v25  ;;  %v2000_v3 = vsel %vm6223_vm0, %v1997_v22, %v1994_v5  ;;  %v2211_v25 = vadd.f32 1.0, %v2210_v44 }
 0x961   : > { %2024 = vperm.xlu1 %4253, %v2003_v21   ;;  %v6718_v21 = vld [vmem:[#allocation66_spill] sm:$0xff]  ;;  %v2213_v10 = vand.u32 2147483647, %v4511_v7 }
 0x962   : > { %v3570_v15 = vand.u32 2147483647, %v6214_v20  ;;  %v6229_v13 = vsub.f32 %v6718_v21, %v5926_v57  ;;  %v2008_v57 = vadd.f32 %v2000_v3, %v1896_v55  ;;  %v2167_v21 = vmax.f32 %v6188_v0, 0.0 }
 0x963   : > { %vm2214_vm8 = vcmp.lt.f32.partialorder %v2213_v10, 0.0004427343 }
 0x964   : > { %v3578_v6 = vsub.f32 0.0, %v3570_v15  ;;  %v2456_v11 = vand.u32 2147483647, %v6229_v13 }
 0x966   : > { %v3591_v38 = vmul.f32 1.442695, %v3578_v6  ;;  %v6719_v6 = vld [vmem:[#allocation88_spill] sm:$0xff]  ;;  %v2464_v5 = vsub.f32 0.0, %v2456_v11  ;;  %v3562_v11 = vmax.f32 %v6214_v20, 0.0 }
 0x968   : > { %4518 = vpow2.f32 %v3591_v38  ;;  %v2237_v38 = vmul.f32 -0.5, %v6221_v4 }
 0x969   : > { %2030 = vperm.xlu1 %4253, %v2005_v30   ;;  %v3540_v33 = vpop.permute.xlu0 %3539  ;;  %4520 = vpow2.f32 %v2201_v60  ;;  %v6243_v60 = vsub.f32 %v6719_v6, %v5851_v62  ;;  %v2212_v30 = vmul.f32 %v4511_v7, %v2211_v25 }
 0x96a   : > { %v6231_v31 = vsub.f32 %v3489_v48, %v3540_v33  ;;  %4522 = vlog2.f32 %v2234_v39  ;;  %v2238_v55 = vadd.f32 1.0, %v2237_v38  ;;  %v2475_v39 = vmul.f32 1.442695, %v2464_v5 }
 0x96b   : > { %4524 = vpow2.f32 %v2469_v37  ;;  %v2215_v27 = vsel %vm2214_vm8, %v2212_v30, %v2209_v52  ;;  %v2458_v62 = vand.u32 2147483647, %v6243_v60 }
 0x96c   : > { %v3572_v28 = vand.u32 2147483647, %v6231_v31  ;;  %v2279_v7 = vadd.f32 %v2215_v27, %v2167_v21  ;;  %v2239_v52 = vmul.f32 %v6221_v4, %v2238_v55 }
 0x96d   : > { %v2466_v0 = vsub.f32 0.0, %v2458_v62 }
 0x96e   : > { %v3580_v15 = vsub.f32 0.0, %v3572_v28  ;;  %v4519_v40 = vpop.eup %4518  ;;  %v2240_v28 = vand.u32 2147483647, %v6221_v4 }
 0x96f   : > { %v6239_v48 = vpop.eup %4520  ;;  %v3642_v47 = vadd.f32 1.0, %v4519_v40  ;;  %v3645_v18 = vmul.f32 -0.5, %v4519_v40  ;;  %v3648_v33 = vand.u32 2147483647, %v4519_v40 }
 0x970   : > { %v3595_v54 = vmul.f32 1.442695, %v3580_v15  ;;  %v2252_v22 = vadd.f32 1.0, %v6239_v48  ;;  %v4523_v44 = vpop.eup %4522  ;;  %vm2241_vm10 = vcmp.lt.f32.partialorder %v2240_v28, 0.0004427343  ;;  %v6721_v28 = vld [vmem:[#allocation69_spill] sm:$0xff] }
 0x971   : > { %2039 = vperm.xlu1 %4253, %v2008_v57   ;;  %4526 = vlog2.f32 %v3642_v47  ;;  %v3646_v29 = vadd.f32 1.0, %v3645_v18  ;;  %v6249_v3 = vpop.eup %4524  ;;  %v2236_v25 = vmul.f32 0.6931472, %v4523_v44  ;;  %vm3649_vm9 = vcmp.lt.f32.partialorder %v3648_v33, 0.0004427343  ;;  %v6720_v47 = vld [vmem:[#allocation67_spill] sm:$0xff] }
 0x972   : > { %4528 = vpow2.f32 %v3595_v54  ;;  %v2255_v57 = vmul.f32 -0.5, %v6239_v48  ;;  %v6257_v18 = vsub.f32 %v6720_v47, %v6046_v2  ;;  %v2258_v2 = vand.u32 2147483647, %v6239_v48 }
 0x973   : > { %4530 = vlog2.f32 %v2252_v22  ;;  %v3647_v1 = vmul.f32 %v4519_v40, %v3646_v29  ;;  %v2485_v40 = vadd.f32 1.0, %v6249_v3  ;;  %v2242_v30 = vsel %vm2241_vm10, %v2239_v52, %v2236_v25 }
 0x974   : > { %4532 = vpow2.f32 %v2475_v39  ;;  %v2479_v22 = vmul.f32 1.442695, %v2466_v0  ;;  %v2170_v29 = vmax.f32 %v6194_v19, 0.0  ;;  %v2256_v27 = vadd.f32 1.0, %v2255_v57 }
 0x975   : > { %v2731_v4 = vand.u32 2147483647, %v6257_v18  ;;  %v6266_v19 = vsub.f32 %v6721_v28, %v5929_v49  ;;  %vm2259_vm12 = vcmp.lt.f32.partialorder %v2258_v2, 0.0004427343  ;;  %v2172_v47 = vmax.f32 %v6202_v12, 0.0  ;;  %v6722_v28 = vld [vmem:[#allocation87_spill] sm:$0xff] }
 0x976   : > { %v2282_v33 = vadd.f32 %v2242_v30, %v2170_v29  ;;  %v2736_v2 = vand.u32 2147483647, %v5855_v26 }
 0x977   : > { %v4527_v37 = vpop.eup %4526 }
 0x978   : > { %v4529_v15 = vpop.eup %4528  ;;  %v3644_v10 = vmul.f32 0.6931472, %v4527_v37  ;;  %v2739_v37 = vsub.f32 0.0, %v2731_v4  ;;  %v2445_v4 = vmax.f32 %v6212_v34, 0.0 }
 0x979   : > { %2296 = vperm.xlu1 %4253, %v2279_v7   ;;  %v3660_v54 = vadd.f32 1.0, %v4529_v15  ;;  %v3663_v20 = vmul.f32 -0.5, %v4529_v15  ;;  %v4531_v5 = vpop.eup %4530  ;;  %v3666_v55 = vand.u32 2147483647, %v4529_v15  ;;  %v2257_v7 = vmul.f32 %v6239_v48, %v2256_v27 }
 0x97a   : > { %v3650_v6 = vsel %vm3649_vm9, %v3647_v1, %v3644_v10  ;;  %v4533_v21 = vpop.eup %4532  ;;  %v2254_v62 = vmul.f32 0.6931472, %v4531_v5  ;;  %v2488_v1 = vmul.f32 -0.5, %v6249_v3  ;;  %v3564_v10 = vmax.f32 %v6231_v31, 0.0 }
 0x97b   : > { %v3674_v38 = vadd.f32 %v3650_v6, %v3562_v11  ;;  %4534 = vlog2.f32 %v3660_v54  ;;  %v3664_v44 = vadd.f32 1.0, %v3663_v20  ;;  %v2512_v25 = vadd.f32 1.0, %v4533_v21 }
 0x97c   : > { %4536 = vlog2.f32 %v2485_v40  ;;  %v2260_v0 = vsel %vm2259_vm12, %v2257_v7, %v2254_v62  ;;  %vm3667_vm13 = vcmp.lt.f32.partialorder %v3666_v55, 0.0004427343  ;;  %v2734_v48 = vand.u32 2147483647, %v6266_v19 }
 0x97d   : > { %3701 = vperm.xlu2 %4256, %v3674_v38   ;;  %4538 = vpow2.f32 %v2479_v22  ;;  %v3665_v57 = vmul.f32 %v4529_v15, %v3664_v44  ;;  %v2489_v40 = vadd.f32 1.0, %v2488_v1  ;;  %v2747_v49 = vmul.f32 1.442695, %v2739_v37  ;;  %v6723_v1 = vld [vmem:[#allocation68_spill] sm:$0xff] }
 0x97e   : > { %v2284_v30 = vadd.f32 %v2260_v0, %v2172_v47  ;;  %4540 = vlog2.f32 %v2512_v25  ;;  %v2491_v38 = vand.u32 2147483647, %v6249_v3  ;;  %v2515_v15 = vmul.f32 -0.5, %v4533_v21 }
 0x97f   : > { %v2742_v31 = vsub.f32 0.0, %v2734_v48  ;;  %v2490_v22 = vmul.f32 %v6249_v3, %v2489_v40  ;;  %4542 = vpow2.f32 %v2747_v49  ;;  %v2518_v62 = vand.u32 2147483647, %v4533_v21 }
 0x980   : > { %vm2492_vm14 = vcmp.lt.f32.partialorder %v2491_v38, 0.0004427343  ;;  %v6278_v37 = vsub.f32 %v6723_v1, %v6722_v28  ;;  %v2744_v25 = vsub.f32 0.0, %v2736_v2 }
 0x981   : > { %2305 = vperm.xlu1 %4253, %v2282_v33   ;;  %v4535_v39 = vpop.eup %4534  ;;  %v2516_v33 = vadd.f32 1.0, %v2515_v15  ;;  %v2753_v44 = vmul.f32 1.442695, %v2742_v31  ;;  %vm2519_vm15 = vcmp.lt.f32.partialorder %v2518_v62, 0.0004427343  ;;  %v6725_v62 = vld [vmem:[#allocation89_spill] sm:$0xff] }
 0x982   : > { %v3662_v11 = vmul.f32 0.6931472, %v4535_v39  ;;  %v4537_v52 = vpop.eup %4536 }
 0x983   : > { %v4539_v20 = vpop.eup %4538  ;;  %v2487_v5 = vmul.f32 0.6931472, %v4537_v52  ;;  %v2448_v52 = vmax.f32 %v6229_v13, 0.0 }
 0x984   : > { %v3668_v54 = vsel %vm3667_vm13, %v3665_v57, %v3662_v11  ;;  %v2530_v12 = vadd.f32 1.0, %v4539_v20  ;;  %v4541_v27 = vpop.eup %4540  ;;  %v2533_v3 = vmul.f32 -0.5, %v4539_v20  ;;  %v2517_v11 = vmul.f32 %v4533_v21, %v2516_v33  ;;  %v6724_v21 = vld [vmem:[#allocation72_spill] sm:$0xff] }
 0x985   : > { %v3676_v6 = vadd.f32 %v3668_v54, %v3564_v10  ;;  %v2493_v29 = vsel %vm2492_vm14, %v2490_v22, %v2487_v5  ;;  %v4543_v39 = vpop.eup %4542  ;;  %v2514_v7 = vmul.f32 0.6931472, %v4541_v27  ;;  %v3010_v10 = vand.u32 2147483647, %v6278_v37 }
 0x986   : > { %4544 = vlog2.f32 %v2530_v12  ;;  %v2557_v55 = vadd.f32 %v2493_v29, %v2445_v4  ;;  %v2763_v34 = vadd.f32 1.0, %v4543_v39  ;;  %v2534_v47 = vadd.f32 1.0, %v2533_v3 }
 0x987   : > { %3707 = vperm.xlu2 %4256, %v3676_v6   ;;  %4546 = vpow2.f32 %v2753_v44  ;;  %v2520_v57 = vsel %vm2519_vm15, %v2517_v11, %v2514_v7  ;;  %v2757_v54 = vmul.f32 1.442695, %v2744_v25  ;;  %v2536_v48 = vand.u32 2147483647, %v4539_v20 }
 0x988   : > { %v2560_v40 = vadd.f32 %v2520_v57, %v2448_v52  ;;  %4548 = vlog2.f32 %v2763_v34  ;;  %v2535_v38 = vmul.f32 %v4539_v20, %v2534_v47  ;;  %v6284_v5 = vsub.f32 %v6724_v21, %v5932_v50 }
 0x989   : > { %2311 = vperm.xlu1 %4253, %v2284_v30   ;;  %v3018_v30 = vsub.f32 0.0, %v3010_v10  ;;  %4550 = vpow2.f32 %v2757_v54  ;;  %v2766_v15 = vmul.f32 -0.5, %v4543_v39  ;;  %vm2537_vm1 = vcmp.lt.f32.partialorder %v2536_v48, 0.0004427343 }
 0x98a   : > { %v2450_v12 = vmax.f32 %v6243_v60, 0.0  ;;  %v3012_v27 = vand.u32 2147483647, %v6284_v5  ;;  %v2769_v33 = vand.u32 2147483647, %v4543_v39  ;;  %v2723_v34 = vmax.f32 %v6257_v18, 0.0 }
 0x98b   : > { %v3027_v29 = vmul.f32 1.442695, %v3018_v30  ;;  %v2767_v4 = vadd.f32 1.0, %v2766_v15  ;;  %v2726_v21 = vmax.f32 %v6266_v19, 0.0 }
 0x98c   : > { %v4545_v0 = vpop.eup %4544  ;;  %v3020_v28 = vsub.f32 0.0, %v3012_v27  ;;  %vm2770_vm0 = vcmp.lt.f32.partialorder %v2769_v33, 0.0004427343 }
 0x98d   : > { %v4547_v49 = vpop.eup %4546  ;;  %v2532_v6 = vmul.f32 0.6931472, %v4545_v0  ;;  %v2768_v1 = vmul.f32 %v4543_v39, %v2767_v4  ;;  %v6296_v39 = vsub.f32 %v6042_v61, %v5795_v35  ;;  %v6727_v4 = vld [vmem:[#allocation91_spill] sm:$0xff] }
 0x98e   : > { %v2790_v31 = vadd.f32 1.0, %v4547_v49  ;;  %v4549_v13 = vpop.eup %4548  ;;  %v2793_v7 = vmul.f32 -0.5, %v4547_v49  ;;  %v3031_v0 = vmul.f32 1.442695, %v3020_v28  ;;  %v2796_v10 = vand.u32 2147483647, %v4547_v49 }
 0x98f   : > { %v2538_v22 = vsel %vm2537_vm1, %v2535_v38, %v2532_v6  ;;  %v4551_v20 = vpop.eup %4550  ;;  %v2765_v44 = vmul.f32 0.6931472, %v4549_v13 }
 0x990   : > { %v2562_v2 = vadd.f32 %v2538_v22, %v2450_v12  ;;  %4552 = vlog2.f32 %v2790_v31  ;;  %v2808_v3 = vadd.f32 1.0, %v4551_v20  ;;  %v2794_v57 = vadd.f32 1.0, %v2793_v7 }
 0x991   : > { %2574 = vperm.xlu1 %4253, %v2557_v55   ;;  %v6726_v55 = vld [vmem:[#allocation74_spill] sm:$0xff]  ;;  %4554 = vpow2.f32 %v3027_v29  ;;  %v2771_v60 = vsel %vm2770_vm0, %v2768_v1, %v2765_v44  ;;  %vm2797_vm8 = vcmp.lt.f32.partialorder %v2796_v10, 0.0004427343  ;;  %v3289_v22 = vand.u32 2147483647, %v6296_v39 }
 0x992   : > { %v6290_v50 = vsub.f32 %v6726_v55, %v6725_v62  ;;  %4556 = vlog2.f32 %v2808_v3  ;;  %v2835_v52 = vadd.f32 %v2771_v60, %v2723_v34  ;;  %v2795_v6 = vmul.f32 %v4547_v49, %v2794_v57 }
 0x993   : > { %4558 = vpow2.f32 %v3031_v0  ;;  %v2814_v13 = vand.u32 2147483647, %v4551_v20  ;;  %v3297_v61 = vsub.f32 0.0, %v3289_v22  ;;  %v2728_v1 = vmax.f32 %v5855_v26, 0.0 }
 0x994   : > { %v3015_v11 = vand.u32 2147483647, %v6290_v50 }
 0x995   : > { %vm2815_vm9 = vcmp.lt.f32.partialorder %v2814_v13, 0.0004427343  ;;  %v3307_v3 = vmul.f32 1.442695, %v3297_v61 }
 0x996   : > { %v4553_v25 = vpop.eup %4552  ;;  %v3023_v48 = vsub.f32 0.0, %v3015_v11 }
 0x997   : > { %v4555_v47 = vpop.eup %4554  ;;  %v2792_v54 = vmul.f32 0.6931472, %v4553_v25 }
 0x998   : > { %v3050_v30 = vadd.f32 1.0, %v4555_v47  ;;  %v4557_v18 = vpop.eup %4556  ;;  %v3037_v15 = vmul.f32 1.442695, %v3023_v48  ;;  %v3053_v49 = vmul.f32 -0.5, %v4555_v47  ;;  %v3056_v28 = vand.u32 2147483647, %v4555_v47 }
 0x999   : > { %2583 = vperm.xlu1 %4253, %v2560_v40   ;;  %v2811_v40 = vmul.f32 -0.5, %v4551_v20  ;;  %v2798_v38 = vsel %vm2797_vm8, %v2795_v6, %v2792_v54  ;;  %v4559_v29 = vpop.eup %4558  ;;  %v2810_v27 = vmul.f32 0.6931472, %v4557_v18 }
 0x99a   : > { %4560 = vlog2.f32 %v3050_v30  ;;  %v2838_v12 = vadd.f32 %v2798_v38, %v2726_v21  ;;  %v3068_v19 = vadd.f32 1.0, %v4559_v29  ;;  %v3054_v44 = vadd.f32 1.0, %v3053_v49  ;;  %v6731_v30 = vld [vmem:[#allocation92_spill] sm:$0xff] }
 0x99b   : > { %v2812_v31 = vadd.f32 1.0, %v2811_v40  ;;  %4562 = vpow2.f32 %v3037_v15  ;;  %vm6312_vm10 = vcmp.lt.f32.partialorder %v3056_v28, 0.0004427343  ;;  %v3071_v26 = vmul.f32 -0.5, %v4559_v29  ;;  %v6732_v15 = vld [vmem:[#allocation78_spill] sm:$0xff] }
 0x99c   : > { %4564 = vlog2.f32 %v3068_v19  ;;  %v3055_v57 = vmul.f32 %v4555_v47, %v3054_v44  ;;  %v6730_v47 = vld [vmem:[#allocation48_spill] sm:$0xff]  ;;  %v3294_v38 = vand.u32 2147483647, %v6731_v30 }
 0x99d   : > { %v2813_v35 = vmul.f32 %v4551_v20, %v2812_v31  ;;  %4566 = vpow2.f32 %v3307_v3  ;;  %v1768_v6 = vperm.slane %v6730_v47, %v5947_v17  ;;  %v3072_v18 = vadd.f32 1.0, %v3071_v26 }
 0x99e   : > { %v3004_v3 = vmax.f32 %v6284_v5, 0.0  ;;  %v3007_v47 = vmax.f32 %v6290_v50, 0.0 }
 0x99f   : > { %v2816_v62 = vsel %vm2815_vm9, %v2813_v35, %v2810_v27  ;;  %v3302_v35 = vsub.f32 0.0, %v3294_v38  ;;  %v3073_v61 = vmul.f32 %v4559_v29, %v3072_v18 }
 0x9a0   : > { %v4561_v7 = vpop.eup %4560  ;;  %v2840_v25 = vadd.f32 %v2816_v62, %v2728_v1 }
 0x9a1   : > { %2589 = vperm.xlu1 %4253, %v2562_v2   ;;  %v6302_v2 = vsub.f32 %v6727_v4, %v6063_v14  ;;  %v4563_v11 = vpop.eup %4562  ;;  %v3052_v34 = vmul.f32 0.6931472, %v4561_v7  ;;  %v6733_v7 = vld [vmem:[#allocation49_spill] sm:$0xff] }
 0x9a2   : > { %v3095_v54 = vadd.f32 1.0, %v4563_v11  ;;  %v4565_v40 = vpop.eup %4564  ;;  %v3098_v49 = vmul.f32 -0.5, %v4563_v11  ;;  %v1772_v28 = vperm.slane %v6733_v7, %v5957_v45  ;;  %v3101_v1 = vand.u32 2147483647, %v4563_v11 }
 0x9a3   : > { %v3291_v60 = vand.u32 2147483647, %v6302_v2  ;;  %v3058_v48 = vsel %vm6312_vm10, %v3055_v57, %v3052_v34  ;;  %v3070_v27 = vmul.f32 0.6931472, %v4565_v40 }
 0x9a4   : > { %4568 = vlog2.f32 %v3095_v54  ;;  %vm6337_vm13 = vcmp.lt.f32.partialorder %v3101_v1, 0.0004427343 }
 0x9a5   : > { %v3299_v10 = vsub.f32 0.0, %v3291_v60  ;;  %v3317_v60 = vmul.f32 1.442695, %v3302_v35 }
 0x9a7   : > { %v3311_v21 = vmul.f32 1.442695, %v3299_v10  ;;  %v6734_v10 = vld [vmem:[#allocation79_spill] sm:$0xff] }
 0x9a9   : > { %2852 = vperm.xlu1 %4253, %v2835_v52   ;;  %v3002_v52 = vmax.f32 %v6278_v37, 0.0  ;;  %v3074_v37 = vand.u32 2147483647, %v4559_v29  ;;  %4570 = vpow2.f32 %v3311_v21 }
 0x9ab   : > { %v3114_v22 = vadd.f32 %v3058_v48, %v3002_v52  ;;  %vm3075_vm12 = vcmp.lt.f32.partialorder %v3074_v37, 0.0004427343  ;;  %v6735_v52 = vperm.slane %v6734_v10, %v5666_v24 }
 0x9ac   : > { %v3076_v44 = vsel %vm3075_vm12, %v3073_v61, %v3070_v27 }
 0x9b1   : > { %2861 = vperm.xlu1 %4253, %v2838_v12   ;;  %v4567_v12 = vpop.eup %4566 }
 0x9b2   : > { %v3337_v4 = vadd.f32 1.0, %v4567_v12  ;;  %v3340_v5 = vmul.f32 -0.5, %v4567_v12 }
 0x9b3   : > { %v1484_v33 = vpop.permute.xlu1 %1483 }
 0x9b4   : > { %v1498_v55 = vperm.slane %v1484_v33, %v5965_v36  ;;  %v3099_v33 = vadd.f32 1.0, %v3098_v49  ;;  %4572 = vlog2.f32 %v3337_v4  ;;  %v3343_v49 = vand.u32 2147483647, %v4567_v12 }
 0x9b5   : > { %4574 = vpow2.f32 %v3317_v60  ;;  %v3281_v60 = vmax.f32 %v6296_v39, 0.0 }
 0x9b6   : > { %v1499_v20 = vsel %vm927_vm7, %v1498_v55, %v6031_v32  ;;  %v4569_v55 = vpop.eup %4568  ;;  %v3100_v26 = vmul.f32 %v4563_v11, %v3099_v33  ;;  %v6739_v33 = vld [vmem:[#allocation97_spill] sm:$0xff]  ;;  %vm3344_vm14 = vcmp.lt.f32.partialorder %v3343_v49, 0.0004427343 }
 0x9b7   : > { %v6310_v14 = vadd.f32 %v1499_v20, %v6008_v56  ;;  %v3565_v20 = vand.u32 2147483647, %v6133_v63  ;;  %v4571_v57 = vpop.eup %4570  ;;  %v3097_v0 = vmul.f32 0.6931472, %v4569_v55 }
 0x9b8   : > { %v3355_v11 = vadd.f32 1.0, %v4571_v57  ;;  %v3358_v4 = vmul.f32 -0.5, %v4571_v57 }
 0x9b9   : > { %2867 = vperm.xlu1 %4253, %v2840_v25   ;;  %v3116_v25 = vadd.f32 %v3076_v44, %v3004_v3  ;;  %v3573_v48 = vsub.f32 0.0, %v3565_v20  ;;  %v3103_v38 = vsel %vm6337_vm13, %v3100_v26, %v3097_v0  ;;  %v3361_v26 = vand.u32 2147483647, %v4571_v57 }
 0x9ba   : > { %v4573_v21 = vpop.eup %4572  ;;  %4576 = vlog2.f32 %v3355_v11 }
 0x9bb   : > { %v1747_v32 = vpop.permute.xlu1 %1746  ;;  %v4575_v27 = vpop.eup %4574  ;;  %v3339_v35 = vmul.f32 0.6931472, %v4573_v21  ;;  %vm3362_vm15 = vcmp.lt.f32.partialorder %v3361_v26, 0.0004427343 }
 0x9bc   : > { %v1766_v56 = vperm.slane %v1747_v32, %v5802_v23 }
 0x9be   : > { %v1767_v31 = vsel %vm907_vm4, %v1766_v56, %v6732_v15  ;;  %v6738_v56 = vld [vmem:[#allocation95_spill] sm:$0xff]  ;;  %v3341_v15 = vadd.f32 1.0, %v3340_v5 }
 0x9bf   : > { %v1769_v13 = vsel %vm911_vm2, %v1768_v6, %v1767_v31  ;;  %v6343_v40 = vsub.f32 %v6198_v41, %v6738_v56  ;;  %v3581_v31 = vmul.f32 1.442695, %v3573_v48  ;;  %v3534_v41 = vpop.permute.xlu2 %3533 }
 0x9c0   : > { %v3342_v61 = vmul.f32 %v4567_v12, %v3341_v15  ;;  %v6355_v44 = vsub.f32 %v6739_v33, %v3534_v41  ;;  %v4577_v1 = vpop.eup %4576  ;;  %v3359_v12 = vadd.f32 1.0, %v3358_v4  ;;  %v3388_v15 = vand.u32 2147483647, %v4575_v27 }
 0x9c1   : > { %3133 = vperm.xlu1 %4253, %v3114_v22   ;;  %v3569_v22 = vand.u32 2147483647, %v6343_v40  ;;  %4578 = vpow2.f32 %v3581_v31  ;;  %v3357_v32 = vmul.f32 0.6931472, %v4577_v1  ;;  %v3283_v31 = vmax.f32 %v6302_v2, 0.0 }
 0x9c2   : > { %v3345_v7 = vsel %vm3344_vm14, %v3342_v61, %v3339_v35  ;;  %v3360_v5 = vmul.f32 %v4571_v57, %v3359_v12  ;;  %v6743_v61 = vld [vmem:[#allocation81_spill] sm:$0xff]  ;;  %vm3389_vm1 = vcmp.lt.f32.partialorder %v3388_v15, 0.0004427343  ;;  %v3286_v2 = vmax.f32 %v6731_v30, 0.0 }
 0x9c3   : > { %v1753_v19 = vpop.permute.xlu1 %1752  ;;  %v3393_v0 = vadd.f32 %v3345_v7, %v3281_v60  ;;  %v6744_v4 = vperm.slane %v6743_v61, %v5666_v24 }
 0x9c4   : > { %v1770_v62 = vperm.slane %v1753_v19, %v5673_v53  ;;  %v3577_v19 = vsub.f32 0.0, %v3569_v22  ;;  %v3363_v11 = vsel %vm3362_vm15, %v3360_v5, %v3357_v32  ;;  %v6745_v32 = vld [vmem:[#allocation82_spill] sm:$0xff] }
 0x9c5   : > { %v3395_v57 = vadd.f32 %v3363_v11, %v3283_v31  ;;  %v2322_v5 = vperm.slane %v6745_v32, %v5802_v23 }
 0x9c6   : > { %v1771_v29 = vsel %vm915_vm3, %v1770_v62, %v1769_v13  ;;  %v3119_v13 = vadd.f32 %v3103_v38, %v3007_v47  ;;  %v3382_v62 = vadd.f32 1.0, %v4575_v27  ;;  %v3589_v20 = vmul.f32 1.442695, %v3577_v19 }
 0x9c7   : > { %v1773_v34 = vsel %vm919_vm5, %v1772_v28, %v1771_v29  ;;  %v3571_v29 = vand.u32 2147483647, %v6355_v44 }
 0x9c8   : > { %v1775_v54 = vsel %vm923_vm6, %v6735_v52, %v1773_v34  ;;  %4580 = vlog2.f32 %v3382_v62  ;;  %v4579_v52 = vpop.eup %4578 }
 0x9c9   : > { %3139 = vperm.xlu1 %4253, %v3116_v25   ;;  %v6741_v25 = vld [vmem:[#allocation80_spill] sm:$0xff]  ;;  %4582 = vpow2.f32 %v3589_v20  ;;  %v3579_v48 = vsub.f32 0.0, %v3571_v29  ;;  %v3597_v39 = vadd.f32 1.0, %v4579_v52  ;;  %v3600_v33 = vmul.f32 -0.5, %v4579_v52 }
 0x9ca   : > { %v3603_v60 = vand.u32 2147483647, %v4579_v52 }
 0x9cb   : > { %v1762_v6 = vpop.permute.xlu1 %1761  ;;  %v3593_v22 = vmul.f32 1.442695, %v3579_v48  ;;  %4584 = vlog2.f32 %v3597_v39  ;;  %v3557_v48 = vmax.f32 %v6133_v63, 0.0 }
 0x9cc   : > { %v1776_v18 = vperm.slane %v1762_v6, %v5965_v36  ;;  %vm3604_vm0 = vcmp.lt.f32.partialorder %v3603_v60, 0.0004427343 }
 0x9cd   : > { %4586 = vpow2.f32 %v3593_v22 }
 0x9ce   : > { %v1777_v37 = vsel %vm927_vm7, %v1776_v18, %v1775_v54  ;;  %v3385_v54 = vmul.f32 -0.5, %v4575_v27  ;;  %v4581_v38 = vpop.eup %4580  ;;  %v6742_v18 = vld [vmem:[#allocation62_spill] sm:$0xff] }
 0x9cf   : > { %v6352_v50 = vadd.f32 %v1777_v37, %v6310_v14  ;;  %v6740_v14 = vld [vmem:[#allocation61_spill] sm:$0xff]  ;;  %v2050_v21 = vperm.slane %v6742_v18, %v5957_v45  ;;  %v4583_v49 = vpop.eup %4582  ;;  %v3384_v41 = vmul.f32 0.6931472, %v4581_v38 }
 0x9d0   : > { %v2046_v3 = vperm.slane %v6740_v14, %v5947_v17  ;;  %v3386_v47 = vadd.f32 1.0, %v3385_v54  ;;  %v3633_v62 = vadd.f32 1.0, %v4583_v49  ;;  %v3601_v14 = vadd.f32 1.0, %v3600_v33 }
 0x9d1   : > { %3148 = vperm.xlu1 %4253, %v3119_v13   ;;  %v4585_v1 = vpop.eup %4584  ;;  %v3639_v11 = vand.u32 2147483647, %v4583_v49 }
 0x9d2   : > { %v3387_v35 = vmul.f32 %v4575_v27, %v3386_v47  ;;  %4588 = vlog2.f32 %v3633_v62  ;;  %v3599_v29 = vmul.f32 0.6931472, %v4585_v1 }
 0x9d3   : > { %v2025_v55 = vpop.permute.xlu1 %2024  ;;  %v4587_v20 = vpop.eup %4586  ;;  %vm3640_vm8 = vcmp.lt.f32.partialorder %v3639_v11, 0.0004427343  ;;  %v6758_v11 = vld [vmem:[#allocation98_spill] sm:$0xff] }
 0x9d4   : > { %v2044_v28 = vperm.slane %v2025_v55, %v5802_v23  ;;  %v3390_v7 = vsel %vm3389_vm1, %v3387_v35, %v3384_v41  ;;  %v3651_v30 = vadd.f32 1.0, %v4587_v20 }
 0x9d6   : > { %v2045_v34 = vsel %vm907_vm4, %v2044_v28, %v6741_v25  ;;  %v3602_v25 = vmul.f32 %v4579_v52, %v3601_v14  ;;  %4590 = vlog2.f32 %v3651_v30  ;;  %v6752_v30 = vld [vmem:[#allocation93_spill] sm:$0xff] }
 0x9d7   : > { %v2047_v10 = vsel %vm911_vm2, %v2046_v3, %v2045_v34  ;;  %v3398_v3 = vadd.f32 %v3390_v7, %v3286_v2  ;;  %v3636_v34 = vmul.f32 -0.5, %v4583_v49  ;;  %v3563_v7 = vmax.f32 %v6355_v44, 0.0 }
 0x9d8   : > { %v3605_v26 = vsel %vm3604_vm0, %v3602_v25, %v3599_v29  ;;  %v4589_v54 = vpop.eup %4588  ;;  %v6753_v44 = vperm.slane %v6752_v30, %v5656_v46 }
 0x9d9   : > { %3414 = vperm.xlu1 %4253, %v3393_v0   ;;  %v3637_v39 = vadd.f32 1.0, %v3636_v34  ;;  %v3669_v52 = vadd.f32 %v3605_v26, %v3557_v48  ;;  %v3635_v38 = vmul.f32 0.6931472, %v4589_v54  ;;  %v6754_v26 = vld [vmem:[#allocation94_spill] sm:$0xff] }
 0x9db   : > { %v2031_v56 = vpop.permute.xlu1 %2030  ;;  %v3638_v18 = vmul.f32 %v4583_v49, %v3637_v39 }
 0x9dc   : > { %v2048_v6 = vperm.slane %v2031_v56, %v5673_v53  ;;  %v6746_v56 = vld [vmem:[#allocation83_spill] sm:$0xff]  ;;  %v4591_v22 = vpop.eup %4590 }
 0x9dd   : > { %v3641_v31 = vsel %vm3640_vm8, %v3638_v18, %v3635_v38  ;;  %v3653_v49 = vmul.f32 0.6931472, %v4591_v22  ;;  %v6759_v22 = vperm.slane %v5857_v59, %v5656_v46 }
 0x9de   : > { %v2049_v37 = vsel %vm915_vm3, %v2048_v6, %v2047_v10 }
 0x9df   : > { %v2051_v13 = vsel %vm919_vm5, %v2050_v21, %v2049_v37  ;;  %v3654_v21 = vmul.f32 -0.5, %v4587_v20  ;;  %v6748_v37 = vld [vmem:[#allocation84_spill] sm:$0xff] }
 0x9e0   : > { %v2053_v19 = vsel %vm923_vm6, %v6744_v4, %v2051_v13  ;;  %v3561_v13 = vmax.f32 %v6343_v40, 0.0  ;;  %v3657_v4 = vand.u32 2147483647, %v4587_v20 }
 0x9e1   : > { %3420 = vperm.xlu1 %4253, %v3395_v57   ;;  %v2326_v57 = vperm.slane %v6748_v37, %v5673_v53  ;;  %v3655_v41 = vadd.f32 1.0, %v3654_v21 }
 0x9e2   : > { %v3673_v61 = vadd.f32 %v3641_v31, %v3561_v13  ;;  %vm3658_vm9 = vcmp.lt.f32.partialorder %v3657_v4, 0.0004427343 }
 0x9e3   : > { %v2040_v55 = vpop.permute.xlu1 %2039  ;;  %v3656_v33 = vmul.f32 %v4587_v20, %v3655_v41 }
 0x9e4   : > { %v2054_v28 = vperm.slane %v2040_v55, %v5965_v36 }
 0x9e5   : > { %v3659_v62 = vsel %vm3658_vm9, %v3656_v33, %v3653_v49  ;;  %v2886_v49 = vperm.slane %v6080_v42, %v5666_v24 }
 0x9e6   : > { %v2055_v27 = vsel %vm927_vm7, %v2054_v28, %v2053_v19  ;;  %v6749_v28 = vld [vmem:[#allocation86_spill] sm:$0xff]  ;;  %v3675_v14 = vadd.f32 %v3659_v62, %v3563_v7 }
 0x9e7   : > { %v2057_v12 = vadd.f32 %v2055_v27, %v6352_v50  ;;  %v6747_v50 = vperm.slane %v6746_v56, %v5656_v46  ;;  %v2332_v40 = vperm.slane %v6749_v28, %v5965_v36  ;;  %v6750_v27 = vld [vmem:[#allocation85_spill] sm:$0xff] }
 0x9e9   : > { %3429 = vperm.xlu1 %4253, %v3398_v3   ;;  %v6751_v3 = vperm.slane %v6750_v27, %v5666_v24 }
 0x9eb   : > { %v2297_v0 = vpop.permute.xlu1 %2296 }
 0x9ec   : > { %v2319_v10 = vperm.slane %v2297_v0, %v5653_v43 }
 0x9ee   : > { %v2321_v47 = vsel %vm903_vm11, %v6747_v50, %v2319_v10  ;;  %v6755_v10 = vperm.slane %v6754_v26, %v5802_v23  ;;  %v6769_v26 = vld [vmem:[#allocation36_spill] sm:$0xff] }
 0x9ef   : > { %v2323_v6 = vsel %vm907_vm4, %v2322_v5, %v2321_v47 }
 0x9f1   : > { %3686 = vperm.xlu1 %4253, %v3669_v52   ;;  %v2608_v52 = vperm.slane %v5853_v51, %v5666_v24  ;;  %v6760_v51 = vperm.slane %v5867_v9, %v5802_v23  ;;  %v6762_v9 = vld [vmem:[#allocation99_spill] sm:$0xff] }
 0x9f2   : > { %v2888_v33 = vperm.slane %v6762_v9, %v5965_v36 }
 0x9f3   : > { %v2306_v15 = vpop.permute.xlu1 %2305 }
 0x9f4   : > { %v2324_v63 = vperm.slane %v2306_v15, %v5947_v17 }
 0x9f6   : > { %v2325_v35 = vsel %vm911_vm2, %v2324_v63, %v2323_v6  ;;  %v2610_v6 = vperm.slane %v6758_v11, %v5965_v36 }
 0x9f7   : > { %v2327_v19 = vsel %vm915_vm3, %v2326_v57, %v2325_v35 }
 0x9f9   : > { %3698 = vperm.xlu1 %4253, %v3673_v61   ;;  %v6761_v61 = vperm.slane %v5873_v8, %v5673_v53 }
 0x9fb   : > { %v2312_v2 = vpop.permute.xlu1 %2311 }
 0x9fc   : > { %v2328_v55 = vperm.slane %v2312_v2, %v5957_v45 }
 0x9fe   : > { %v2329_v1 = vsel %vm919_vm5, %v2328_v55, %v2327_v19 }
 0x9ff   : > { %v2331_v60 = vsel %vm923_vm6, %v6751_v3, %v2329_v1 }
 0xa00   : > { %v2333_v20 = vsel %vm927_vm7, %v2332_v40, %v2331_v60  ;;  %v6763_v40 = vperm.slane %v6086_v16, %v5653_v43  ;;  %v6768_v16 = vperm.slane %v6091_v58, %v5957_v45 }
 0xa01   : > { %v2335_v29 = vadd.f32 %v2333_v20, %v2057_v12  ;;  %3704 = vperm.xlu1 %4253, %v3675_v14   ;;  %v6756_v12 = vld [vmem:[#allocation96_spill] sm:$0xff]  ;;  %v6764_v14 = vld [vmem:[#allocation34_spill] sm:$0xff] }
 0xa02   : > { %v6757_v39 = vperm.slane %v6756_v12, %v5673_v53  ;;  %v6765_v42 = vperm.slane %v6764_v14, %v5802_v23  ;;  %v3690_v12 = vpop.permute.xlu2 %3689 }
 0xa03   : > { %v2575_v25 = vpop.permute.xlu1 %2574 }
 0xa04   : > { %v2597_v34 = vperm.slane %v2575_v25, %v5653_v43 }
 0xa06   : > { %v2599_v0 = vsel %vm903_vm11, %v6753_v44, %v2597_v34 }
 0xa07   : > { %v2601_v54 = vsel %vm907_vm4, %v6755_v10, %v2599_v0  ;;  %v3166_v10 = vperm.slane %v6769_v26, %v5965_v36 }
 0xa0b   : > { %v2584_v32 = vpop.permute.xlu1 %2583 }
 0xa0c   : > { %v2602_v5 = vperm.slane %v2584_v32, %v5947_v17 }
 0xa0e   : > { %v2603_v48 = vsel %vm911_vm2, %v2602_v5, %v2601_v54 }
 0xa0f   : > { %v2605_v56 = vsel %vm915_vm3, %v6757_v39, %v2603_v48 }
 0xa13   : > { %v2590_v50 = vpop.permute.xlu1 %2589 }
 0xa14   : > { %v2606_v47 = vperm.slane %v2590_v50, %v5957_v45  ;;  %v6771_v50 = vld [vmem:[#allocation35_spill] sm:$0xff] }
 0xa16   : > { %v2607_v38 = vsel %vm919_vm5, %v2606_v47, %v2605_v56  ;;  %v6770_v56 = vld [vmem:[#allocation37_spill] sm:$0xff]  ;;  %v6772_v47 = vperm.slane %v6771_v50, %v5947_v17 }
 0xa17   : > { %v2609_v18 = vsel %vm923_vm6, %v2608_v52, %v2607_v38  ;;  %v6773_v38 = vld [vmem:[#allocation38_spill] sm:$0xff] }
 0xa18   : > { %v2611_v21 = vsel %vm927_vm7, %v2610_v6, %v2609_v18  ;;  %v3442_v18 = vperm.slane %v6773_v38, %v5666_v24 }
 0xa19   : > { %v2613_v15 = vadd.f32 %v2611_v21, %v2335_v29  ;;  %v6766_v29 = vld [vmem:[#allocation29_spill] sm:$0xff]  ;;  %v3693_v21 = vpop.permute.xlu2 %3692 }
 0xa1a   : > { %v6767_v25 = vperm.slane %v6766_v29, %v5673_v53 }
 0xa1b   : > { %v2853_v31 = vpop.permute.xlu1 %2852 }
 0xa1c   : > { %v2875_v63 = vperm.slane %v2853_v31, %v5653_v43  ;;  %v6774_v31 = vld [vmem:[#allocation33_spill] sm:$0xff] }
 0xa1e   : > { %v2877_v37 = vsel %vm903_vm11, %v6759_v22, %v2875_v63  ;;  %v6775_v63 = vperm.slane %v6774_v31, %v5957_v45 }
 0xa1f   : > { %v2879_v57 = vsel %vm907_vm4, %v6760_v51, %v2877_v37 }
 0xa23   : > { %v2862_v13 = vpop.permute.xlu1 %2861 }
 0xa24   : > { %v2880_v41 = vperm.slane %v2862_v13, %v5947_v17 }
 0xa26   : > { %v2881_v35 = vsel %vm911_vm2, %v2880_v41, %v2879_v57 }
 0xa27   : > { %v2883_v4 = vsel %vm915_vm3, %v6761_v61, %v2881_v35  ;;  %v3696_v35 = vpop.permute.xlu2 %3695 }
 0xa2b   : > { %v2868_v19 = vpop.permute.xlu1 %2867 }
 0xa2c   : > { %v2884_v59 = vperm.slane %v2868_v19, %v5957_v45 }
 0xa2e   : > { %v2885_v2 = vsel %vm919_vm5, %v2884_v59, %v2883_v4  ;;  %v3710_v59 = vperm.slane %v3690_v12, %v5656_v46 }
 0xa2f   : > { %v2887_v62 = vsel %vm923_vm6, %v2886_v49, %v2885_v2  ;;  %v3702_v19 = vpop.permute.xlu2 %3701 }
 0xa30   : > { %v2889_v55 = vsel %vm927_vm7, %v2888_v33, %v2887_v62  ;;  %v3712_v33 = vperm.slane %v3693_v21, %v5802_v23 }
 0xa31   : > { %v2891_v7 = vadd.f32 %v2889_v55, %v2613_v15  ;;  %v3714_v55 = vperm.slane %v3696_v35, %v5947_v17 }
 0xa33   : > { %v3134_v28 = vpop.permute.xlu1 %3133 }
 0xa34   : > { %v3154_v8 = vperm.slane %v3134_v28, %v5656_v46  ;;  %v3718_v46 = vperm.slane %v3702_v19, %v5957_v45 }
 0xa36   : > { %v3155_v1 = vsel %vm903_vm11, %v3154_v8, %v6763_v40 }
 0xa37   : > { %v3157_v27 = vsel %vm907_vm4, %v6765_v42, %v3155_v1  ;;  %v3708_v28 = vpop.permute.xlu2 %3707 }
 0xa3b   : > { %v3140_v3 = vpop.permute.xlu1 %3139 }
 0xa3c   : > { %v3158_v60 = vperm.slane %v3140_v3, %v5947_v17 }
 0xa3e   : > { %v3159_v20 = vsel %vm911_vm2, %v3158_v60, %v3157_v27 }
 0xa3f   : > { %v3161_v34 = vsel %vm915_vm3, %v6767_v25, %v3159_v20 }
 0xa40   : > { %v3163_v30 = vsel %vm919_vm5, %v6768_v16, %v3161_v34 }
 0xa43   : > { %v3149_v44 = vpop.permute.xlu1 %3148 }
 0xa44   : > { %v3164_v0 = vperm.slane %v3149_v44, %v5666_v24 }
 0xa46   : > { %v3165_v54 = vsel %vm923_vm6, %v3164_v0, %v3163_v30 }
 0xa47   : > { %v3167_v32 = vsel %vm927_vm7, %v3166_v10, %v3165_v54 }
 0xa48   : > { %v3169_v5 = vadd.f32 %v3167_v32, %v2891_v7 }
 0xa4b   : > { %v3415_v48 = vpop.permute.xlu1 %3414 }
 0xa4c   : > { %v3434_v39 = vperm.slane %v3415_v48, %v5802_v23 }
 0xa4e   : > { %v3435_v58 = vsel %vm907_vm4, %v3434_v39, %v6770_v56 }
 0xa4f   : > { %v3437_v52 = vsel %vm911_vm2, %v6772_v47, %v3435_v58 }
 0xa53   : > { %v3421_v11 = vpop.permute.xlu1 %3420 }
 0xa54   : > { %v3438_v6 = vperm.slane %v3421_v11, %v5673_v53 }
 0xa56   : > { %v3439_v15 = vsel %vm915_vm3, %v3438_v6, %v3437_v52 }
 0xa57   : > { %v3441_v22 = vsel %vm919_vm5, %v6775_v63, %v3439_v15 }
 0xa58   : > { %v3443_v37 = vsel %vm923_vm6, %v3442_v18, %v3441_v22 }
 0xa5b   : > { %v3430_v51 = vpop.permute.xlu1 %3429 }
 0xa5c   : > { %v3444_v57 = vperm.slane %v3430_v51, %v5965_v36 }
 0xa5e   : > { %v3445_v13 = vsel %vm927_vm7, %v3444_v57, %v3443_v37 }
 0xa5f   : > { %v3447_v41 = vadd.f32 %v3445_v13, %v3169_v5 }
 0xa63   : > { %v3687_v61 = vpop.permute.xlu1 %3686 }
 0xa64   : > { %v3709_v4 = vperm.slane %v3687_v61, %v5653_v43 }
 0xa66   : > { %v3711_v49 = vsel %vm903_vm11, %v3710_v59, %v3709_v4  ;;  %vm3726_vm11 = vcmask 516096  }
 0xa67   : > { %v3713_v2 = vsel %vm907_vm4, %v3712_v33, %v3711_v49 }
 0xa68   : > { %v3715_v7 = vsel %vm911_vm2, %v3714_v55, %v3713_v2 }
 0xa6b   : > { %v3699_v9 = vpop.permute.xlu1 %3698 }
 0xa6c   : > { %v3716_v62 = vperm.slane %v3699_v9, %v5673_v53  ;;  %v3722_v53 = vperm.slane %v3708_v28, %v5965_v36 }
 0xa6e   : > { %v3717_v43 = vsel %vm915_vm3, %v3716_v62, %v3715_v7 }
 0xa6f   : > { %v3719_v17 = vsel %vm919_vm5, %v3718_v46, %v3717_v43 }
 0xa73   : > { %v3705_v23 = vpop.permute.xlu1 %3704 }
 0xa74   : > { %v3720_v8 = vperm.slane %v3705_v23, %v5666_v24 }
 0xa76   : > { %v3721_v40 = vsel %vm923_vm6, %v3720_v8, %v3719_v17 }
 0xa77   : > { %v3723_v1 = vsel %vm927_vm7, %v3722_v53, %v3721_v40 }
 0xa78   : > { %v3725_v14 = vadd.f32 %v3723_v1, %v3447_v41 }
 0xa7a   : > { %3727 = vst.msk [vmem:[%s4812_s25] sm:$0x1] %vm3726_vm11, %v3725_v14 }
 0xa7b   : > { %4656 = shalt.err (!%p4653_p12)
}
 0xa7c   : > { %4135 = dma.vmem_to_hbm [thread:$0]  (%p4781_p5), %s3740_s16, 16, %s3742_s10, %s3729_s30  }
 0xa7d PF: > { %p4141_p13 = scmp.ge.s32.totalorder %s4703_s22, 2  ;;  %s3753_s25 = sand.u32 1, %s4691_s19  }
 0xa7e   : > { %s3754_s13 = scalar_lea.sflag [#allocation7], %s3753_s25 }
 0xa7f   : > { %p4138_p0 = pnand %p4141_p13, %p4785_p6 }
 0xa81   : > { %p4139_p1 = pneg %p4138_p0 }
 0xa83   : > { %4686 = dma.done.wait (%p4139_p1), %s3754_s13, 16  }
 0xa84   : > { %4688 = vsyncadd (%p4139_p1), %s3754_s13, 4294967280  ;;  %s6777_s7 = sld [smem:[#allocation27_spill]]  ;;  %p22_p2 = scmp.ge.s32.totalorder %s4768_s24, 4  }
 0xa85   : > { %s6778_s19 = smov %s4695_s20  ;;  %s6779_s20 = smov %s4699_s21 }
 0xa86   : > { %s6781_s22 = smov %s4768_s24  ;;  %24 = sbr.rel (!%p22_p2) target bundleno = 10 (0xa), region = 700 }
 0xa8a   : > { %s6780_s21 = smov %s6777_s7 }
 0xa8b   :  { %3759 = vsyncpa [#allocation7], 1 }
 0xa8c   :  { %3761 = vsyncpa [#allocation7 + $0x1], 1 }
 0xa8d   :  { %3762 = vsyncmov [#allocation3] }
 0xa90   :  { %s3763_s22 = vpop.sfrf %3762 }
 0xa91   :  { %p4132_p5 = scmp.ne.s32.totalorder %s3763_s22, 0 }
 0xa93   :  { %3767 = shalt.err (%p4132_p5)  }
 0xa94   :  { %3769 = vsyncmov [#allocation3 + $0x1] }
 0xa97   :  { %s3770_s28 = vpop.sfrf %3769 }
 0xa98   :  { %p4133_p6 = scmp.ne.s32.totalorder %s3770_s28, 0 }
 0xa9a   :  { %3774 = shalt.err (%p4133_p6)  }

</bundles_post_ra>
